<compile_context>
chip_gen: v6e
topology: v6e:2x2x1
jax: 0.10.0
libtpu: 0.0.40
codegen_flags: <defaults>
</compile_context>

<pallas_src>
import functools

import jax
import jax.numpy as jnp
import numpy as np
from jax import lax
from jax.experimental import pallas as pl
from jax.experimental.pallas import tpu as pltpu

NEG_SLOPE = 0.01   # nn.LeakyReLU() default negative_slope


# ----------------------------------------------------------------------------
# Fused Pallas kernel: all 3 layers for ONE group (grid axis = groups)
# ----------------------------------------------------------------------------
def _fused_kernel(x_ref, mask_ref, w1_ref, b1_ref, w2_ref, b2_ref,
                  w3_ref, b3_ref, out_ref, *, rows_out, w_pad, c_mid,
                  margin, halo):
    """Layouts (channels on sublanes, flattened padded-grid rows on lanes):
       x_ref   : (1, c_ig, w_x)        bf16  padded flat input, zero ring/halo
       mask_ref: (1, w_h1)             f32   1.0 on real interior pixels
       w1_ref  : (1, 9, c_mid, c_ig)   bf16  tap-major layer-1 weights
       b1_ref  : (1, c_mid, 1)         f32
       w2_ref  : (1, 9, c_mid, c_mid)  bf16  tap-major layer-2 weights
       b2_ref  : (1, c_mid, 1)         f32
       w3_ref  : (1, 1, c_mid)         bf16  1x1 conv weight (row vector)
       b3_ref  : (1, 1, 1)             f32
       out_ref : (1, 1, rows_out)      f32   lane-dense output
    """
    f32 = jnp.float32
    w_h1 = 2 * margin + rows_out
    deltas = [(ky - 1) * w_pad + (kx - 1) for ky in range(3) for kx in range(3)]

    # ---- layer 1: grouped 3x3 conv = 9 lane-shifted taps, f32 MXU accumulate ----
    x = x_ref[0]                                              # (c_ig, w_x) bf16
    acc1 = jnp.zeros((c_mid, w_h1), f32)
    for t, d in enumerate(deltas):
        xt = x[:, halo + d: halo + d + w_h1]                  # lane shift (static)
        acc1 = acc1 + jnp.dot(w1_ref[0, t], xt, preferred_element_type=f32)
    a1 = acc1 + b1_ref[0]
    h1 = jnp.where(a1 >= 0.0, a1, a1 * NEG_SLOPE)
    # Zero the conv-padding ring / halo / lane-tail columns so layer 2 sees a
    # zero-padded h1, then cast to bf16 exactly once.
    h1 = (h1 * mask_ref[...]).astype(jnp.bfloat16)            # (c_mid, w_h1)
    # Dropout(0.2): identity in eval mode.

    # ---- layer 2: grouped 3x3 conv = 9 lane-shifted taps on VMEM-resident h1 ----
    acc2 = jnp.zeros((c_mid, rows_out), f32)
    for t, d in enumerate(deltas):
        ht = h1[:, margin + d: margin + d + rows_out]         # (c_mid, rows_out) bf16
        acc2 = acc2 + jnp.dot(w2_ref[0, t], ht, preferred_element_type=f32)
    a2 = acc2 + b2_ref[0]
    h2 = jnp.where(a2 >= 0.0, a2, a2 * NEG_SLOPE).astype(jnp.bfloat16)
    # Dropout(0.2): identity in eval mode.

    # ---- layer 3: per-group 1x1 conv, lane-dense (1, rows_out) output ----
    y = jnp.dot(w3_ref[0], h2, preferred_element_type=f32)    # (1, rows_out)
    out_ref[0] = y + b3_ref[0]


# ----------------------------------------------------------------------------
# One-time host-side weight packing (hoisted out of the forward => jittable)
# ----------------------------------------------------------------------------
def pack_params(params):
    """PyTorch-layout grouped-conv weights -> per-group, tap-major blocks."""
    w1, b1, w2, b2, w3, b3 = (np.asarray(p, np.float32) for p in params)
    G = w3.shape[0]                      # c_out == groups
    c_mid = w1.shape[0] // G             # 32*c_in/groups (== 96)
    c_ig = w1.shape[1]                   # c_in/groups (== 3)

    w1p = np.zeros((G, 9, c_mid, c_ig), np.float32)
    w2p = np.zeros((G, 9, c_mid, c_mid), np.float32)
    for g in range(G):
        blk1 = w1[g * c_mid:(g + 1) * c_mid]                  # (Cm, Cig, 3, 3)
        w1p[g] = blk1.transpose(2, 3, 0, 1).reshape(9, c_mid, c_ig)
        blk2 = w2[g * c_mid:(g + 1) * c_mid]                  # (Cm, Cm, 3, 3)
        w2p[g] = blk2.transpose(2, 3, 0, 1).reshape(9, c_mid, c_mid)
    w3p = w3[:, :, 0, 0].reshape(G, 1, c_mid)
    return (jnp.asarray(w1p, jnp.bfloat16),
            jnp.asarray(b1.reshape(G, c_mid, 1), jnp.float32),
            jnp.asarray(w2p, jnp.bfloat16),
            jnp.asarray(b2.reshape(G, c_mid, 1), jnp.float32),
            jnp.asarray(w3p, jnp.bfloat16),
            jnp.asarray(b3.reshape(G, 1, 1), jnp.float32))


# ----------------------------------------------------------------------------
# Forward pass (single fused pallas_call) -- jax.jit friendly
# ----------------------------------------------------------------------------
def interp_net_conv_forward(x_nchw, packed):
    w1p, b1p, w2p, b2p, w3p, b3p = packed
    N, C, H, W = x_nchw.shape
    G = w3p.shape[0]                     # groups == c_out
    c_ig = C // G                        # in-channels per group
    c_mid = w3p.shape[2]                 # mid channels per group
    h_pad, w_pad = H + 2, W + 2
    rows_v = N * h_pad * w_pad           # valid rows in conv-padded coords
    rows_out = ((rows_v + 127) // 128) * 128     # lane-dense (multiple of 128)
    shift_max = w_pad + 1                        # max |tap shift| in flat rows
    margin = ((shift_max + 7) // 8) * 8          # h1 halo around output window
    halo = margin                                # x halo around h1 window
    w_h1 = 2 * margin + rows_out
    w_x = 2 * halo + w_h1

    # Wrapper glue (tiny XLA): group-major, channels-on-sublanes, flattened
    # conv-padded rows on lanes, plus zero halo for the shifted-tap slices.
    xg = x_nchw.reshape(N, G, c_ig, H, W)
    xg = jnp.transpose(xg, (1, 2, 0, 3, 4))                      # (G,Cig,N,H,W)
    xg = jnp.pad(xg, ((0, 0), (0, 0), (0, 0), (1, 1), (1, 1)))   # conv zero ring
    xg = xg.reshape(G, c_ig, rows_v)
    lead = halo + margin
    xg = jnp.pad(xg, ((0, 0), (0, 0), (lead, w_x - lead - rows_v)))
    xg = xg.astype(jnp.bfloat16)

    # Interior-pixel mask, lane-dense (static shapes -> jit constant).
    m = np.zeros((N, h_pad, w_pad), np.float32)
    m[:, 1:H + 1, 1:W + 1] = 1.0
    mask_np = np.zeros((1, w_h1), np.float32)
    mask_np[0, margin:margin + rows_v] = m.reshape(-1)
    mask = jnp.asarray(mask_np)

    kern = functools.partial(_fused_kernel, rows_out=rows_out, w_pad=w_pad,
                             c_mid=c_mid, margin=margin, halo=halo)
    out_pad = pl.pallas_call(
        kern,
        out_shape=jax.ShapeDtypeStruct((G, 1, rows_out), jnp.float32),
        grid=(G,),
        in_specs=[
            pl.BlockSpec((1, c_ig, w_x), lambda g: (g, 0, 0)),
            pl.BlockSpec((1, w_h1), lambda g: (0, 0)),
            pl.BlockSpec((1, 9, c_mid, c_ig), lambda g: (g, 0, 0, 0)),
            pl.BlockSpec((1, c_mid, 1), lambda g: (g, 0, 0)),
            pl.BlockSpec((1, 9, c_mid, c_mid), lambda g: (g, 0, 0, 0)),
            pl.BlockSpec((1, c_mid, 1), lambda g: (g, 0, 0)),
            pl.BlockSpec((1, 1, c_mid), lambda g: (g, 0, 0)),
            pl.BlockSpec((1, 1, 1), lambda g: (g, 0, 0)),
        ],
        out_specs=pl.BlockSpec((1, 1, rows_out), lambda g: (g, 0, 0)),
        compiler_params=pltpu.CompilerParams(
            dimension_semantics=("parallel",)),   # groups shard across v7x's 2 TCs
    )(xg, mask, w1p, b1p, w2p, b2p, w3p, b3p)

    # Drop lane padding + conv-padding ring rows (garbage by design), restore
    # NCHW (group g == output channel g).
    out = out_pad.reshape(G, rows_out)[:, :rows_v].reshape(G, N, h_pad, w_pad)
    out = out[:, :, 1:H + 1, 1:W + 1]
    return jnp.transpose(out, (1, 0, 2, 3))


# ----------------------------------------------------------------------------
# Deterministic parameter init (PyTorch Conv2d-style uniform bounds)
# ----------------------------------------------------------------------------
def init_params(key, c_in):
    c_out = c_in // 3
    g = c_out
    ks = jax.random.split(key, 6)

    def u(k, shape, fan_in):
        bound = 1.0 / np.sqrt(fan_in)
        return jax.random.uniform(k, shape, jnp.float32, -bound, bound)

    w1 = u(ks[0], (32 * c_in, c_in // g, 3, 3), (c_in // g) * 9)
    b1 = u(ks[1], (32 * c_in,), (c_in // g) * 9)
    w2 = u(ks[2], (32 * c_in, 32 * c_in // g, 3, 3), (32 * c_in // g) * 9)
    b2 = u(ks[3], (32 * c_in,), (32 * c_in // g) * 9)
    w3 = u(ks[4], (c_out, 32 * c_in // g, 1, 1), 32 * c_in // g)
    b3 = u(ks[5], (c_out,), 32 * c_in // g)
    return (w1, b1, w2, b2, w3, b3)


# ----------------------------------------------------------------------------
# Pure-JAX f32 reference (grouped lax.conv)
# ----------------------------------------------------------------------------
def reference_forward(x_nchw, params, groups):
    w1, b1, w2, b2, w3, b3 = params

    def conv(x, w, b, pad):
        y = lax.conv_general_dilated(
            x, w, (1, 1), ((pad, pad), (pad, pad)),
            dimension_numbers=("NCHW", "OIHW", "NCHW"),
            feature_group_count=groups)
        return y + b[None, :, None, None]

    def leaky(v):
        return jnp.where(v >= 0, v, v * NEG_SLOPE)

    h = leaky(conv(x_nchw, w1, b1, 1))
    h = leaky(conv(h, w2, b2, 1))
    return conv(h, w3, b3, 0)


if __name__ == "__main__":
    key = jax.random.PRNGKey(0)
    c_in, H, W, N = 6, 8, 8, 2          # input_dim = (6, 8, 8) -> c_out = 2
    groups = c_in // 3
    k_x, k_p = jax.random.split(key)

    x = jax.random.normal(k_x, (N, c_in, H, W), jnp.float32)   # NCHW like PyTorch
    params = init_params(k_p, c_in)
    packed = pack_params(params)        # one-time packing, outside the forward

    fwd = jax.jit(interp_net_conv_forward)
    out = jax.block_until_ready(fwd(x, packed))
    assert out.shape == (N, c_in // 3, H, W), out.shape

    ref = reference_forward(x, params, groups)
    # bf16 MXU inputs (f32 accumulation) vs. f32 reference => loosened tolerance.
    np.testing.assert_allclose(np.asarray(out), np.asarray(ref),
                               rtol=2e-2, atol=2e-2)
    print("KERNEL_OK")
</pallas_src>

<mosaic_0001>
module attributes {stable_mosaic.version = 11 : i64} {
  func.func @_fused_kernel(%arg0: i32, %arg1: memref<1x3x320xbf16, #tpu.memory_space<vmem>>, %arg2: memref<1x288xf32, #tpu.memory_space<vmem>>, %arg3: memref<1x9x96x3xbf16, #tpu.memory_space<vmem>>, %arg4: memref<1x96x1xf32, #tpu.memory_space<vmem>>, %arg5: memref<1x9x96x96xbf16, #tpu.memory_space<vmem>>, %arg6: memref<1x96x1xf32, #tpu.memory_space<vmem>>, %arg7: memref<1x1x96xbf16, #tpu.memory_space<vmem>>, %arg8: memref<1x1x1xf32, #tpu.memory_space<vmem>>, %arg9: memref<1x1x256xf32, #tpu.memory_space<vmem>>) attributes {dimension_semantics = [#tpu.dimension_semantics<parallel>], iteration_bounds = array<i64: 2>, scalar_prefetch = 0 : i64, scratch_operands = 0 : i64, tpu.core_type = #tpu.core_type<tc>, window_params = [{transform_indices = @transform_0, window_bounds = array<i64: 1, 3, 320>}, {pipeline_mode = #tpu.pipeline_mode<synchronous>, transform_indices = @transform_1, window_bounds = array<i64: 1, 288>}, {transform_indices = @transform_2, window_bounds = array<i64: 1, 9, 96, 3>}, {transform_indices = @transform_3, window_bounds = array<i64: 1, 96, 1>}, {transform_indices = @transform_4, window_bounds = array<i64: 1, 9, 96, 96>}, {transform_indices = @transform_5, window_bounds = array<i64: 1, 96, 1>}, {transform_indices = @transform_6, window_bounds = array<i64: 1, 1, 96>}, {transform_indices = @transform_7, window_bounds = array<i64: 1, 1, 1>}, {transform_indices = @transform_8, window_bounds = array<i64: 1, 1, 256>}]} {
    %c0 = arith.constant 0 : index
    %c0_0 = arith.constant 0 : index
    %c0_1 = arith.constant 0 : index
    %0 = vector.load %arg1[%c0, %c0_0, %c0_1] : memref<1x3x320xbf16, #tpu.memory_space<vmem>>, vector<1x3x320xbf16>
    %1 = vector.shape_cast %0 : vector<1x3x320xbf16> to vector<3x320xbf16>
    %cst = arith.constant 0.000000e+00 : f32
    %2 = vector.broadcast %cst : f32 to vector<96x288xf32>
    %3 = vector.extract_strided_slice %1 {offsets = [0, 5], sizes = [3, 288], strides = [1, 1]} : vector<3x320xbf16> to vector<3x288xbf16>
    %c0_2 = arith.constant 0 : index
    %c0_3 = arith.constant 0 : index
    %c0_4 = arith.constant 0 : index
    %c0_5 = arith.constant 0 : index
    %4 = vector.load %arg3[%c0_2, %c0_3, %c0_4, %c0_5] : memref<1x9x96x3xbf16, #tpu.memory_space<vmem>>, vector<1x1x96x3xbf16>
    %5 = vector.shape_cast %4 : vector<1x1x96x3xbf16> to vector<96x3xbf16>
    %cst_6 = arith.constant dense<0.000000e+00> : vector<96x288xf32>
    %6 = tpu.matmul %5, %3, %cst_6 {dimension_numbers = #tpu.dot_dimension_numbers<[1], [0], [0], [1], [0, 0, 1, 1], [], []>} : vector<96x3xbf16>, vector<3x288xbf16>, vector<96x288xf32> -> vector<96x288xf32>
    %7 = arith.addf %2, %6 : vector<96x288xf32>
    %8 = vector.extract_strided_slice %1 {offsets = [0, 6], sizes = [3, 288], strides = [1, 1]} : vector<3x320xbf16> to vector<3x288xbf16>
    %c0_7 = arith.constant 0 : index
    %c1 = arith.constant 1 : index
    %c0_8 = arith.constant 0 : index
    %c0_9 = arith.constant 0 : index
    %9 = vector.load %arg3[%c0_7, %c1, %c0_8, %c0_9] : memref<1x9x96x3xbf16, #tpu.memory_space<vmem>>, vector<1x1x96x3xbf16>
    %10 = vector.shape_cast %9 : vector<1x1x96x3xbf16> to vector<96x3xbf16>
    %cst_10 = arith.constant dense<0.000000e+00> : vector<96x288xf32>
    %11 = tpu.matmul %10, %8, %cst_10 {dimension_numbers = #tpu.dot_dimension_numbers<[1], [0], [0], [1], [0, 0, 1, 1], [], []>} : vector<96x3xbf16>, vector<3x288xbf16>, vector<96x288xf32> -> vector<96x288xf32>
    %12 = arith.addf %7, %11 : vector<96x288xf32>
    %13 = vector.extract_strided_slice %1 {offsets = [0, 7], sizes = [3, 288], strides = [1, 1]} : vector<3x320xbf16> to vector<3x288xbf16>
    %c0_11 = arith.constant 0 : index
    %c2 = arith.constant 2 : index
    %c0_12 = arith.constant 0 : index
    %c0_13 = arith.constant 0 : index
    %14 = vector.load %arg3[%c0_11, %c2, %c0_12, %c0_13] : memref<1x9x96x3xbf16, #tpu.memory_space<vmem>>, vector<1x1x96x3xbf16>
    %15 = vector.shape_cast %14 : vector<1x1x96x3xbf16> to vector<96x3xbf16>
    %cst_14 = arith.constant dense<0.000000e+00> : vector<96x288xf32>
    %16 = tpu.matmul %15, %13, %cst_14 {dimension_numbers = #tpu.dot_dimension_numbers<[1], [0], [0], [1], [0, 0, 1, 1], [], []>} : vector<96x3xbf16>, vector<3x288xbf16>, vector<96x288xf32> -> vector<96x288xf32>
    %17 = arith.addf %12, %16 : vector<96x288xf32>
    %18 = vector.extract_strided_slice %1 {offsets = [0, 15], sizes = [3, 288], strides = [1, 1]} : vector<3x320xbf16> to vector<3x288xbf16>
    %c0_15 = arith.constant 0 : index
    %c3 = arith.constant 3 : index
    %c0_16 = arith.constant 0 : index
    %c0_17 = arith.constant 0 : index
    %19 = vector.load %arg3[%c0_15, %c3, %c0_16, %c0_17] : memref<1x9x96x3xbf16, #tpu.memory_space<vmem>>, vector<1x1x96x3xbf16>
    %20 = vector.shape_cast %19 : vector<1x1x96x3xbf16> to vector<96x3xbf16>
    %cst_18 = arith.constant dense<0.000000e+00> : vector<96x288xf32>
    %21 = tpu.matmul %20, %18, %cst_18 {dimension_numbers = #tpu.dot_dimension_numbers<[1], [0], [0], [1], [0, 0, 1, 1], [], []>} : vector<96x3xbf16>, vector<3x288xbf16>, vector<96x288xf32> -> vector<96x288xf32>
    %22 = arith.addf %17, %21 : vector<96x288xf32>
    %23 = vector.extract_strided_slice %1 {offsets = [0, 16], sizes = [3, 288], strides = [1, 1]} : vector<3x320xbf16> to vector<3x288xbf16>
    %c0_19 = arith.constant 0 : index
    %c4 = arith.constant 4 : index
    %c0_20 = arith.constant 0 : index
    %c0_21 = arith.constant 0 : index
    %24 = vector.load %arg3[%c0_19, %c4, %c0_20, %c0_21] : memref<1x9x96x3xbf16, #tpu.memory_space<vmem>>, vector<1x1x96x3xbf16>
    %25 = vector.shape_cast %24 : vector<1x1x96x3xbf16> to vector<96x3xbf16>
    %cst_22 = arith.constant dense<0.000000e+00> : vector<96x288xf32>
    %26 = tpu.matmul %25, %23, %cst_22 {dimension_numbers = #tpu.dot_dimension_numbers<[1], [0], [0], [1], [0, 0, 1, 1], [], []>} : vector<96x3xbf16>, vector<3x288xbf16>, vector<96x288xf32> -> vector<96x288xf32>
    %27 = arith.addf %22, %26 : vector<96x288xf32>
    %28 = vector.extract_strided_slice %1 {offsets = [0, 17], sizes = [3, 288], strides = [1, 1]} : vector<3x320xbf16> to vector<3x288xbf16>
    %c0_23 = arith.constant 0 : index
    %c5 = arith.constant 5 : index
    %c0_24 = arith.constant 0 : index
    %c0_25 = arith.constant 0 : index
    %29 = vector.load %arg3[%c0_23, %c5, %c0_24, %c0_25] : memref<1x9x96x3xbf16, #tpu.memory_space<vmem>>, vector<1x1x96x3xbf16>
    %30 = vector.shape_cast %29 : vector<1x1x96x3xbf16> to vector<96x3xbf16>
    %cst_26 = arith.constant dense<0.000000e+00> : vector<96x288xf32>
    %31 = tpu.matmul %30, %28, %cst_26 {dimension_numbers = #tpu.dot_dimension_numbers<[1], [0], [0], [1], [0, 0, 1, 1], [], []>} : vector<96x3xbf16>, vector<3x288xbf16>, vector<96x288xf32> -> vector<96x288xf32>
    %32 = arith.addf %27, %31 : vector<96x288xf32>
    %33 = vector.extract_strided_slice %1 {offsets = [0, 25], sizes = [3, 288], strides = [1, 1]} : vector<3x320xbf16> to vector<3x288xbf16>
    %c0_27 = arith.constant 0 : index
    %c6 = arith.constant 6 : index
    %c0_28 = arith.constant 0 : index
    %c0_29 = arith.constant 0 : index
    %34 = vector.load %arg3[%c0_27, %c6, %c0_28, %c0_29] : memref<1x9x96x3xbf16, #tpu.memory_space<vmem>>, vector<1x1x96x3xbf16>
    %35 = vector.shape_cast %34 : vector<1x1x96x3xbf16> to vector<96x3xbf16>
    %cst_30 = arith.constant dense<0.000000e+00> : vector<96x288xf32>
    %36 = tpu.matmul %35, %33, %cst_30 {dimension_numbers = #tpu.dot_dimension_numbers<[1], [0], [0], [1], [0, 0, 1, 1], [], []>} : vector<96x3xbf16>, vector<3x288xbf16>, vector<96x288xf32> -> vector<96x288xf32>
    %37 = arith.addf %32, %36 : vector<96x288xf32>
    %38 = vector.extract_strided_slice %1 {offsets = [0, 26], sizes = [3, 288], strides = [1, 1]} : vector<3x320xbf16> to vector<3x288xbf16>
    %c0_31 = arith.constant 0 : index
    %c7 = arith.constant 7 : index
    %c0_32 = arith.constant 0 : index
    %c0_33 = arith.constant 0 : index
    %39 = vector.load %arg3[%c0_31, %c7, %c0_32, %c0_33] : memref<1x9x96x3xbf16, #tpu.memory_space<vmem>>, vector<1x1x96x3xbf16>
    %40 = vector.shape_cast %39 : vector<1x1x96x3xbf16> to vector<96x3xbf16>
    %cst_34 = arith.constant dense<0.000000e+00> : vector<96x288xf32>
    %41 = tpu.matmul %40, %38, %cst_34 {dimension_numbers = #tpu.dot_dimension_numbers<[1], [0], [0], [1], [0, 0, 1, 1], [], []>} : vector<96x3xbf16>, vector<3x288xbf16>, vector<96x288xf32> -> vector<96x288xf32>
    %42 = arith.addf %37, %41 : vector<96x288xf32>
    %43 = vector.extract_strided_slice %1 {offsets = [0, 27], sizes = [3, 288], strides = [1, 1]} : vector<3x320xbf16> to vector<3x288xbf16>
    %c0_35 = arith.constant 0 : index
    %c8 = arith.constant 8 : index
    %c0_36 = arith.constant 0 : index
    %c0_37 = arith.constant 0 : index
    %44 = vector.load %arg3[%c0_35, %c8, %c0_36, %c0_37] : memref<1x9x96x3xbf16, #tpu.memory_space<vmem>>, vector<1x1x96x3xbf16>
    %45 = vector.shape_cast %44 : vector<1x1x96x3xbf16> to vector<96x3xbf16>
    %cst_38 = arith.constant dense<0.000000e+00> : vector<96x288xf32>
    %46 = tpu.matmul %45, %43, %cst_38 {dimension_numbers = #tpu.dot_dimension_numbers<[1], [0], [0], [1], [0, 0, 1, 1], [], []>} : vector<96x3xbf16>, vector<3x288xbf16>, vector<96x288xf32> -> vector<96x288xf32>
    %47 = arith.addf %42, %46 : vector<96x288xf32>
    %c0_39 = arith.constant 0 : index
    %c0_40 = arith.constant 0 : index
    %c0_41 = arith.constant 0 : index
    %48 = vector.load %arg4[%c0_39, %c0_40, %c0_41] : memref<1x96x1xf32, #tpu.memory_space<vmem>>, vector<1x96x1xf32>
    %49 = vector.shape_cast %48 : vector<1x96x1xf32> to vector<96x1xf32>
    %50 = vector.broadcast %49 : vector<96x1xf32> to vector<96x288xf32>
    %51 = arith.addf %47, %50 : vector<96x288xf32>
    %cst_42 = arith.constant 0.000000e+00 : f32
    %52 = vector.broadcast %cst_42 : f32 to vector<96x288xf32>
    %53 = arith.cmpf oge, %51, %52 : vector<96x288xf32>
    %cst_43 = arith.constant 0.00999999977 : f32
    %54 = vector.broadcast %cst_43 : f32 to vector<96x288xf32>
    %55 = arith.mulf %51, %54 : vector<96x288xf32>
    %56 = arith.select %53, %51, %55 : vector<96x288xi1>, vector<96x288xf32>
    %c0_44 = arith.constant 0 : index
    %c0_45 = arith.constant 0 : index
    %57 = vector.load %arg2[%c0_44, %c0_45] : memref<1x288xf32, #tpu.memory_space<vmem>>, vector<1x288xf32>
    %58 = vector.broadcast %57 : vector<1x288xf32> to vector<96x288xf32>
    %59 = arith.mulf %56, %58 : vector<96x288xf32>
    %60 = arith.truncf %59 : vector<96x288xf32> to vector<96x288xbf16>
    %cst_46 = arith.constant 0.000000e+00 : f32
    %61 = vector.broadcast %cst_46 : f32 to vector<96x256xf32>
    %62 = vector.extract_strided_slice %60 {offsets = [0, 5], sizes = [96, 256], strides = [1, 1]} : vector<96x288xbf16> to vector<96x256xbf16>
    %c0_47 = arith.constant 0 : index
    %c0_48 = arith.constant 0 : index
    %c0_49 = arith.constant 0 : index
    %c0_50 = arith.constant 0 : index
    %63 = vector.load %arg5[%c0_47, %c0_48, %c0_49, %c0_50] : memref<1x9x96x96xbf16, #tpu.memory_space<vmem>>, vector<1x1x96x96xbf16>
    %64 = vector.shape_cast %63 : vector<1x1x96x96xbf16> to vector<96x96xbf16>
    %cst_51 = arith.constant dense<0.000000e+00> : vector<96x256xf32>
    %65 = tpu.matmul %64, %62, %cst_51 {dimension_numbers = #tpu.dot_dimension_numbers<[1], [0], [0], [1], [0, 0, 1, 1], [], []>} : vector<96x96xbf16>, vector<96x256xbf16>, vector<96x256xf32> -> vector<96x256xf32>
    %66 = arith.addf %61, %65 : vector<96x256xf32>
    %67 = vector.extract_strided_slice %60 {offsets = [0, 6], sizes = [96, 256], strides = [1, 1]} : vector<96x288xbf16> to vector<96x256xbf16>
    %c0_52 = arith.constant 0 : index
    %c1_53 = arith.constant 1 : index
    %c0_54 = arith.constant 0 : index
    %c0_55 = arith.constant 0 : index
    %68 = vector.load %arg5[%c0_52, %c1_53, %c0_54, %c0_55] : memref<1x9x96x96xbf16, #tpu.memory_space<vmem>>, vector<1x1x96x96xbf16>
    %69 = vector.shape_cast %68 : vector<1x1x96x96xbf16> to vector<96x96xbf16>
    %cst_56 = arith.constant dense<0.000000e+00> : vector<96x256xf32>
    %70 = tpu.matmul %69, %67, %cst_56 {dimension_numbers = #tpu.dot_dimension_numbers<[1], [0], [0], [1], [0, 0, 1, 1], [], []>} : vector<96x96xbf16>, vector<96x256xbf16>, vector<96x256xf32> -> vector<96x256xf32>
    %71 = arith.addf %66, %70 : vector<96x256xf32>
    %72 = vector.extract_strided_slice %60 {offsets = [0, 7], sizes = [96, 256], strides = [1, 1]} : vector<96x288xbf16> to vector<96x256xbf16>
    %c0_57 = arith.constant 0 : index
    %c2_58 = arith.constant 2 : index
    %c0_59 = arith.constant 0 : index
    %c0_60 = arith.constant 0 : index
    %73 = vector.load %arg5[%c0_57, %c2_58, %c0_59, %c0_60] : memref<1x9x96x96xbf16, #tpu.memory_space<vmem>>, vector<1x1x96x96xbf16>
    %74 = vector.shape_cast %73 : vector<1x1x96x96xbf16> to vector<96x96xbf16>
    %cst_61 = arith.constant dense<0.000000e+00> : vector<96x256xf32>
    %75 = tpu.matmul %74, %72, %cst_61 {dimension_numbers = #tpu.dot_dimension_numbers<[1], [0], [0], [1], [0, 0, 1, 1], [], []>} : vector<96x96xbf16>, vector<96x256xbf16>, vector<96x256xf32> -> vector<96x256xf32>
    %76 = arith.addf %71, %75 : vector<96x256xf32>
    %77 = vector.extract_strided_slice %60 {offsets = [0, 15], sizes = [96, 256], strides = [1, 1]} : vector<96x288xbf16> to vector<96x256xbf16>
    %c0_62 = arith.constant 0 : index
    %c3_63 = arith.constant 3 : index
    %c0_64 = arith.constant 0 : index
    %c0_65 = arith.constant 0 : index
    %78 = vector.load %arg5[%c0_62, %c3_63, %c0_64, %c0_65] : memref<1x9x96x96xbf16, #tpu.memory_space<vmem>>, vector<1x1x96x96xbf16>
    %79 = vector.shape_cast %78 : vector<1x1x96x96xbf16> to vector<96x96xbf16>
    %cst_66 = arith.constant dense<0.000000e+00> : vector<96x256xf32>
    %80 = tpu.matmul %79, %77, %cst_66 {dimension_numbers = #tpu.dot_dimension_numbers<[1], [0], [0], [1], [0, 0, 1, 1], [], []>} : vector<96x96xbf16>, vector<96x256xbf16>, vector<96x256xf32> -> vector<96x256xf32>
    %81 = arith.addf %76, %80 : vector<96x256xf32>
    %82 = vector.extract_strided_slice %60 {offsets = [0, 16], sizes = [96, 256], strides = [1, 1]} : vector<96x288xbf16> to vector<96x256xbf16>
    %c0_67 = arith.constant 0 : index
    %c4_68 = arith.constant 4 : index
    %c0_69 = arith.constant 0 : index
    %c0_70 = arith.constant 0 : index
    %83 = vector.load %arg5[%c0_67, %c4_68, %c0_69, %c0_70] : memref<1x9x96x96xbf16, #tpu.memory_space<vmem>>, vector<1x1x96x96xbf16>
    %84 = vector.shape_cast %83 : vector<1x1x96x96xbf16> to vector<96x96xbf16>
    %cst_71 = arith.constant dense<0.000000e+00> : vector<96x256xf32>
    %85 = tpu.matmul %84, %82, %cst_71 {dimension_numbers = #tpu.dot_dimension_numbers<[1], [0], [0], [1], [0, 0, 1, 1], [], []>} : vector<96x96xbf16>, vector<96x256xbf16>, vector<96x256xf32> -> vector<96x256xf32>
    %86 = arith.addf %81, %85 : vector<96x256xf32>
    %87 = vector.extract_strided_slice %60 {offsets = [0, 17], sizes = [96, 256], strides = [1, 1]} : vector<96x288xbf16> to vector<96x256xbf16>
    %c0_72 = arith.constant 0 : index
    %c5_73 = arith.constant 5 : index
    %c0_74 = arith.constant 0 : index
    %c0_75 = arith.constant 0 : index
    %88 = vector.load %arg5[%c0_72, %c5_73, %c0_74, %c0_75] : memref<1x9x96x96xbf16, #tpu.memory_space<vmem>>, vector<1x1x96x96xbf16>
    %89 = vector.shape_cast %88 : vector<1x1x96x96xbf16> to vector<96x96xbf16>
    %cst_76 = arith.constant dense<0.000000e+00> : vector<96x256xf32>
    %90 = tpu.matmul %89, %87, %cst_76 {dimension_numbers = #tpu.dot_dimension_numbers<[1], [0], [0], [1], [0, 0, 1, 1], [], []>} : vector<96x96xbf16>, vector<96x256xbf16>, vector<96x256xf32> -> vector<96x256xf32>
    %91 = arith.addf %86, %90 : vector<96x256xf32>
    %92 = vector.extract_strided_slice %60 {offsets = [0, 25], sizes = [96, 256], strides = [1, 1]} : vector<96x288xbf16> to vector<96x256xbf16>
    %c0_77 = arith.constant 0 : index
    %c6_78 = arith.constant 6 : index
    %c0_79 = arith.constant 0 : index
    %c0_80 = arith.constant 0 : index
    %93 = vector.load %arg5[%c0_77, %c6_78, %c0_79, %c0_80] : memref<1x9x96x96xbf16, #tpu.memory_space<vmem>>, vector<1x1x96x96xbf16>
    %94 = vector.shape_cast %93 : vector<1x1x96x96xbf16> to vector<96x96xbf16>
    %cst_81 = arith.constant dense<0.000000e+00> : vector<96x256xf32>
    %95 = tpu.matmul %94, %92, %cst_81 {dimension_numbers = #tpu.dot_dimension_numbers<[1], [0], [0], [1], [0, 0, 1, 1], [], []>} : vector<96x96xbf16>, vector<96x256xbf16>, vector<96x256xf32> -> vector<96x256xf32>
    %96 = arith.addf %91, %95 : vector<96x256xf32>
    %97 = vector.extract_strided_slice %60 {offsets = [0, 26], sizes = [96, 256], strides = [1, 1]} : vector<96x288xbf16> to vector<96x256xbf16>
    %c0_82 = arith.constant 0 : index
    %c7_83 = arith.constant 7 : index
    %c0_84 = arith.constant 0 : index
    %c0_85 = arith.constant 0 : index
    %98 = vector.load %arg5[%c0_82, %c7_83, %c0_84, %c0_85] : memref<1x9x96x96xbf16, #tpu.memory_space<vmem>>, vector<1x1x96x96xbf16>
    %99 = vector.shape_cast %98 : vector<1x1x96x96xbf16> to vector<96x96xbf16>
    %cst_86 = arith.constant dense<0.000000e+00> : vector<96x256xf32>
    %100 = tpu.matmul %99, %97, %cst_86 {dimension_numbers = #tpu.dot_dimension_numbers<[1], [0], [0], [1], [0, 0, 1, 1], [], []>} : vector<96x96xbf16>, vector<96x256xbf16>, vector<96x256xf32> -> vector<96x256xf32>
    %101 = arith.addf %96, %100 : vector<96x256xf32>
    %102 = vector.extract_strided_slice %60 {offsets = [0, 27], sizes = [96, 256], strides = [1, 1]} : vector<96x288xbf16> to vector<96x256xbf16>
    %c0_87 = arith.constant 0 : index
    %c8_88 = arith.constant 8 : index
    %c0_89 = arith.constant 0 : index
    %c0_90 = arith.constant 0 : index
    %103 = vector.load %arg5[%c0_87, %c8_88, %c0_89, %c0_90] : memref<1x9x96x96xbf16, #tpu.memory_space<vmem>>, vector<1x1x96x96xbf16>
    %104 = vector.shape_cast %103 : vector<1x1x96x96xbf16> to vector<96x96xbf16>
    %cst_91 = arith.constant dense<0.000000e+00> : vector<96x256xf32>
    %105 = tpu.matmul %104, %102, %cst_91 {dimension_numbers = #tpu.dot_dimension_numbers<[1], [0], [0], [1], [0, 0, 1, 1], [], []>} : vector<96x96xbf16>, vector<96x256xbf16>, vector<96x256xf32> -> vector<96x256xf32>
    %106 = arith.addf %101, %105 : vector<96x256xf32>
    %c0_92 = arith.constant 0 : index
    %c0_93 = arith.constant 0 : index
    %c0_94 = arith.constant 0 : index
    %107 = vector.load %arg6[%c0_92, %c0_93, %c0_94] : memref<1x96x1xf32, #tpu.memory_space<vmem>>, vector<1x96x1xf32>
    %108 = vector.shape_cast %107 : vector<1x96x1xf32> to vector<96x1xf32>
    %109 = vector.broadcast %108 : vector<96x1xf32> to vector<96x256xf32>
    %110 = arith.addf %106, %109 : vector<96x256xf32>
    %cst_95 = arith.constant 0.000000e+00 : f32
    %111 = vector.broadcast %cst_95 : f32 to vector<96x256xf32>
    %112 = arith.cmpf oge, %110, %111 : vector<96x256xf32>
    %cst_96 = arith.constant 0.00999999977 : f32
    %113 = vector.broadcast %cst_96 : f32 to vector<96x256xf32>
    %114 = arith.mulf %110, %113 : vector<96x256xf32>
    %115 = arith.select %112, %110, %114 : vector<96x256xi1>, vector<96x256xf32>
    %116 = arith.truncf %115 : vector<96x256xf32> to vector<96x256xbf16>
    %c0_97 = arith.constant 0 : index
    %c0_98 = arith.constant 0 : index
    %c0_99 = arith.constant 0 : index
    %117 = vector.load %arg7[%c0_97, %c0_98, %c0_99] : memref<1x1x96xbf16, #tpu.memory_space<vmem>>, vector<1x1x96xbf16>
    %118 = vector.shape_cast %117 : vector<1x1x96xbf16> to vector<1x96xbf16>
    %cst_100 = arith.constant dense<0.000000e+00> : vector<1x256xf32>
    %119 = tpu.matmul %118, %116, %cst_100 {dimension_numbers = #tpu.dot_dimension_numbers<[1], [0], [0], [1], [0, 0, 1, 1], [], []>} : vector<1x96xbf16>, vector<96x256xbf16>, vector<1x256xf32> -> vector<1x256xf32>
    %c0_101 = arith.constant 0 : index
    %c0_102 = arith.constant 0 : index
    %c0_103 = arith.constant 0 : index
    %120 = vector.load %arg8[%c0_101, %c0_102, %c0_103] : memref<1x1x1xf32, #tpu.memory_space<vmem>>, vector<1x1x1xf32>
    %121 = vector.shape_cast %120 : vector<1x1x1xf32> to vector<1x1xf32>
    %122 = vector.broadcast %121 : vector<1x1xf32> to vector<1x256xf32>
    %123 = arith.addf %119, %122 : vector<1x256xf32>
    %c0_104 = arith.constant 0 : index
    %c0_105 = arith.constant 0 : index
    %c0_106 = arith.constant 0 : index
    %124 = vector.load %arg9[%c0_104, %c0_105, %c0_106] : memref<1x1x256xf32, #tpu.memory_space<vmem>>, vector<1x1x256xf32>
    %125 = vector.shape_cast %124 : vector<1x1x256xf32> to vector<1x256xf32>
    %126 = vector.shape_cast %123 : vector<1x256xf32> to vector<1x1x256xf32>
    tpu.vector_store %arg9[%c0_104, %c0_105, %c0_106], %126 {strides = array<i32>} : memref<1x1x256xf32, #tpu.memory_space<vmem>>, vector<1x1x256xf32>,
    return
  }
  func.func @transform_0(%arg0: i32) -> (i32, i32, i32) {
    %c0_i32 = arith.constant 0 : i32
    %c0_i32_0 = arith.constant 0 : i32
    %c0_i32_1 = arith.constant 0 : i32
    return %arg0, %c0_i32, %c0_i32_0 : i32, i32, i32
  }
  func.func @transform_1(%arg0: i32) -> (i32, i32) {
    %c0_i32 = arith.constant 0 : i32
    %c0_i32_0 = arith.constant 0 : i32
    %c0_i32_1 = arith.constant 0 : i32
    return %c0_i32, %c0_i32_0 : i32, i32
  }
  func.func @transform_2(%arg0: i32) -> (i32, i32, i32, i32) {
    %c0_i32 = arith.constant 0 : i32
    %c0_i32_0 = arith.constant 0 : i32
    %c0_i32_1 = arith.constant 0 : i32
    %c0_i32_2 = arith.constant 0 : i32
    return %arg0, %c0_i32, %c0_i32_0, %c0_i32_1 : i32, i32, i32, i32
  }
  func.func @transform_3(%arg0: i32) -> (i32, i32, i32) {
    %c0_i32 = arith.constant 0 : i32
    %c0_i32_0 = arith.constant 0 : i32
    %c0_i32_1 = arith.constant 0 : i32
    return %arg0, %c0_i32, %c0_i32_0 : i32, i32, i32
  }
  func.func @transform_4(%arg0: i32) -> (i32, i32, i32, i32) {
    %c0_i32 = arith.constant 0 : i32
    %c0_i32_0 = arith.constant 0 : i32
    %c0_i32_1 = arith.constant 0 : i32
    %c0_i32_2 = arith.constant 0 : i32
    return %arg0, %c0_i32, %c0_i32_0, %c0_i32_1 : i32, i32, i32, i32
  }
  func.func @transform_5(%arg0: i32) -> (i32, i32, i32) {
    %c0_i32 = arith.constant 0 : i32
    %c0_i32_0 = arith.constant 0 : i32
    %c0_i32_1 = arith.constant 0 : i32
    return %arg0, %c0_i32, %c0_i32_0 : i32, i32, i32
  }
  func.func @transform_6(%arg0: i32) -> (i32, i32, i32) {
    %c0_i32 = arith.constant 0 : i32
    %c0_i32_0 = arith.constant 0 : i32
    %c0_i32_1 = arith.constant 0 : i32
    return %arg0, %c0_i32, %c0_i32_0 : i32, i32, i32
  }
  func.func @transform_7(%arg0: i32) -> (i32, i32, i32) {
    %c0_i32 = arith.constant 0 : i32
    %c0_i32_0 = arith.constant 0 : i32
    %c0_i32_1 = arith.constant 0 : i32
    return %arg0, %c0_i32, %c0_i32_0 : i32, i32, i32
  }
  func.func @transform_8(%arg0: i32) -> (i32, i32, i32) {
    %c0_i32 = arith.constant 0 : i32
    %c0_i32_0 = arith.constant 0 : i32
    %c0_i32_1 = arith.constant 0 : i32
    return %arg0, %c0_i32, %c0_i32_0 : i32, i32, i32
  }
}

</mosaic_0001>

<bundles_post_ra>
// kernel: interp_net_conv_forward.1
= control target key start
LH: loop header
LB: loop body
LE: loop exit
PB: predicated region body
PF: predicated region fallthrough
CT: control target
= control target key end

     0   :  { %s6608_s27 = smov 0   ;;  %s9187_s0 = inlined_call_operand.vmem [shape: bf16[2,3,320], index: 0, kind: input, shape index: {}]   ;;  %s9188_s1 = inlined_call_operand.vmem [shape: f32[1,288], index: 1, kind: input, shape index: {}]   ;;  %s9189_s2 = inlined_call_operand.vmem [shape: bf16[2,9,96,3], index: 2, kind: input, shape index: {}]   ;;  %s9190_s3 = inlined_call_operand.vmem [shape: f32[2,96,1], index: 3, kind: input, shape index: {}]   ;;  %s9191_s4 = inlined_call_operand.vmem [shape: bf16[2,9,96,96], index: 4, kind: input, shape index: {}]   ;;  %s9192_s5 = inlined_call_operand.vmem [shape: f32[2,96,1], index: 5, kind: input, shape index: {}]   ;;  %s9193_s6 = inlined_call_operand.vmem [shape: bf16[2,1,96], index: 6, kind: input, shape index: {}]   ;;  %s9194_s7 = inlined_call_operand.vmem [shape: f32[2,1,1], index: 7, kind: input, shape index: {}]   ;;  %s9195_s8 = inlined_call_operand.vmem [shape: f32[2,1,256], index: 8, kind: output, shape index: {}]  }
   0x1 LB: > { %s5740_s28 = sadd.s32 4294967295, %s6548_s27   ;;  %p5744_p0 = scmp.ge.s32.totalorder %s6548_s27, 1  ;;  %s6548_s27 = sphi %s6608_s27, %s18_s27  }
   0x2   : > { %p318_p1 = scmp.lt.s32.totalorder %s6548_s27, 3 }
   0x4   : > { %p319_p2 = pnand %p5744_p0, %p318_p1 }
   0x6   : > { %322 = sbr.rel (%p319_p2) target bundleno = 1552 (0x610), region = 52 }
   0xb   : > { %p377_p3 = scmp.lt.s32.totalorder %s5740_s28, 1  ;;  %v9196_v0 = vlaneseq  ;;  %v6550_v1 = vmov 1983009808   ;;  %vm495_vm0 = vcmask 23552   ;;  %v9197_v10 = vmov 0   ;;  %s6552_s15 = smov 122  }
   0xc   : > { %v472_v2 = vunpack.c.l.s4 %v6550_v1  ;;  %559 = vmatprep.mubr.bf16.mxu0 %v9197_v10  ;;  %6431 = vset.pattern.permute.xlu1 %v9197_v10  ;;  %s6553_s16 = smov 123   ;;  %s6554_s17 = smov 121   ;;  %vm514_vm1 = vcmask 1040384   ;;  %vm515_vm2 = vcmask 1041408   ;;  %v6560_v15 = vmov 65535  }
   0xd   : > { %s9338_s28 = smov (!%p377_p3, %s5740_s28), 1  ;;  %v6619_v3 = vshrl.u32 %v9196_v0, 7  ;;  %6432 = vset.pattern.permute.xlu0 %v9197_v10  ;;  %s6555_s18 = smov 113   ;;  %v516_v16 = vsel %vm514_vm1, 4294967295, %v6560_v15  ;;  %vm492_vm3 = vcmask 998400   ;;  %vm737_vm4 = vcmask 1006592  }
   0xe   : > { %v473_v4 = vunpack.c.0.s8 %v472_v2  ;;  %s6407_s29 = smul.u32 6, %s9338_s28  ;;  %s6556_s19 = smov 112   ;;  %v6705_v18 = vsel %vm515_vm2, %v516_v16, 0  ;;  %vm1279_vm5 = vcmask 924672   ;;  %vm990_vm6 = vcmask 990208  }
   0xf   : > { %9210 = vst [vmem:[#allocation2_spill] sm:$0xff] %v6619_v3  ;;  %s6408_s30 = smul.u32 432, %s9338_s28  ;;  %s6557_s20 = smov 111   ;;  %vm1568_vm7 = vcmask 916480   ;;  %vm1857_vm8 = vcmask 908288   ;;  %vm2146_vm9 = vcmask 842752  }
  0x10   : > { %v476_v5 = vsub.s32 %v473_v4, %v6619_v3  ;;  %s381_s11 = scalar_lea.vmem %s9187_s0, %s6407_s29  ;;  %s6558_s24 = smov 103   ;;  %vm2435_vm10 = vcmask 834560   ;;  %vm2724_vm11 = vcmask 826368  }
  0x11   : > { %s6632_s14 = scalar_lea.vmem %s9189_s2, %s6408_s30  ;;  %v413_v6 = vld [vmem:[%s381_s11] sm:$0x3f]  ;;  %s6689_s23 = scalar_lea.vmem %s9191_s4, %s6408_s30 }
  0x12   : > { %v6634_v7 = vrot.slane %v413_v6, %v476_v5  ;;  %v470_v8 = vcombine.high %v413_v6, %v413_v6  ;;  %v6637_v9 = vld [vmem:[%s6632_s14 + $0x40] sm:$0xff]   ;;  %s6559_s25 = smov 102   ;;  %v6435_v26 = vld [vmem:[%s6632_s14 + $0x48] sm:$0xff]   ;;  %v6436_v27 = vld [vmem:[%s6632_s14 + $0x30] sm:$0xff]   ;;  %s6561_s26 = smov 101  }
  0x13   : > { %6285 = vmatprep.mubr.msk.bf16.mxu1 %vm495_vm0, %v6637_v9  ;;  %v6437_v29 = vld [vmem:[%s6632_s14 + $0x50] sm:$0xff]   ;;  %v6438_v38 = vld [vmem:[%s6632_s14 + $0x58] sm:$0xff]   ;;  %v6440_v43 = vld [vmem:[%s6632_s14] sm:$0xff]   ;;  %s6409_s29 = smul.u32 96, %s9338_s28  ;;  %s404_s21 = scalar_lea.vmem %s9193_s6, %s9338_s28 }
  0x14   : > { %486 = vrot.lane.b32.xlu1 %v6634_v7, %s6552_s15  ;;  %v6645_v11 = vcombine.high %v6634_v7, %v6634_v7  ;;  %v6652_v12 = vrot.slane %v470_v8, %v476_v5  ;;  %v6439_v39 = vld [vmem:[%s6632_s14 + $0x38] sm:$0xff]   ;;  %v6441_v46 = vld [vmem:[%s6632_s14 + $0x8] sm:$0xff]   ;;  %v6442_v47 = vld [vmem:[%s6632_s14 + $0x10] sm:$0xff]   ;;  %s5750_s22 = sshll.u32 %s9338_s28, 1 }
  0x15   : > { %v6443_v48 = vld [vmem:[%s6632_s14 + $0x18] sm:$0xff]   ;;  %v6444_v50 = vld [vmem:[%s6632_s14 + $0x20] sm:$0xff]   ;;  %v6445_v53 = vld [vmem:[%s6632_s14 + $0x28] sm:$0xff]   ;;  %s6885_s10 = scalar_lea.vmem %s9190_s3, %s6409_s29 }
  0x16   : > { %488 = vrot.lane.b32.xlu0 %v6645_v11, %s6552_s15  ;;  %v6446_v54 = vld [vmem:[%s6632_s14 + $0x60] sm:$0xff]   ;;  %v6447_v59 = vld [vmem:[%s6632_s14 + $0x68] sm:$0xff]   ;;  %v6448_v61 = vld [vmem:[%s6632_s14 + $0x70] sm:$0xff]  }
  0x17   : > { %v6449_v1 = vld [vmem:[%s6632_s14 + $0x78] sm:$0xff]   ;;  %v6450_v2 = vld [vmem:[%s6632_s14 + $0x80] sm:$0xff]   ;;  %v6451_v6 = vld [vmem:[%s6632_s14 + $0x88] sm:$0xff]  }
  0x18   : > { %735 = vrot.lane.b32.xlu1 %v6652_v12, %s6553_s16  ;;  %v6453_v15 = vld [vmem:[%s6632_s14 + $0x98] sm:$0xff]   ;;  %v6454_v16 = vld [vmem:[%s6632_s14 + $0xa0] sm:$0xff]  }
  0x1a   : > { %490 = vrot.lane.b32.xlu0 %v6652_v12, %s6552_s15 }
  0x1c   : > { %731 = vrot.lane.b32.xlu1 %v6634_v7, %s6553_s16 }
  0x1e   : > { %733 = vrot.lane.b32.xlu0 %v6645_v11, %s6553_s16 }
  0x20   : > { %988 = vrot.lane.b32.xlu1 %v6652_v12, %s6554_s17 }
  0x22   : > { %986 = vrot.lane.b32.xlu0 %v6645_v11, %s6554_s17 }
  0x24   : > { %1277 = vrot.lane.b32.xlu1 %v6652_v12, %s6555_s18 }
  0x26   : > { %984 = vrot.lane.b32.xlu0 %v6634_v7, %s6554_s17 }
  0x28   : > { %1273 = vrot.lane.b32.xlu1 %v6634_v7, %s6555_s18 }
  0x2a   : > { %1275 = vrot.lane.b32.xlu0 %v6645_v11, %s6555_s18 }
  0x2c   : > { %1566 = vrot.lane.b32.xlu1 %v6652_v12, %s6556_s19 }
  0x2e   : > { %1564 = vrot.lane.b32.xlu0 %v6645_v11, %s6556_s19 }
  0x30   : > { %1855 = vrot.lane.b32.xlu1 %v6652_v12, %s6557_s20 }
  0x32   : > { %1562 = vrot.lane.b32.xlu0 %v6634_v7, %s6556_s19 }
  0x34   : > { %1851 = vrot.lane.b32.xlu1 %v6634_v7, %s6557_s20 }
  0x36   : > { %1853 = vrot.lane.b32.xlu0 %v6645_v11, %s6557_s20 }
  0x38   : > { %2144 = vrot.lane.b32.xlu1 %v6652_v12, %s6558_s24 }
  0x3a   : > { %2142 = vrot.lane.b32.xlu0 %v6645_v11, %s6558_s24 }
  0x3c   : > { %2433 = vrot.lane.b32.xlu1 %v6652_v12, %s6559_s25 }
  0x3e   : > { %2140 = vrot.lane.b32.xlu0 %v6634_v7, %s6558_s24 }
  0x40   : > { %2429 = vrot.lane.b32.xlu1 %v6634_v7, %s6559_s25 }
  0x42   : > { %2431 = vrot.lane.b32.xlu0 %v6645_v11, %s6559_s25 }
  0x44   : > { %2722 = vrot.lane.b32.xlu1 %v6652_v12, %s6561_s26  ;;  %v6452_v12 = vld [vmem:[%s6632_s14 + $0x90] sm:$0xff]  }
  0x46   : > { %2720 = vrot.lane.b32.xlu0 %v6645_v11, %s6561_s26 }
  0x4a   : > { %2718 = vrot.lane.b32.xlu0 %v6634_v7, %s6561_s26 }
  0x86   : > { %v487_v13 = vpop.permute.xlu1 %486 }
  0x88   : > { %v489_v14 = vpop.permute.xlu0 %488 }
  0x89   : > { %v493_v20 = vsel %vm492_vm3, %v487_v13, %v489_v14 }
  0x8a   : > { %v736_v17 = vpop.permute.xlu1 %735  ;;  %v519_v25 = vand.u32 %v6705_v18, %v493_v20 }
  0x8b   : > { %v765_v32 = vand.u32 %v736_v17, %v6705_v18 }
  0x8c   : > { %v491_v19 = vpop.permute.xlu0 %490 }
  0x8d   : > { %v525_v21 = vand.u32 %v6705_v18, %v491_v19  ;;  %v494_v22 = vsel %vm492_vm3, %v489_v14, %v491_v19  ;;  %v6456_v19 = vld [vmem:[%s6632_s14 + $0xb0] sm:$0xff]  }
  0x8e   : > { %v522_v23 = vand.u32 %v6705_v18, %v494_v22  ;;  %v732_v24 = vpop.permute.xlu1 %731  ;;  %v6458_v22 = vld [vmem:[%s6632_s14 + $0xc0] sm:$0xff]  }
  0x8f   : > { %6405 = vmatprep.subr.bf16.mxu1 %v525_v21 }
  0x90   : > { %541 = vmatprep.subr.bf16.mxu0 %v522_v23  ;;  %6406 = vmatpush3.bf16.msra.mxu1 %v525_v21  ;;  %v734_v28 = vpop.permute.xlu0 %733 }
  0x91   : > { %542 = vmatpush1.bf16.msra.mxu0 %v519_v25  ;;  %v739_v30 = vsel %vm737_vm4, %v734_v28, %v736_v17  ;;  %v738_v31 = vsel %vm737_vm4, %v732_v24, %v734_v28  ;;  %v6455_v17 = vld [vmem:[%s6632_s14 + $0xa8] sm:$0xff]  }
  0x92   : > { %6279 = vmatprep.subr.bf16.mxu0 %v525_v21  ;;  %v762_v33 = vand.u32 %v739_v30, %v6705_v18  ;;  %v989_v34 = vpop.permute.xlu1 %988  ;;  %v759_v35 = vand.u32 %v738_v31, %v6705_v18 }
  0x93   : > { %6286 = vmatmul.mubr.msk.bf16.vlgmr.msra.gmra.mxu1 %vm495_vm0, %v6435_v26  ;;  %v1018_v36 = vand.u32 %v989_v34, %v6705_v18 }
  0x94   : > { %5769 = vmatmul.mubr.msk.bf16.vlgmr.msra.gmra.mxu0 %vm495_vm0, %v6436_v27  ;;  %6289 = vmatprep.mubr.msk.bf16.mxu1 %vm495_vm0, %v6437_v29  ;;  %v987_v37 = vpop.permute.xlu0 %986 }
  0x95   : > { %6280 = vmatpush3.bf16.msra.mxu0 %v525_v21  ;;  %569 = vmatprep.mubr.bf16.mxu0 %v9197_v10  ;;  %v992_v49 = vsel %vm990_vm6, %v987_v37, %v989_v34  ;;  %v6457_v21 = vld [vmem:[%s6632_s14 + $0xb8] sm:$0xff]  }
  0x96   : > { %6293 = vmatprep.subr.bf16.mxu0 %v765_v32  ;;  %781 = vmatprep.subr.bf16.mxu1 %v762_v33  ;;  %v1278_v41 = vpop.permute.xlu1 %1277  ;;  %v1015_v51 = vand.u32 %v992_v49, %v6705_v18  ;;  %v6462_v33 = vld [vmem:[%s6632_s14 + $0xe0] sm:$0xff]   ;;  %v6468_v49 = vld [vmem:[%s6632_s14 + $0x110] sm:$0xff]  }
  0x97   : > { %782 = vmatpush1.bf16.msra.mxu1 %v759_v35  ;;  %v1307_v56 = vand.u32 %v1278_v41, %v6705_v18 }
  0x98   : > { %6307 = vmatprep.subr.bf16.mxu1 %v1018_v36  ;;  %v985_v40 = vpop.permute.xlu0 %984 }
  0x99   : > { %v991_v52 = vsel %vm990_vm6, %v985_v40, %v987_v37 }
  0x9a   : > { %v1012_v55 = vand.u32 %v991_v52, %v6705_v18  ;;  %v1274_v57 = vpop.permute.xlu1 %1273 }
  0x9b   : > { %6290 = vmatmul.mubr.msk.bf16.gmra.mxu1 %vm495_vm0, %v6438_v38 }
  0x9c   : > { %5770 = vmatmul.mubr.msk.bf16.gmra.mxu0 %vm495_vm0, %v6439_v39  ;;  %799 = vmatprep.mubr.bf16.mxu1 %v9197_v10  ;;  %v1276_v42 = vpop.permute.xlu0 %1275 }
  0x9d   : > { %579 = vmatprep.mubr.bf16.mxu0 %v9197_v10  ;;  %v1281_v44 = vsel %vm1279_vm5, %v1276_v42, %v1278_v41  ;;  %v1280_v58 = vsel %vm1279_vm5, %v1274_v57, %v1276_v42  ;;  %v6464_v41 = vld [vmem:[%s6632_s14 + $0xf0] sm:$0xff]  }
  0x9e   : > { %v1304_v45 = vand.u32 %v1281_v44, %v6705_v18  ;;  %v1567_v60 = vpop.permute.xlu1 %1566  ;;  %v1301_v62 = vand.u32 %v1280_v58, %v6705_v18  ;;  %v6465_v44 = vld [vmem:[%s6632_s14 + $0xf8] sm:$0xff]  }
  0x9f   : > { %v1596_v63 = vand.u32 %v1567_v60, %v6705_v18  ;;  %v6909_v58 = vld [vmem:[%s6632_s14 + $0x118] sm:$0xff]  }
  0xa0   : > { %v1565_v4 = vpop.permute.xlu0 %1564 }
  0xa1   : > { %v1570_v7 = vsel %vm1568_vm7, %v1565_v4, %v1567_v60  ;;  %v6912_v60 = vld [vmem:[%s6632_s14 + $0x120] sm:$0xff]  }
  0xa2   : > { %v1593_v8 = vand.u32 %v1570_v7, %v6705_v18 }
  0xa3   : > { %5787 = vmatmul.mubr.msk.bf16.vlgmr.msra.gmra.mxu1 %vm495_vm0, %v6440_v43 }
  0xa4   : > { %5771 = vmatmul.mubr.msk.bf16.gmra.mxu0 %vm495_vm0, %v6637_v9  ;;  %809 = vmatprep.mubr.bf16.mxu1 %v9197_v10  ;;  %v1563_v5 = vpop.permute.xlu0 %1562  ;;  %v1856_v9 = vpop.permute.xlu1 %1855 }
  0xa5   : > { %589 = vmatprep.mubr.bf16.mxu0 %v9197_v10  ;;  %6308 = vmatpush3.bf16.msra.mxu1 %v1018_v36  ;;  %v1569_v20 = vsel %vm1568_vm7, %v1563_v5, %v1565_v4  ;;  %v1885_v24 = vand.u32 %v1856_v9, %v6705_v18  ;;  %v6463_v36 = vld [vmem:[%s6632_s14 + $0xe8] sm:$0xff]  }
  0xa6   : > { %1323 = vmatprep.subr.bf16.mxu1 %v1304_v45  ;;  %v1590_v23 = vand.u32 %v1569_v20, %v6705_v18  ;;  %v6466_v45 = vld [vmem:[%s6632_s14 + $0x100] sm:$0xff]  }
  0xa8   : > { %v1854_v11 = vpop.permute.xlu0 %1853  ;;  %v1852_v25 = vpop.permute.xlu1 %1851 }
  0xa9   : > { %v1859_v13 = vsel %vm1857_vm8, %v1854_v11, %v1856_v9 }
  0xaa   : > { %v1882_v14 = vand.u32 %v1859_v13, %v6705_v18 }
  0xab   : > { %5788 = vmatmul.mubr.msk.bf16.gmra.mxu1 %vm495_vm0, %v6441_v46 }
  0xac   : > { %5772 = vmatmul.mubr.msk.bf16.gmra.mxu0 %vm495_vm0, %v6435_v26  ;;  %819 = vmatprep.mubr.bf16.mxu1 %v9197_v10  ;;  %v1858_v26 = vsel %vm1857_vm8, %v1852_v25, %v1854_v11  ;;  %v2145_v28 = vpop.permute.xlu1 %2144  ;;  %v2143_v34 = vpop.permute.xlu0 %2142 }
  0xad   : > { %599 = vmatprep.mubr.bf16.mxu0 %v9197_v10  ;;  %v1879_v30 = vand.u32 %v1858_v26, %v6705_v18  ;;  %v2174_v31 = vand.u32 %v2145_v28, %v6705_v18  ;;  %v2148_v37 = vsel %vm2146_vm9, %v2143_v34, %v2145_v28  ;;  %v2968_v26 = vld [vmem:[%s6885_s10 + $0x20] sm:$0xff] }
  0xb0   : > { %v2141_v35 = vpop.permute.xlu0 %2140 }
  0xb3   : > { %5789 = vmatmul.mubr.msk.bf16.gmra.mxu1 %vm495_vm0, %v6442_v47 }
  0xb4   : > { %5773 = vmatmul.mubr.msk.bf16.gmra.mxu0 %vm495_vm0, %v6437_v29  ;;  %829 = vmatprep.mubr.bf16.mxu1 %v9197_v10  ;;  %v6460_v29 = vld [vmem:[%s6632_s14 + $0xd0] sm:$0xff]   ;;  %v6855_v40 = vpop.permute.xlu0 %2431 }
  0xb5   : > { %609 = vmatprep.mubr.bf16.mxu0 %v9197_v10 }
  0xbb   : > { %5790 = vmatmul.mubr.msk.bf16.gmra.mxu1 %vm495_vm0, %v6443_v48 }
  0xbc   : > { %5774 = vmatmul.mubr.msk.bf16.gmra.mxu0 %vm495_vm0, %v6438_v38  ;;  %839 = vmatprep.mubr.bf16.mxu1 %v9197_v10  ;;  %v2171_v38 = vand.u32 %v2148_v37, %v6705_v18  ;;  %v6972_v37 = vld [vmem:[%s6632_s14 + $0x140] sm:$0xff]  }
  0xbd   : > { %6281 = vmatprep.mubr.msk.bf16.mxu0 %vm495_vm0, %v6436_v27  ;;  %v6459_v27 = vld [vmem:[%s6632_s14 + $0xc8] sm:$0xff]  }
  0xc3   : > { %5791 = vmatmul.mubr.msk.bf16.gmra.mxu1 %vm495_vm0, %v6444_v50 }
  0xc4   : > { %6282 = vmatmul.mubr.msk.bf16.vlgmr.msra.gmra.mxu0 %vm495_vm0, %v6439_v39  ;;  %849 = vmatprep.mubr.bf16.mxu1 %v9197_v10  ;;  %v2434_v39 = vpop.permute.xlu1 %2433 }
  0xc5   : > { %6294 = vmatpush3.bf16.msra.mxu0 %v765_v32  ;;  %6295 = vmatprep.mubr.msk.bf16.mxu0 %vm495_vm0, %v6440_v43  ;;  %v6461_v32 = vld [vmem:[%s6632_s14 + $0xd8] sm:$0xff]   ;;  %v2437_v42 = vsel %vm2435_vm10, %v6855_v40, %v2434_v39 }
  0xc6   : > { %1034 = vmatprep.subr.bf16.mxu0 %v1015_v51  ;;  %v2460_v43 = vand.u32 %v2437_v42, %v6705_v18  ;;  %v2964_v42 = vld [vmem:[%s6885_s10] sm:$0xff] }
  0xc8   : > { %v2430_v5 = vpop.permute.xlu1 %2429 }
  0xc9   : > { %v2436_v11 = vsel %vm2435_vm10, %v2430_v5, %v6855_v40 }
  0xcb   : > { %5792 = vmatmul.mubr.msk.bf16.gmra.mxu1 %vm495_vm0, %v6445_v53 }
  0xcc   : > { %6296 = vmatmul.mubr.msk.bf16.vlgmr.msra.gmra.mxu0 %vm495_vm0, %v6441_v46  ;;  %6309 = vmatprep.mubr.msk.bf16.mxu1 %vm495_vm0, %v6446_v54  ;;  %v6877_v46 = vld [vmem:[%s6632_s14 + $0x108] sm:$0xff]  }
  0xcd   : > { %6299 = vmatprep.mubr.msk.bf16.mxu0 %vm495_vm0, %v6442_v47  ;;  %1035 = vmatpush1.bf16.msra.mxu0 %v1012_v55  ;;  %v2974_v47 = vld [vmem:[%s6885_s10 + $0x50] sm:$0xff]  ;;  %v2147_v55 = vsel %vm2146_vm9, %v2141_v35, %v2143_v34 }
  0xce   : > { %6321 = vmatprep.subr.bf16.mxu0 %v1307_v56  ;;  %3028 = vperm.xlu1 %6431, %v2974_v47   ;;  %v2966_v34 = vld [vmem:[%s6885_s10 + $0x10] sm:$0xff] }
  0xd3   : > { %6310 = vmatmul.mubr.msk.bf16.vlgmr.msra.gmra.mxu1 %vm495_vm0, %v6447_v59 }
  0xd4   : > { %6300 = vmatmul.mubr.msk.bf16.gmra.mxu0 %vm495_vm0, %v6443_v48  ;;  %6313 = vmatprep.mubr.msk.bf16.mxu1 %vm495_vm0, %v6448_v61  ;;  %v2972_v48 = vld [vmem:[%s6885_s10 + $0x40] sm:$0xff] }
  0xd5   : > { %6303 = vmatprep.mubr.msk.bf16.mxu0 %vm495_vm0, %v6444_v50  ;;  %1324 = vmatpush1.bf16.msra.mxu1 %v1301_v62  ;;  %v2973_v50 = vld [vmem:[%s6885_s10 + $0x48] sm:$0xff]  ;;  %v2168_v62 = vand.u32 %v2147_v55, %v6705_v18 }
  0xd6   : > { %6335 = vmatprep.subr.bf16.mxu1 %v1596_v63  ;;  %3018 = vperm.xlu1 %6431, %v2972_v48  }
  0xda   : > { %3023 = vperm.xlu1 %6431, %v2973_v50   ;;  %v6991_v50 = vld [vmem:[%s6632_s14 + $0x148] sm:$0xff]  }
  0xdb   : > { %6314 = vmatmul.mubr.msk.bf16.gmra.mxu1 %vm495_vm0, %v6449_v1 }
  0xdc   : > { %6304 = vmatmul.mubr.msk.bf16.gmra.mxu0 %vm495_vm0, %v6445_v53  ;;  %6317 = vmatprep.mubr.msk.bf16.mxu1 %vm495_vm0, %v6450_v2 }
  0xdd   : > { %1052 = vmatprep.mubr.bf16.mxu0 %v9197_v10 }
  0xe3   : > { %6318 = vmatmul.mubr.msk.bf16.gmra.mxu1 %vm495_vm0, %v6451_v6 }
  0xe4   : > { %5817 = vmatmul.mubr.msk.bf16.vlgmr.msra.gmra.mxu0 %vm495_vm0, %v6446_v54  ;;  %1341 = vmatprep.mubr.bf16.mxu1 %v9197_v10 }
  0xe5   : > { %6322 = vmatpush3.bf16.msra.mxu0 %v1307_v56  ;;  %1062 = vmatprep.mubr.bf16.mxu0 %v9197_v10  ;;  %v2971_v56 = vld [vmem:[%s6885_s10 + $0x38] sm:$0xff] }
  0xe6   : > { %1612 = vmatprep.subr.bf16.mxu0 %v1593_v8  ;;  %3013 = vperm.xlu1 %6431, %v2971_v56  }
  0xeb   : > { %5847 = vmatmul.mubr.msk.bf16.vlgmr.msra.gmra.mxu1 %vm495_vm0, %v6452_v12 }
  0xec   : > { %5818 = vmatmul.mubr.msk.bf16.gmra.mxu0 %vm495_vm0, %v6447_v59  ;;  %1351 = vmatprep.mubr.bf16.mxu1 %v9197_v10 }
  0xed   : > { %1072 = vmatprep.mubr.bf16.mxu0 %v9197_v10  ;;  %6336 = vmatpush3.bf16.msra.mxu1 %v1596_v63 }
  0xee   : > { %1901 = vmatprep.subr.bf16.mxu1 %v1882_v14  ;;  %v6939_v14 = vld [vmem:[%s6632_s14 + $0x128] sm:$0xff]  }
  0xf3   : > { %5848 = vmatmul.mubr.msk.bf16.gmra.mxu1 %vm495_vm0, %v6453_v15 }
  0xf4   : > { %5819 = vmatmul.mubr.msk.bf16.gmra.mxu0 %vm495_vm0, %v6448_v61  ;;  %1361 = vmatprep.mubr.bf16.mxu1 %v9197_v10 }
  0xf5   : > { %1082 = vmatprep.mubr.bf16.mxu0 %v9197_v10 }
  0xfb   : > { %5849 = vmatmul.mubr.msk.bf16.gmra.mxu1 %vm495_vm0, %v6454_v16 }
  0xfc   : > { %5820 = vmatmul.mubr.msk.bf16.gmra.mxu0 %vm495_vm0, %v6449_v1  ;;  %1371 = vmatprep.mubr.bf16.mxu1 %v9197_v10  ;;  %v6918_v1 = vand.u32 %v2434_v39, %v6705_v18 }
  0xfd   : > { %1092 = vmatprep.mubr.bf16.mxu0 %v9197_v10 }
 0x103   : > { %5850 = vmatmul.mubr.msk.bf16.gmra.mxu1 %vm495_vm0, %v6455_v17 }
 0x104   : > { %5821 = vmatmul.mubr.msk.bf16.gmra.mxu0 %vm495_vm0, %v6450_v2  ;;  %1381 = vmatprep.mubr.bf16.mxu1 %v9197_v10  ;;  %v2969_v2 = vld [vmem:[%s6885_s10 + $0x28] sm:$0xff] }
 0x105   : > { %1102 = vmatprep.mubr.bf16.mxu0 %v9197_v10  ;;  %3003 = vperm.xlu1 %6431, %v2969_v2  }
 0x10b   : > { %5851 = vmatmul.mubr.msk.bf16.gmra.mxu1 %vm495_vm0, %v6456_v19 }
 0x10c   : > { %5822 = vmatmul.mubr.msk.bf16.gmra.mxu0 %vm495_vm0, %v6451_v6  ;;  %1391 = vmatprep.mubr.bf16.mxu1 %v9197_v10  ;;  %v2975_v6 = vld [vmem:[%s6885_s10 + $0x58] sm:$0xff] }
 0x10d   : > { %6323 = vmatprep.mubr.msk.bf16.mxu0 %vm495_vm0, %v6452_v12  ;;  %3033 = vperm.xlu0 %6432, %v2975_v6   ;;  %v2967_v12 = vld [vmem:[%s6885_s10 + $0x18] sm:$0xff] }
 0x10e   : > { %2993 = vperm.xlu1 %6431, %v2967_v12   ;;  %v7012_v12 = vld [vmem:[%s6632_s14 + $0x150] sm:$0xff]  }
 0x113   : > { %5852 = vmatmul.mubr.msk.bf16.gmra.mxu1 %vm495_vm0, %v6457_v21 }
 0x114   : > { %6324 = vmatmul.mubr.msk.bf16.vlgmr.msra.gmra.mxu0 %vm495_vm0, %v6453_v15  ;;  %6337 = vmatprep.mubr.msk.bf16.mxu1 %vm495_vm0, %v6458_v22  ;;  %v2723_v15 = vpop.permute.xlu1 %2722 }
 0x115   : > { %6327 = vmatprep.mubr.msk.bf16.mxu0 %vm495_vm0, %v6454_v16  ;;  %1613 = vmatpush1.bf16.msra.mxu0 %v1590_v23  ;;  %v2970_v16 = vld [vmem:[%s6885_s10 + $0x30] sm:$0xff]  ;;  %v6949_v23 = vand.u32 %v2723_v15, %v6705_v18 }
 0x116   : > { %6349 = vmatprep.subr.bf16.mxu0 %v1885_v24  ;;  %3008 = vperm.xlu0 %6432, %v2970_v16  }
 0x11a   : > { %2998 = vperm.xlu0 %6432, %v2968_v26  }
 0x11b   : > { %6338 = vmatmul.mubr.msk.bf16.vlgmr.msra.gmra.mxu1 %vm495_vm0, %v6459_v27 }
 0x11c   : > { %6328 = vmatmul.mubr.msk.bf16.gmra.mxu0 %vm495_vm0, %v6455_v17  ;;  %6341 = vmatprep.mubr.msk.bf16.mxu1 %vm495_vm0, %v6460_v29 }
 0x11d   : > { %6331 = vmatprep.mubr.msk.bf16.mxu0 %vm495_vm0, %v6456_v19  ;;  %1902 = vmatpush1.bf16.msra.mxu1 %v1879_v30  ;;  %v6943_v19 = vld [vmem:[%s6632_s14 + $0x130] sm:$0xff]  }
 0x11e   : > { %6363 = vmatprep.subr.bf16.mxu1 %v2174_v31  ;;  %2988 = vperm.xlu0 %6432, %v2966_v34  }
 0x122   : > { %2978 = vperm.xlu0 %6432, %v2964_v42  }
 0x123   : > { %6342 = vmatmul.mubr.msk.bf16.gmra.mxu1 %vm495_vm0, %v6461_v32 }
 0x124   : > { %6332 = vmatmul.mubr.msk.bf16.gmra.mxu0 %vm495_vm0, %v6457_v21  ;;  %6345 = vmatprep.mubr.msk.bf16.mxu1 %vm495_vm0, %v6462_v33  ;;  %v2457_v21 = vand.u32 %v2436_v11, %v6705_v18 }
 0x125   : > { %1630 = vmatprep.mubr.bf16.mxu0 %v9197_v10 }
 0x12b   : > { %6346 = vmatmul.mubr.msk.bf16.gmra.mxu1 %vm495_vm0, %v6463_v36 }
 0x12c   : > { %5877 = vmatmul.mubr.msk.bf16.vlgmr.msra.gmra.mxu0 %vm495_vm0, %v6458_v22  ;;  %1919 = vmatprep.mubr.bf16.mxu1 %v9197_v10 }
 0x12d   : > { %6350 = vmatpush3.bf16.msra.mxu0 %v1885_v24  ;;  %1640 = vmatprep.mubr.bf16.mxu0 %v9197_v10  ;;  %v2965_v24 = vld [vmem:[%s6885_s10 + $0x8] sm:$0xff] }
 0x12e   : > { %2190 = vmatprep.subr.bf16.mxu0 %v2171_v38  ;;  %2983 = vperm.xlu1 %6431, %v2965_v24  }
 0x133   : > { %5907 = vmatmul.mubr.msk.bf16.vlgmr.msra.gmra.mxu1 %vm495_vm0, %v6464_v41 }
 0x134   : > { %5878 = vmatmul.mubr.msk.bf16.gmra.mxu0 %vm495_vm0, %v6459_v27  ;;  %1929 = vmatprep.mubr.bf16.mxu1 %v9197_v10 }
 0x135   : > { %1650 = vmatprep.mubr.bf16.mxu0 %v9197_v10  ;;  %6364 = vmatpush3.bf16.msra.mxu1 %v2174_v31 }
 0x136   : > { %2479 = vmatprep.subr.bf16.mxu1 %v2460_v43 }
 0x13b   : > { %5908 = vmatmul.mubr.msk.bf16.gmra.mxu1 %vm495_vm0, %v6465_v44 }
 0x13c   : > { %5879 = vmatmul.mubr.msk.bf16.gmra.mxu0 %vm495_vm0, %v6460_v29  ;;  %1939 = vmatprep.mubr.bf16.mxu1 %v9197_v10 }
 0x13d   : > { %1660 = vmatprep.mubr.bf16.mxu0 %v9197_v10 }
 0x143   : > { %5909 = vmatmul.mubr.msk.bf16.gmra.mxu1 %vm495_vm0, %v6466_v45 }
 0x144   : > { %5880 = vmatmul.mubr.msk.bf16.gmra.mxu0 %vm495_vm0, %v6461_v32  ;;  %1949 = vmatprep.mubr.bf16.mxu1 %v9197_v10 }
 0x145   : > { %1670 = vmatprep.mubr.bf16.mxu0 %v9197_v10 }
 0x14b   : > { %5910 = vmatmul.mubr.msk.bf16.gmra.mxu1 %vm495_vm0, %v6877_v46 }
 0x14c   : > { %5881 = vmatmul.mubr.msk.bf16.gmra.mxu0 %vm495_vm0, %v6462_v33  ;;  %1959 = vmatprep.mubr.bf16.mxu1 %v9197_v10  ;;  %v6966_v33 = vld [vmem:[%s6632_s14 + $0x138] sm:$0xff]  }
 0x14d   : > { %1680 = vmatprep.mubr.bf16.mxu0 %v9197_v10 }
 0x153   : > { %v6896_v51 = vpop.f32.mrf.mxu1  ;;  %5911 = vmatmul.mubr.msk.bf16.gmra.mxu1 %vm495_vm0, %v6468_v49 }
 0x154   : > { %v561_v52 = vpop.f32.mrf.mxu0  ;;  %5882 = vmatmul.mubr.msk.bf16.gmra.mxu0 %vm495_vm0, %v6463_v36  ;;  %1969 = vmatprep.mubr.bf16.mxu1 %v9197_v10 }
 0x155   : > { %v6901_v53 = vpop.f32.mrf.mxu1  ;;  %6351 = vmatprep.mubr.msk.bf16.mxu0 %vm495_vm0, %v6464_v41 }
 0x156   : > { %v563_v54 = vpop.f32.mrf.mxu0 }
 0x157   : > { %v6906_v57 = vpop.f32.mrf.mxu1 }
 0x158   : > { %v565_v59 = vpop.f32.mrf.mxu0 }
 0x159   : > { %v6914_v61 = vpop.f32.mrf.mxu1 }
 0x15a   : > { %v567_v63 = vpop.f32.mrf.mxu0 }
 0x15b   : > { %v6921_v4 = vpop.f32.mrf.mxu1  ;;  %5912 = vmatmul.mubr.msk.bf16.gmra.mxu1 %vm495_vm0, %v6909_v58 }
 0x15c   : > { %v571_v7 = vpop.f32.mrf.mxu0  ;;  %6352 = vmatmul.mubr.msk.bf16.vlgmr.msra.gmra.mxu0 %vm495_vm0, %v6465_v44  ;;  %6365 = vmatprep.mubr.msk.bf16.mxu1 %vm495_vm0, %v6912_v60 }
 0x15d   : > { %v6929_v8 = vpop.f32.mrf.mxu1  ;;  %6355 = vmatprep.mubr.msk.bf16.mxu0 %vm495_vm0, %v6466_v45  ;;  %2191 = vmatpush1.bf16.msra.mxu0 %v2168_v62  ;;  %v6985_v45 = vpop.permute.xlu0 %2720 }
 0x15e   : > { %v573_v9 = vpop.f32.mrf.mxu0  ;;  %6377 = vmatprep.subr.bf16.mxu0 %v6918_v1 }
 0x15f   : > { %v6936_v13 = vpop.f32.mrf.mxu1 }
 0x160   : > { %v575_v17 = vpop.f32.mrf.mxu0 }
 0x161   : > { %v6945_v20 = vpop.f32.mrf.mxu1 }
 0x162   : > { %v577_v22 = vpop.f32.mrf.mxu0 }
 0x163   : > { %v801_v25 = vpop.f32.mrf.mxu1  ;;  %6366 = vmatmul.mubr.msk.bf16.vlgmr.msra.gmra.mxu1 %vm495_vm0, %v6939_v14 }
 0x164   : > { %v6955_v27 = vadd.f32 %v801_v25, %v561_v52  ;;  %v581_v28 = vpop.f32.mrf.mxu0  ;;  %6356 = vmatmul.mubr.msk.bf16.gmra.mxu0 %vm495_vm0, %v6877_v46  ;;  %6369 = vmatprep.mubr.msk.bf16.mxu1 %vm495_vm0, %v6943_v19  ;;  %v2726_v52 = vsel %vm2724_vm11, %v6985_v45, %v2723_v15 }
 0x165   : > { %v803_v29 = vpop.f32.mrf.mxu1  ;;  %6359 = vmatprep.mubr.msk.bf16.mxu0 %vm495_vm0, %v6468_v49  ;;  %2480 = vmatpush1.bf16.msra.mxu1 %v2457_v21  ;;  %v2749_v62 = vand.u32 %v2726_v52, %v6705_v18 }
 0x166   : > { %v6962_v30 = vadd.f32 %v803_v29, %v563_v54  ;;  %v583_v31 = vpop.f32.mrf.mxu0  ;;  %6391 = vmatprep.subr.bf16.mxu1 %v6949_v23 }
 0x167   : > { %v805_v32 = vpop.f32.mrf.mxu1 }
 0x168   : > { %v6969_v35 = vadd.f32 %v805_v32, %v565_v59  ;;  %v585_v36 = vpop.f32.mrf.mxu0 }
 0x169   : > { %v807_v38 = vpop.f32.mrf.mxu1 }
 0x16a   : > { %v6974_v39 = vadd.f32 %v807_v38, %v567_v63  ;;  %v587_v40 = vpop.f32.mrf.mxu0 }
 0x16b   : > { %v811_v41 = vpop.f32.mrf.mxu1  ;;  %6370 = vmatmul.mubr.msk.bf16.gmra.mxu1 %vm495_vm0, %v6966_v33 }
 0x16c   : > { %v6979_v43 = vadd.f32 %v811_v41, %v571_v7  ;;  %v591_v44 = vpop.f32.mrf.mxu0  ;;  %6360 = vmatmul.mubr.msk.bf16.gmra.mxu0 %vm495_vm0, %v6909_v58  ;;  %6373 = vmatprep.mubr.msk.bf16.mxu1 %vm495_vm0, %v6972_v37 }
 0x16d   : > { %v813_v46 = vpop.f32.mrf.mxu1  ;;  %2208 = vmatprep.mubr.bf16.mxu0 %v9197_v10 }
 0x16e   : > { %v6988_v47 = vadd.f32 %v813_v46, %v573_v9  ;;  %v593_v48 = vpop.f32.mrf.mxu0 }
 0x16f   : > { %v815_v49 = vpop.f32.mrf.mxu1 }
 0x170   : > { %v6995_v54 = vadd.f32 %v815_v49, %v575_v17  ;;  %v595_v55 = vpop.f32.mrf.mxu0  ;;  %v7047_v49 = vld [vmem:[%s6632_s14 + $0x160] sm:$0xff]  }
 0x171   : > { %v817_v56 = vpop.f32.mrf.mxu1 }
 0x172   : > { %v6997_v58 = vadd.f32 %v817_v56, %v577_v22  ;;  %v597_v59 = vpop.f32.mrf.mxu0 }
 0x173   : > { %v821_v63 = vpop.f32.mrf.mxu1  ;;  %6374 = vmatmul.mubr.msk.bf16.gmra.mxu1 %vm495_vm0, %v6991_v50 }
 0x174   : > { %v7002_v2 = vadd.f32 %v821_v63, %v581_v28  ;;  %v601_v5 = vpop.f32.mrf.mxu0  ;;  %5937 = vmatmul.mubr.msk.bf16.vlgmr.msra.gmra.mxu0 %vm495_vm0, %v6912_v60  ;;  %2497 = vmatprep.mubr.bf16.mxu1 %v9197_v10 }
 0x175   : > { %6378 = vmatpush3.bf16.msra.mxu0 %v6918_v1  ;;  %v823_v6 = vpop.f32.mrf.mxu1  ;;  %2218 = vmatprep.mubr.bf16.mxu0 %v9197_v10 }
 0x176   : > { %v7009_v7 = vadd.f32 %v823_v6, %v583_v31  ;;  %v603_v9 = vpop.f32.mrf.mxu0  ;;  %2768 = vmatprep.subr.bf16.mxu0 %v2749_v62  ;;  %v7030_v31 = vld [vmem:[%s6632_s14 + $0x158] sm:$0xff]  }
 0x177   : > { %v825_v11 = vpop.f32.mrf.mxu1 }
 0x178   : > { %v7014_v15 = vadd.f32 %v825_v11, %v585_v36  ;;  %v605_v16 = vpop.f32.mrf.mxu0 }
 0x179   : > { %v827_v17 = vpop.f32.mrf.mxu1 }
 0x17a   : > { %v7016_v60 = vadd.f32 %v827_v17, %v587_v40  ;;  %v607_v21 = vpop.f32.mrf.mxu0 }
 0x17b   : > { %v831_v22 = vpop.f32.mrf.mxu1  ;;  %5967 = vmatmul.mubr.msk.bf16.vlgmr.msra.gmra.mxu1 %vm495_vm0, %v7012_v12 }
 0x17c   : > { %v7020_v1 = vadd.f32 %v831_v22, %v591_v44  ;;  %v611_v24 = vpop.f32.mrf.mxu0  ;;  %5938 = vmatmul.mubr.msk.bf16.gmra.mxu0 %vm495_vm0, %v6939_v14  ;;  %2507 = vmatprep.mubr.bf16.mxu1 %v9197_v10  ;;  %v7064_v22 = vld [vmem:[%s6632_s14 + $0x168] sm:$0xff]  }
 0x17d   : > { %v833_v25 = vpop.f32.mrf.mxu1  ;;  %2228 = vmatprep.mubr.bf16.mxu0 %v9197_v10  ;;  %6392 = vmatpush3.bf16.msra.mxu1 %v6949_v23 }
 0x17e   : > { %v7027_v26 = vadd.f32 %v833_v25, %v593_v48  ;;  %v613_v28 = vpop.f32.mrf.mxu0 }
 0x17f   : > { %v835_v29 = vpop.f32.mrf.mxu1 }
 0x180   : > { %v7032_v32 = vadd.f32 %v835_v29, %v595_v55  ;;  %v615_v34 = vpop.f32.mrf.mxu0 }
 0x181   : > { %v837_v36 = vpop.f32.mrf.mxu1 }
 0x182   : > { %v7034_v38 = vadd.f32 %v837_v36, %v597_v59  ;;  %v617_v14 = vpop.f32.mrf.mxu0 }
 0x183   : > { %v841_v40 = vpop.f32.mrf.mxu1  ;;  %5968 = vmatmul.mubr.msk.bf16.gmra.mxu1 %vm495_vm0, %v7030_v31 }
 0x184   : > { %v7038_v41 = vadd.f32 %v841_v40, %v601_v5  ;;  %v6283_v23 = vpop.f32.mrf.mxu0  ;;  %5939 = vmatmul.mubr.msk.bf16.gmra.mxu0 %vm495_vm0, %v6943_v19  ;;  %2517 = vmatprep.mubr.bf16.mxu1 %v9197_v10 }
 0x185   : > { %v843_v42 = vpop.f32.mrf.mxu1  ;;  %2238 = vmatprep.mubr.bf16.mxu0 %v9197_v10 }
 0x186   : > { %v7044_v44 = vadd.f32 %v843_v42, %v603_v9  ;;  %v654_v46 = vpop.f32.mrf.mxu0 }
 0x187   : > { %v845_v48 = vpop.f32.mrf.mxu1 }
 0x188   : > { %v7049_v52 = vadd.f32 %v845_v48, %v605_v16  ;;  %v6284_v55 = vpop.f32.mrf.mxu0 }
 0x189   : > { %v847_v56 = vpop.f32.mrf.mxu1 }
 0x18a   : > { %v7051_v59 = vadd.f32 %v847_v56, %v607_v21  ;;  %v657_v62 = vpop.f32.mrf.mxu0 }
 0x18b   : > { %v851_v19 = vpop.f32.mrf.mxu1  ;;  %5969 = vmatmul.mubr.msk.bf16.gmra.mxu1 %vm495_vm0, %v7047_v49 }
 0x18c   : > { %v7055_v63 = vadd.f32 %v851_v19, %v611_v24  ;;  %v6297_v5 = vpop.f32.mrf.mxu0  ;;  %5940 = vmatmul.mubr.msk.bf16.gmra.mxu0 %vm495_vm0, %v6966_v33  ;;  %2527 = vmatprep.mubr.bf16.mxu1 %v9197_v10  ;;  %v7083_v19 = vld [vmem:[%s6632_s14 + $0x170] sm:$0xff]  }
 0x18d   : > { %v903_v6 = vadd.f32 %v6297_v5, %v6283_v23  ;;  %v853_v9 = vpop.f32.mrf.mxu1  ;;  %2248 = vmatprep.mubr.bf16.mxu0 %v9197_v10 }
 0x18e   : > { %v7061_v11 = vadd.f32 %v853_v9, %v613_v28  ;;  %v894_v16 = vpop.f32.mrf.mxu0 }
 0x18f   : > { %v895_v17 = vadd.f32 %v894_v16, %v654_v46  ;;  %v855_v21 = vpop.f32.mrf.mxu1 }
 0x190   : > { %v7066_v25 = vadd.f32 %v855_v21, %v615_v34  ;;  %v6298_v24 = vpop.f32.mrf.mxu0 }
 0x191   : > { %v906_v29 = vadd.f32 %v6298_v24, %v6284_v55  ;;  %v857_v36 = vpop.f32.mrf.mxu1 }
 0x192   : > { %v7068_v40 = vadd.f32 %v857_v36, %v617_v14  ;;  %v897_v33 = vpop.f32.mrf.mxu0 }
 0x193   : > { %v898_v23 = vadd.f32 %v897_v33, %v657_v62  ;;  %v6311_v42 = vpop.f32.mrf.mxu1  ;;  %5970 = vmatmul.mubr.msk.bf16.gmra.mxu1 %vm495_vm0, %v7064_v22 }
 0x194   : > { %v7072_v28 = vadd.f32 %v6311_v42, %v903_v6  ;;  %v6301_v46 = vpop.f32.mrf.mxu0  ;;  %5941 = vmatmul.mubr.msk.bf16.gmra.mxu0 %vm495_vm0, %v6972_v37  ;;  %2537 = vmatprep.mubr.bf16.mxu1 %v9197_v10 }
 0x195   : > { %v919_v34 = vadd.f32 %v6301_v46, %v6896_v51  ;;  %v1147_v48 = vpop.f32.mrf.mxu1  ;;  %2258 = vmatprep.mubr.bf16.mxu0 %v9197_v10 }
 0x196   : > { %v7079_v14 = vadd.f32 %v1147_v48, %v895_v17  ;;  %v910_v55 = vpop.f32.mrf.mxu0 }
 0x197   : > { %v911_v56 = vadd.f32 %v910_v55, %v6901_v53  ;;  %v6312_v62 = vpop.f32.mrf.mxu1  ;;  %v2719_v53 = vpop.permute.xlu0 %2718  ;;  %v7110_v55 = vld [vmem:[%s6632_s14 + $0x180] sm:$0xff]  }
 0x198   : > { %v7085_v5 = vadd.f32 %v6312_v62, %v906_v29  ;;  %v6302_v6 = vpop.f32.mrf.mxu0 }
 0x199   : > { %v922_v37 = vadd.f32 %v6302_v6, %v6906_v57  ;;  %v1150_v9 = vpop.f32.mrf.mxu1 }
 0x19a   : > { %v7088_v16 = vadd.f32 %v1150_v9, %v898_v23  ;;  %v913_v51 = vpop.f32.mrf.mxu0  ;;  %v2725_v23 = vsel %vm2724_vm11, %v2719_v53, %v6985_v45  ;;  %v7133_v53 = vld [vmem:[%s6632_s14 + $0x188] sm:$0xff]  }
 0x19b   : > { %v914_v21 = vadd.f32 %v913_v51, %v6914_v61  ;;  %v6315_v17 = vpop.f32.mrf.mxu1  ;;  %5971 = vmatmul.mubr.msk.bf16.gmra.mxu1 %vm495_vm0, %v7083_v19 }
 0x19c   : > { %v7093_v24 = vadd.f32 %v6315_v17, %v919_v34  ;;  %v6305_v29 = vpop.f32.mrf.mxu0  ;;  %5942 = vmatmul.mubr.msk.bf16.gmra.mxu0 %vm495_vm0, %v6991_v50  ;;  %2547 = vmatprep.mubr.bf16.mxu1 %v9197_v10  ;;  %v6481_v34 = vld [vmem:[%s6632_s14 + $0x178] sm:$0xff]  }
 0x19d   : > { %v935_v57 = vadd.f32 %v6305_v29, %v6921_v4  ;;  %v1163_v36 = vpop.f32.mrf.mxu1  ;;  %6379 = vmatprep.mubr.msk.bf16.mxu0 %vm495_vm0, %v7012_v12  ;;  %v2746_v12 = vand.u32 %v2725_v23, %v6705_v18 }
 0x19e   : > { %v7101_v61 = vadd.f32 %v1163_v36, %v911_v56  ;;  %v926_v33 = vpop.f32.mrf.mxu0 }
 0x19f   : > { %v927_v42 = vadd.f32 %v926_v33, %v6929_v8  ;;  %v6316_v46 = vpop.f32.mrf.mxu1 }
 0x1a0   : > { %v7107_v48 = vadd.f32 %v6316_v46, %v922_v37  ;;  %v6306_v50 = vpop.f32.mrf.mxu0 }
 0x1a1   : > { %v938_v4 = vadd.f32 %v6306_v50, %v6936_v13  ;;  %v1166_v62 = vpop.f32.mrf.mxu1 }
 0x1a2   : > { %v7114_v56 = vadd.f32 %v1166_v62, %v914_v21  ;;  %v929_v6 = vpop.f32.mrf.mxu0 }
 0x1a3   : > { %v7117_v45 = vadd.f32 %v929_v6, %v6945_v20  ;;  %v6319_v8 = vpop.f32.mrf.mxu1  ;;  %5972 = vmatmul.mubr.msk.bf16.gmra.mxu1 %vm495_vm0, %v6481_v34 }
 0x1a4   : > { %v7120_v37 = vadd.f32 %v6319_v8, %v935_v57  ;;  %v1054_v9 = vpop.f32.mrf.mxu0  ;;  %6380 = vmatmul.mubr.msk.bf16.vlgmr.msra.gmra.mxu0 %vm495_vm0, %v7030_v31  ;;  %6393 = vmatprep.mubr.msk.bf16.mxu1 %vm495_vm0, %v7110_v55  ;;  %v7138_v57 = vld [vmem:[%s6632_s14 + $0x190] sm:$0xff]   ;;  %v7166_v8 = vld [vmem:[%s6632_s14 + $0x1a0] sm:$0xff]  }
 0x1a5   : > { %v1194_v18 = vadd.f32 %v1054_v9, %v6955_v27  ;;  %v1179_v13 = vpop.f32.mrf.mxu1  ;;  %6383 = vmatprep.mubr.msk.bf16.mxu0 %vm495_vm0, %v7047_v49  ;;  %2769 = vmatpush1.bf16.msra.mxu0 %v2746_v12  ;;  %v7161_v12 = vld [vmem:[%s6632_s14 + $0x198] sm:$0xff]  }
 0x1a6   : > { %v7129_v20 = vadd.f32 %v1179_v13, %v927_v42  ;;  %v1056_v51 = vpop.f32.mrf.mxu0 }
 0x1a7   : > { %v1195_v21 = vadd.f32 %v1056_v51, %v6962_v30  ;;  %v6320_v17 = vpop.f32.mrf.mxu1 }
 0x1a8   : > { %v7135_v29 = vadd.f32 %v6320_v17, %v938_v4  ;;  %v1058_v31 = vpop.f32.mrf.mxu0 }
 0x1a9   : > { %v1197_v27 = vadd.f32 %v1058_v31, %v6969_v35  ;;  %v7141_v36 = vpop.f32.mrf.mxu1 }
 0x1aa   : > { %v1060_v49 = vpop.f32.mrf.mxu0 }
 0x1ab   : > { %v7144_v33 = vadd.f32 %v1060_v49, %v6974_v39  ;;  %v1343_v23 = vpop.f32.mrf.mxu1  ;;  %6394 = vmatmul.mubr.msk.bf16.vlgmr.msra.gmra.mxu1 %vm495_vm0, %v7133_v53  ;;  %v7187_v49 = vld [vmem:[%s6632_s14 + $0x1a8] sm:$0xff]  }
 0x1ac   : > { %v7148_v30 = vadd.f32 %v1343_v23, %v1194_v18  ;;  %v1064_v42 = vpop.f32.mrf.mxu0  ;;  %6384 = vmatmul.mubr.msk.bf16.gmra.mxu0 %vm495_vm0, %v7064_v22  ;;  %6397 = vmatprep.mubr.msk.bf16.mxu1 %vm495_vm0, %v7138_v57 }
 0x1ad   : > { %v1200_v35 = vadd.f32 %v1064_v42, %v6979_v43  ;;  %v1345_v46 = vpop.f32.mrf.mxu1  ;;  %6387 = vmatprep.mubr.msk.bf16.mxu0 %vm495_vm0, %v7083_v19 }
 0x1ae   : > { %v7157_v39 = vadd.f32 %v1345_v46, %v1195_v21  ;;  %v1066_v50 = vpop.f32.mrf.mxu0 }
 0x1af   : > { %v1201_v4 = vadd.f32 %v1066_v50, %v6988_v47  ;;  %v1347_v62 = vpop.f32.mrf.mxu1 }
 0x1b0   : > { %v7163_v6 = vadd.f32 %v1347_v62, %v1197_v27  ;;  %v1068_v22 = vpop.f32.mrf.mxu0 }
 0x1b1   : > { %v1203_v9 = vadd.f32 %v1068_v22, %v6995_v54  ;;  %v7169_v43 = vpop.f32.mrf.mxu1 }
 0x1b2   : > { %v1070_v18 = vpop.f32.mrf.mxu0 }
 0x1b3   : > { %v7172_v19 = vadd.f32 %v1070_v18, %v6997_v58  ;;  %v1353_v13 = vpop.f32.mrf.mxu1  ;;  %6398 = vmatmul.mubr.msk.bf16.gmra.mxu1 %vm495_vm0, %v7161_v12 }
 0x1b4   : > { %v7176_v47 = vadd.f32 %v1353_v13, %v1200_v35  ;;  %v1074_v51 = vpop.f32.mrf.mxu0  ;;  %6388 = vmatmul.mubr.msk.bf16.gmra.mxu0 %vm495_vm0, %v6481_v34  ;;  %6401 = vmatprep.mubr.msk.bf16.mxu1 %vm495_vm0, %v7166_v8 }
 0x1b5   : > { %v1206_v54 = vadd.f32 %v1074_v51, %v7002_v2  ;;  %v1355_v21 = vpop.f32.mrf.mxu1  ;;  %2786 = vmatprep.mubr.bf16.mxu0 %v9197_v10 }
 0x1b6   : > { %v7183_v17 = vadd.f32 %v1355_v21, %v1201_v4  ;;  %v1076_v58 = vpop.f32.mrf.mxu0 }
 0x1b7   : > { %v1207_v31 = vadd.f32 %v1076_v58, %v7009_v7  ;;  %v1357_v27 = vpop.f32.mrf.mxu1 }
 0x1b8   : > { %v7189_v23 = vadd.f32 %v1357_v27, %v1203_v9  ;;  %v1078_v42 = vpop.f32.mrf.mxu0 }
 0x1b9   : > { %v1209_v34 = vadd.f32 %v1078_v42, %v7014_v15  ;;  %v7192_v35 = vpop.f32.mrf.mxu1 }
 0x1ba   : > { %v1080_v46 = vpop.f32.mrf.mxu0 }
 0x1bb   : > { %v7195_v2 = vadd.f32 %v1080_v46, %v7016_v60  ;;  %v1363_v50 = vpop.f32.mrf.mxu1  ;;  %6402 = vmatmul.mubr.msk.bf16.gmra.mxu1 %vm495_vm0, %v7187_v49 }
 0x1bc   : > { %v7199_v4 = vadd.f32 %v1363_v50, %v1206_v54  ;;  %v1084_v7 = vpop.f32.mrf.mxu0  ;;  %5997 = vmatmul.mubr.msk.bf16.vlgmr.msra.gmra.mxu0 %vm495_vm0, %v7110_v55  ;;  %3435 = vmatprep.mubr.bf16.mxu1 %v9197_v10 }
 0x1bd   : > { %v1212_v15 = vadd.f32 %v1084_v7, %v7020_v1  ;;  %v1365_v62 = vpop.f32.mrf.mxu1  ;;  %2796 = vmatprep.mubr.bf16.mxu0 %v9197_v10 }
 0x1be   : > { %v7206_v22 = vadd.f32 %v1365_v62, %v1207_v31  ;;  %v1086_v60 = vpop.f32.mrf.mxu0 }
 0x1bf   : > { %v1213_v9 = vadd.f32 %v1086_v60, %v7027_v26  ;;  %v1367_v18 = vpop.f32.mrf.mxu1 }
 0x1c0   : > { %v7209_v13 = vadd.f32 %v1367_v18, %v1209_v34  ;;  %v1088_v51 = vpop.f32.mrf.mxu0 }
 0x1c1   : > { %v1215_v54 = vadd.f32 %v1088_v51, %v7032_v32  ;;  %v7212_v21 = vpop.f32.mrf.mxu1 }
 0x1c2   : > { %v1090_v55 = vpop.f32.mrf.mxu0 }
 0x1c3   : > { %v7215_v58 = vadd.f32 %v1090_v55, %v7034_v38  ;;  %v1373_v1 = vpop.f32.mrf.mxu1 }
 0x1c4   : > { %v7217_v27 = vadd.f32 %v1373_v1, %v1212_v15  ;;  %v1094_v31 = vpop.f32.mrf.mxu0  ;;  %5998 = vmatmul.mubr.msk.bf16.gmra.mxu0 %vm495_vm0, %v7133_v53 }
 0x1c5   : > { %v1218_v26 = vadd.f32 %v1094_v31, %v7038_v41  ;;  %v1375_v42 = vpop.f32.mrf.mxu1  ;;  %2806 = vmatprep.mubr.bf16.mxu0 %v9197_v10 }
 0x1c6   : > { %v7223_v34 = vadd.f32 %v1375_v42, %v1213_v9  ;;  %v1096_v32 = vpop.f32.mrf.mxu0 }
 0x1c7   : > { %v1219_v46 = vadd.f32 %v1096_v32, %v7044_v44  ;;  %v1377_v50 = vpop.f32.mrf.mxu1 }
 0x1c8   : > { %v7226_v38 = vadd.f32 %v1377_v50, %v1215_v54  ;;  %v1098_v7 = vpop.f32.mrf.mxu0 }
 0x1c9   : > { %v1221_v15 = vadd.f32 %v1098_v7, %v7049_v52  ;;  %v7229_v62 = vpop.f32.mrf.mxu1 }
 0x1ca   : > { %v1100_v60 = vpop.f32.mrf.mxu0 }
 0x1cb   : > { %v7232_v53 = vadd.f32 %v1100_v60, %v7051_v59  ;;  %v1383_v41 = vpop.f32.mrf.mxu1 }
 0x1cc   : > { %v7234_v18 = vadd.f32 %v1383_v41, %v1218_v26  ;;  %v1104_v9 = vpop.f32.mrf.mxu0  ;;  %5999 = vmatmul.mubr.msk.bf16.gmra.mxu0 %vm495_vm0, %v7138_v57 }
 0x1cd   : > { %v1224_v44 = vadd.f32 %v1104_v9, %v7055_v63  ;;  %v1385_v51 = vpop.f32.mrf.mxu1  ;;  %2816 = vmatprep.mubr.bf16.mxu0 %v9197_v10 }
 0x1ce   : > { %v7240_v54 = vadd.f32 %v1385_v51, %v1219_v46  ;;  %v1106_v52 = vpop.f32.mrf.mxu0 }
 0x1cf   : > { %v1225_v55 = vadd.f32 %v1106_v52, %v7061_v11  ;;  %v1387_v1 = vpop.f32.mrf.mxu1 }
 0x1d0   : > { %v7243_v59 = vadd.f32 %v1387_v1, %v1221_v15  ;;  %v1108_v31 = vpop.f32.mrf.mxu0 }
 0x1d1   : > { %v1227_v26 = vadd.f32 %v1108_v31, %v7066_v25  ;;  %v7246_v42 = vpop.f32.mrf.mxu1 }
 0x1d2   : > { %v7248_v32 = vpop.f32.mrf.mxu0 }
 0x1d3   : > { %v1393_v57 = vpop.f32.mrf.mxu1 }
 0x1d4   : > { %v7250_v63 = vadd.f32 %v1393_v57, %v1224_v44  ;;  %v6325_v50 = vpop.f32.mrf.mxu0  ;;  %6000 = vmatmul.mubr.msk.bf16.gmra.mxu0 %vm495_vm0, %v7161_v12 }
 0x1d5   : > { %v1491_v46 = vadd.f32 %v6325_v50, %v7072_v28  ;;  %v1395_v11 = vpop.f32.mrf.mxu1  ;;  %2826 = vmatprep.mubr.bf16.mxu0 %v9197_v10 }
 0x1d6   : > { %v7256_v7 = vadd.f32 %v1395_v11, %v1225_v55  ;;  %v1436_v15 = vpop.f32.mrf.mxu0 }
 0x1d7   : > { %v1485_v25 = vadd.f32 %v1436_v15, %v7079_v14  ;;  %v1397_v60 = vpop.f32.mrf.mxu1 }
 0x1d8   : > { %v7259_v41 = vadd.f32 %v1397_v60, %v1227_v26  ;;  %v6326_v9 = vpop.f32.mrf.mxu0 }
 0x1d9   : > { %v1494_v44 = vadd.f32 %v6326_v9, %v7085_v5  ;;  %v7262_v51 = vpop.f32.mrf.mxu1 }
 0x1da   : > { %v7264_v52 = vpop.f32.mrf.mxu0 }
 0x1db   : > { %v6339_v12 = vpop.f32.mrf.mxu1 }
 0x1dc   : > { %v7266_v28 = vadd.f32 %v6339_v12, %v1491_v46  ;;  %v6329_v1 = vpop.f32.mrf.mxu0  ;;  %6001 = vmatmul.mubr.msk.bf16.gmra.mxu0 %vm495_vm0, %v7166_v8 }
 0x1dd   : > { %v1503_v55 = vadd.f32 %v6329_v1, %v7093_v24  ;;  %v1725_v14 = vpop.f32.mrf.mxu1  ;;  %2836 = vmatprep.mubr.bf16.mxu0 %v9197_v10 }
 0x1de   : > { %v7272_v31 = vadd.f32 %v1725_v14, %v1485_v25  ;;  %v1452_v26 = vpop.f32.mrf.mxu0 }
 0x1df   : > { %v1497_v5 = vadd.f32 %v1452_v26, %v7101_v61  ;;  %v6340_v57 = vpop.f32.mrf.mxu1 }
 0x1e0   : > { %v7275_v50 = vadd.f32 %v6340_v57, %v1494_v44  ;;  %v6330_v11 = vpop.f32.mrf.mxu0 }
 0x1e1   : > { %v1506_v46 = vadd.f32 %v6330_v11, %v7107_v48  ;;  %v7278_v15 = vpop.f32.mrf.mxu1 }
 0x1e2   : > { %v7280_v60 = vpop.f32.mrf.mxu0 }
 0x1e3   : > { %v6343_v8 = vpop.f32.mrf.mxu1 }
 0x1e4   : > { %v7282_v24 = vadd.f32 %v6343_v8, %v1503_v55  ;;  %v6333_v9 = vpop.f32.mrf.mxu0  ;;  %6002 = vmatmul.mubr.msk.bf16.gmra.mxu0 %vm495_vm0, %v7187_v49 }
 0x1e5   : > { %v1515_v25 = vadd.f32 %v6333_v9, %v7120_v37  ;;  %v1741_v61 = vpop.f32.mrf.mxu1  ;;  %3636 = vmatprep.mubr.bf16.mxu0 %v9197_v10 }
 0x1e6   : > { %v7288_v44 = vadd.f32 %v1741_v61, %v1497_v5  ;;  %v1468_v12 = vpop.f32.mrf.mxu0 }
 0x1e7   : > { %v1509_v48 = vadd.f32 %v1468_v12, %v7129_v20  ;;  %v6344_v1 = vpop.f32.mrf.mxu1 }
 0x1e8   : > { %v7291_v14 = vadd.f32 %v6344_v1, %v1506_v46  ;;  %v6334_v26 = vpop.f32.mrf.mxu0 }
 0x1e9   : > { %v1518_v55 = vadd.f32 %v6334_v26, %v7135_v29  ;;  %v7294_v57 = vpop.f32.mrf.mxu1 }
 0x1ea   : > { %v7296_v11 = vpop.f32.mrf.mxu0 }
 0x1eb   : > { %v6347_v49 = vpop.f32.mrf.mxu1 }
 0x1ec   : > { %v7298_v37 = vadd.f32 %v6347_v49, %v1515_v25  ;;  %v1632_v8 = vpop.f32.mrf.mxu0 }
 0x1ed   : > { %v1772_v5 = vadd.f32 %v1632_v8, %v7148_v30  ;;  %v1757_v9 = vpop.f32.mrf.mxu1 }
 0x1ee   : > { %v7301_v61 = vadd.f32 %v1757_v9, %v1509_v48  ;;  %v1634_v20 = vpop.f32.mrf.mxu0 }
 0x1ef   : > { %v1773_v46 = vadd.f32 %v1634_v20, %v7157_v39  ;;  %v6348_v12 = vpop.f32.mrf.mxu1 }
 0x1f0   : > { %v7304_v1 = vadd.f32 %v6348_v12, %v1518_v55  ;;  %v1636_v29 = vpop.f32.mrf.mxu0 }
 0x1f1   : > { %v1775_v26 = vadd.f32 %v1636_v29, %v7163_v6  ;;  %v7307_v0 = vpop.f32.mrf.mxu1 }
 0x1f2   : > { %9211 = vst [vmem:[#allocation3_spill] sm:$0xff] %v7307_v0  ;;  %v7309_v10 = vpop.f32.mrf.mxu0 }
 0x1f3   : > { %9212 = vst [vmem:[#allocation4_spill] sm:$0xff] %v7309_v10  ;;  %v1921_v25 = vpop.f32.mrf.mxu1 }
 0x1f4   : > { %v7311_v49 = vadd.f32 %v1921_v25, %v1772_v5  ;;  %v1642_v30 = vpop.f32.mrf.mxu0 }
 0x1f5   : > { %v1778_v48 = vadd.f32 %v1642_v30, %v7176_v47  ;;  %v1923_v8 = vpop.f32.mrf.mxu1 }
 0x1f6   : > { %v7314_v9 = vadd.f32 %v1923_v8, %v1773_v46  ;;  %v1644_v39 = vpop.f32.mrf.mxu0 }
 0x1f7   : > { %v1779_v55 = vadd.f32 %v1644_v39, %v7183_v17  ;;  %v1925_v20 = vpop.f32.mrf.mxu1 }
 0x1f8   : > { %v7317_v12 = vadd.f32 %v1925_v20, %v1775_v26  ;;  %v1646_v6 = vpop.f32.mrf.mxu0 }
 0x1f9   : > { %v1781_v29 = vadd.f32 %v1646_v6, %v7189_v23  ;;  %v7320_v0 = vpop.f32.mrf.mxu1 }
 0x1fa   : > { %9213 = vst [vmem:[#allocation5_spill] sm:$0xff] %v7320_v0  ;;  %v7322_v10 = vpop.f32.mrf.mxu0 }
 0x1fb   : > { %9214 = vst [vmem:[#allocation6_spill] sm:$0xff] %v7322_v10  ;;  %v1931_v5 = vpop.f32.mrf.mxu1 }
 0x1fc   : > { %v7324_v25 = vadd.f32 %v1931_v5, %v1778_v48  ;;  %v1652_v47 = vpop.f32.mrf.mxu0 }
 0x1fd   : > { %v1784_v46 = vadd.f32 %v1652_v47, %v7199_v4  ;;  %v1933_v30 = vpop.f32.mrf.mxu1 }
 0x1fe   : > { %v7327_v8 = vadd.f32 %v1933_v30, %v1779_v55  ;;  %v1654_v17 = vpop.f32.mrf.mxu0 }
 0x1ff   : > { %v1785_v26 = vadd.f32 %v1654_v17, %v7206_v22  ;;  %v1935_v39 = vpop.f32.mrf.mxu1 }
 0x200   : > { %v7330_v20 = vadd.f32 %v1935_v39, %v1781_v29  ;;  %v1656_v23 = vpop.f32.mrf.mxu0 }
 0x201   : > { %v1787_v6 = vadd.f32 %v1656_v23, %v7209_v13  ;;  %v7333_v0 = vpop.f32.mrf.mxu1 }
 0x202   : > { %9215 = vst [vmem:[#allocation7_spill] sm:$0xff] %v7333_v0  ;;  %v7335_v10 = vpop.f32.mrf.mxu0 }
 0x203   : > { %9216 = vst [vmem:[#allocation8_spill] sm:$0xff] %v7335_v10  ;;  %v1941_v48 = vpop.f32.mrf.mxu1 }
 0x204   : > { %v7337_v5 = vadd.f32 %v1941_v48, %v1784_v46  ;;  %v1662_v4 = vpop.f32.mrf.mxu0 }
 0x205   : > { %v1790_v55 = vadd.f32 %v1662_v4, %v7217_v27  ;;  %v1943_v47 = vpop.f32.mrf.mxu1 }
 0x206   : > { %v7340_v30 = vadd.f32 %v1943_v47, %v1785_v26  ;;  %v1664_v22 = vpop.f32.mrf.mxu0 }
 0x207   : > { %v1791_v29 = vadd.f32 %v1664_v22, %v7223_v34  ;;  %v1945_v17 = vpop.f32.mrf.mxu1 }
 0x208   : > { %v7343_v39 = vadd.f32 %v1945_v17, %v1787_v6  ;;  %v1666_v13 = vpop.f32.mrf.mxu0 }
 0x209   : > { %v1793_v23 = vadd.f32 %v1666_v13, %v7226_v38  ;;  %v7346_v0 = vpop.f32.mrf.mxu1 }
 0x20a   : > { %9217 = vst [vmem:[#allocation9_spill] sm:$0xff] %v7346_v0  ;;  %v7348_v10 = vpop.f32.mrf.mxu0 }
 0x20b   : > { %9218 = vst [vmem:[#allocation10_spill] sm:$0xff] %v7348_v10  ;;  %v1951_v46 = vpop.f32.mrf.mxu1 }
 0x20c   : > { %v7350_v48 = vadd.f32 %v1951_v46, %v1790_v55  ;;  %v1672_v27 = vpop.f32.mrf.mxu0 }
 0x20d   : > { %v1796_v26 = vadd.f32 %v1672_v27, %v7234_v18  ;;  %v1953_v4 = vpop.f32.mrf.mxu1 }
 0x20e   : > { %v7353_v47 = vadd.f32 %v1953_v4, %v1791_v29  ;;  %v1674_v34 = vpop.f32.mrf.mxu0 }
 0x20f   : > { %v1797_v6 = vadd.f32 %v1674_v34, %v7240_v54  ;;  %v1955_v22 = vpop.f32.mrf.mxu1 }
 0x210   : > { %v7356_v17 = vadd.f32 %v1955_v22, %v1793_v23  ;;  %v1676_v38 = vpop.f32.mrf.mxu0 }
 0x211   : > { %v1799_v13 = vadd.f32 %v1676_v38, %v7243_v59  ;;  %v7359_v0 = vpop.f32.mrf.mxu1 }
 0x212   : > { %9219 = vst [vmem:[#allocation11_spill] sm:$0xff] %v7359_v0  ;;  %v7361_v10 = vpop.f32.mrf.mxu0 }
 0x213   : > { %9220 = vst [vmem:[#allocation12_spill] sm:$0xff] %v7361_v10  ;;  %v1961_v55 = vpop.f32.mrf.mxu1 }
 0x214   : > { %v7363_v46 = vadd.f32 %v1961_v55, %v1796_v26  ;;  %v1682_v18 = vpop.f32.mrf.mxu0 }
 0x215   : > { %v1802_v29 = vadd.f32 %v1682_v18, %v7250_v63  ;;  %v1963_v27 = vpop.f32.mrf.mxu1 }
 0x216   : > { %v7366_v4 = vadd.f32 %v1963_v27, %v1797_v6  ;;  %v1684_v54 = vpop.f32.mrf.mxu0 }
 0x217   : > { %v1803_v23 = vadd.f32 %v1684_v54, %v7256_v7  ;;  %v1965_v34 = vpop.f32.mrf.mxu1 }
 0x218   : > { %v7369_v22 = vadd.f32 %v1965_v34, %v1799_v13  ;;  %v1686_v59 = vpop.f32.mrf.mxu0 }
 0x219   : > { %v1805_v38 = vadd.f32 %v1686_v59, %v7259_v41  ;;  %v7372_v0 = vpop.f32.mrf.mxu1 }
 0x21a   : > { %9221 = vst [vmem:[#allocation13_spill] sm:$0xff] %v7372_v0  ;;  %v7374_v10 = vpop.f32.mrf.mxu0 }
 0x21b   : > { %9222 = vst [vmem:[#allocation14_spill] sm:$0xff] %v7374_v10  ;;  %v1971_v26 = vpop.f32.mrf.mxu1 }
 0x21c   : > { %v7376_v55 = vadd.f32 %v1971_v26, %v1802_v29  ;;  %v6353_v63 = vpop.f32.mrf.mxu0 }
 0x21d   : > { %v2069_v6 = vadd.f32 %v6353_v63, %v7266_v28  ;;  %v1973_v18 = vpop.f32.mrf.mxu1 }
 0x21e   : > { %v7379_v27 = vadd.f32 %v1973_v18, %v1803_v23  ;;  %v2014_v7 = vpop.f32.mrf.mxu0 }
 0x21f   : > { %v2063_v13 = vadd.f32 %v2014_v7, %v7272_v31  ;;  %v1975_v54 = vpop.f32.mrf.mxu1 }
 0x220   : > { %v7382_v34 = vadd.f32 %v1975_v54, %v1805_v38  ;;  %v6354_v41 = vpop.f32.mrf.mxu0 }
 0x221   : > { %v2072_v59 = vadd.f32 %v6354_v41, %v7275_v50  ;;  %v7385_v0 = vpop.f32.mrf.mxu1 }
 0x222   : > { %9223 = vst [vmem:[#allocation15_spill] sm:$0xff] %v7385_v0  ;;  %v7387_v10 = vpop.f32.mrf.mxu0 }
 0x223   : > { %9224 = vst [vmem:[#allocation16_spill] sm:$0xff] %v7387_v10  ;;  %v6367_v29 = vpop.f32.mrf.mxu1 }
 0x224   : > { %v7389_v26 = vadd.f32 %v6367_v29, %v2069_v6  ;;  %v6357_v28 = vpop.f32.mrf.mxu0 }
 0x225   : > { %v2081_v23 = vadd.f32 %v6357_v28, %v7282_v24  ;;  %v2303_v63 = vpop.f32.mrf.mxu1 }
 0x226   : > { %v7392_v18 = vadd.f32 %v2303_v63, %v2063_v13  ;;  %v2030_v31 = vpop.f32.mrf.mxu0 }
 0x227   : > { %v2075_v38 = vadd.f32 %v2030_v31, %v7288_v44  ;;  %v6368_v7 = vpop.f32.mrf.mxu1 }
 0x228   : > { %v7395_v54 = vadd.f32 %v6368_v7, %v2072_v59  ;;  %v6358_v50 = vpop.f32.mrf.mxu0 }
 0x229   : > { %v2084_v41 = vadd.f32 %v6358_v50, %v7291_v14  ;;  %v7398_v0 = vpop.f32.mrf.mxu1 }
 0x22a   : > { %9225 = vst [vmem:[#allocation17_spill] sm:$0xff] %v7398_v0  ;;  %v7400_v10 = vpop.f32.mrf.mxu0 }
 0x22b   : > { %9226 = vst [vmem:[#allocation18_spill] sm:$0xff] %v7400_v10  ;;  %v6371_v6 = vpop.f32.mrf.mxu1 }
 0x22c   : > { %v7402_v29 = vadd.f32 %v6371_v6, %v2081_v23  ;;  %v6361_v24 = vpop.f32.mrf.mxu0 }
 0x22d   : > { %v2093_v13 = vadd.f32 %v6361_v24, %v7298_v37  ;;  %v2319_v28 = vpop.f32.mrf.mxu1 }
 0x22e   : > { %v7405_v63 = vadd.f32 %v2319_v28, %v2075_v38  ;;  %v2046_v44 = vpop.f32.mrf.mxu0 }
 0x22f   : > { %v2087_v59 = vadd.f32 %v2046_v44, %v7301_v61  ;;  %v6372_v31 = vpop.f32.mrf.mxu1 }
 0x230   : > { %9227 = vst [vmem:[#allocation19_spill] sm:$0xff] %v7405_v63  ;;  %v7408_v7 = vadd.f32 %v6372_v31, %v2084_v41  ;;  %v6362_v14 = vpop.f32.mrf.mxu0 }
 0x231   : > { %v2096_v50 = vadd.f32 %v6362_v14, %v7304_v1  ;;  %v7411_v0 = vpop.f32.mrf.mxu1 }
 0x232   : > { %9228 = vst [vmem:[#allocation20_spill] sm:$0xff] %v7408_v7  ;;  %v7413_v10 = vpop.f32.mrf.mxu0 }
 0x233   : > { %v6375_v23 = vpop.f32.mrf.mxu1 }
 0x234   : > { %v7415_v6 = vadd.f32 %v6375_v23, %v2093_v13  ;;  %v2210_v37 = vpop.f32.mrf.mxu0 }
 0x235   : > { %v2350_v38 = vadd.f32 %v2210_v37, %v7311_v49  ;;  %v2335_v24 = vpop.f32.mrf.mxu1 }
 0x236   : > { %v7418_v28 = vadd.f32 %v2335_v24, %v2087_v59  ;;  %v2212_v61 = vpop.f32.mrf.mxu0 }
 0x237   : > { %v2351_v41 = vadd.f32 %v2212_v61, %v7314_v9  ;;  %v6376_v44 = vpop.f32.mrf.mxu1 }
 0x238   : > { %9229 = vst [vmem:[#allocation21_spill] sm:$0xff] %v7418_v28  ;;  %v7421_v31 = vadd.f32 %v6376_v44, %v2096_v50  ;;  %v2214_v1 = vpop.f32.mrf.mxu0 }
 0x239   : > { %v2353_v14 = vadd.f32 %v2214_v1, %v7317_v12  ;;  %v7424_v7 = vpop.f32.mrf.mxu1 }
 0x23a   : > { %9230 = vst [vmem:[#allocation22_spill] sm:$0xff] %v7421_v31  ;;  %v7426_v63 = vpop.f32.mrf.mxu0 }
 0x23b   : > { %v2499_v13 = vpop.f32.mrf.mxu1 }
 0x23c   : > { %v7428_v23 = vadd.f32 %v2499_v13, %v2350_v38  ;;  %v2220_v49 = vpop.f32.mrf.mxu0 }
 0x23d   : > { %v2356_v59 = vadd.f32 %v2220_v49, %v7324_v25  ;;  %v2501_v37 = vpop.f32.mrf.mxu1 }
 0x23e   : > { %v7431_v24 = vadd.f32 %v2501_v37, %v2351_v41  ;;  %v2222_v9 = vpop.f32.mrf.mxu0 }
 0x23f   : > { %v2357_v50 = vadd.f32 %v2222_v9, %v7327_v8  ;;  %v2503_v61 = vpop.f32.mrf.mxu1 }
 0x240   : > { %9231 = vst [vmem:[#allocation23_spill] sm:$0xff] %v7431_v24  ;;  %v7434_v44 = vadd.f32 %v2503_v61, %v2353_v14  ;;  %v2224_v12 = vpop.f32.mrf.mxu0 }
 0x241   : > { %v2359_v1 = vadd.f32 %v2224_v12, %v7330_v20  ;;  %v7437_v31 = vpop.f32.mrf.mxu1 }
 0x242   : > { %9232 = vst [vmem:[#allocation24_spill] sm:$0xff] %v7434_v44  ;;  %v7439_v28 = vpop.f32.mrf.mxu0 }
 0x243   : > { %v2509_v38 = vpop.f32.mrf.mxu1 }
 0x244   : > { %v7441_v13 = vadd.f32 %v2509_v38, %v2356_v59  ;;  %v2230_v25 = vpop.f32.mrf.mxu0 }
 0x245   : > { %v2362_v41 = vadd.f32 %v2230_v25, %v7337_v5  ;;  %v2511_v49 = vpop.f32.mrf.mxu1 }
 0x246   : > { %v7444_v37 = vadd.f32 %v2511_v49, %v2357_v50  ;;  %v2232_v8 = vpop.f32.mrf.mxu0 }
 0x247   : > { %v2363_v14 = vadd.f32 %v2232_v8, %v7340_v30  ;;  %v2513_v9 = vpop.f32.mrf.mxu1 }
 0x248   : > { %9233 = vst [vmem:[#allocation25_spill] sm:$0xff] %v7444_v37  ;;  %v7447_v61 = vadd.f32 %v2513_v9, %v2359_v1  ;;  %v2234_v20 = vpop.f32.mrf.mxu0  ;;  %v7460_v9 = vpop.permute.xlu1 %3028 }
 0x249   : > { %v2365_v12 = vadd.f32 %v2234_v20, %v7343_v39  ;;  %v7450_v44 = vpop.f32.mrf.mxu1 }
 0x24a   : > { %9234 = vst [vmem:[#allocation26_spill] sm:$0xff] %v7447_v61  ;;  %v7452_v24 = vpop.f32.mrf.mxu0 }
 0x24b   : > { %v2519_v59 = vpop.f32.mrf.mxu1 }
 0x24c   : > { %v7454_v38 = vadd.f32 %v2519_v59, %v2362_v41  ;;  %v2240_v5 = vpop.f32.mrf.mxu0 }
 0x24d   : > { %v2368_v50 = vadd.f32 %v2240_v5, %v7350_v48  ;;  %v2521_v25 = vpop.f32.mrf.mxu1 }
 0x24e   : > { %9235 = vst [vmem:[#allocation27_spill] sm:$0xff] %v7454_v38  ;;  %v7457_v49 = vadd.f32 %v2521_v25, %v2363_v14  ;;  %v2242_v30 = vpop.f32.mrf.mxu0 }
 0x24f   : > { %v2369_v1 = vadd.f32 %v2242_v30, %v7353_v47  ;;  %v2523_v8 = vpop.f32.mrf.mxu1  ;;  %v7472_v47 = vpop.permute.xlu1 %3018 }
 0x250   : > { %9236 = vst [vmem:[#allocation28_spill] sm:$0xff] %v7457_v49  ;;  %v7462_v39 = vadd.f32 %v2523_v8, %v2365_v12  ;;  %v2244_v20 = vpop.f32.mrf.mxu0  ;;  %v7476_v8 = vpop.permute.xlu0 %3033 }
 0x251   : > { %v2371_v61 = vadd.f32 %v2244_v20, %v7356_v17  ;;  %v7465_v37 = vpop.f32.mrf.mxu1 }
 0x252   : > { %9237 = vst [vmem:[#allocation29_spill] sm:$0xff] %v7462_v39  ;;  %v7467_v41 = vpop.f32.mrf.mxu0 }
 0x253   : > { %9238 = vst [vmem:[#allocation30_spill] sm:$0xff] %v7467_v41  ;;  %v2529_v59 = vpop.f32.mrf.mxu1 }
 0x254   : > { %v7469_v48 = vadd.f32 %v2529_v59, %v2368_v50  ;;  %v2250_v14 = vpop.f32.mrf.mxu0 }
 0x255   : > { %v2374_v5 = vadd.f32 %v2250_v14, %v7363_v46  ;;  %v2531_v25 = vpop.f32.mrf.mxu1  ;;  %v7486_v14 = vpop.permute.xlu1 %3023 }
 0x256   : > { %9239 = vst [vmem:[#allocation31_spill] sm:$0xff] %v7469_v48  ;;  %v7474_v30 = vadd.f32 %v2531_v25, %v2369_v1  ;;  %v2252_v12 = vpop.f32.mrf.mxu0 }
 0x257   : > { %v2375_v17 = vadd.f32 %v2252_v12, %v7366_v4  ;;  %v2533_v20 = vpop.f32.mrf.mxu1 }
 0x258   : > { %9240 = vst [vmem:[#allocation32_spill] sm:$0xff] %v7474_v30  ;;  %v7479_v39 = vadd.f32 %v2533_v20, %v2371_v61  ;;  %v2254_v41 = vpop.f32.mrf.mxu0  ;;  %v7490_v30 = vpop.permute.xlu0 %3008 }
 0x259   : > { %v2377_v50 = vadd.f32 %v2254_v41, %v7369_v22  ;;  %v7482_v59 = vpop.f32.mrf.mxu1 }
 0x25a   : > { %9241 = vst [vmem:[#allocation33_spill] sm:$0xff] %v7479_v39  ;;  %9242 = vst [vmem:[#allocation34_spill] sm:$0xff] %v7482_v59  ;;  %v7484_v48 = vpop.f32.mrf.mxu0 }
 0x25b   : > { %9243 = vst [vmem:[#allocation35_spill] sm:$0xff] %v7484_v48  ;;  %v2539_v46 = vpop.f32.mrf.mxu1 }
 0x25c   : > { %v7488_v1 = vadd.f32 %v2539_v46, %v2374_v5  ;;  %v2260_v25 = vpop.f32.mrf.mxu0  ;;  %v7501_v5 = vpop.permute.xlu1 %3013 }
 0x25d   : > { %v2380_v4 = vadd.f32 %v2260_v25, %v7376_v55  ;;  %v2541_v12 = vpop.f32.mrf.mxu1  ;;  %v9199_v55 = vsub.s32 0, %v6619_v3  ;;  %v3192_v25 = vsub.s32 2, %v6619_v3 }
 0x25e   : > { %9244 = vst [vmem:[#allocation36_spill] sm:$0xff] %v7488_v1  ;;  %v7493_v61 = vadd.f32 %v2541_v12, %v2375_v17  ;;  %v2262_v20 = vpop.f32.mrf.mxu0  ;;  %v3188_v17 = vsub.s32 1, %v6619_v3  ;;  %v7508_v12 = vpop.permute.xlu0 %2998  ;;  %v1223_v1 = vadd.f32 %v7141_v36, %v7117_v45  ;;  %v1505_v45 = vadd.f32 %v7229_v62, %v7215_v58  ;;  %v9249_v62 = vld [vmem:[#allocation4_spill] sm:$0xff] }
 0x25f   : > { %v2381_v22 = vadd.f32 %v2262_v20, %v7379_v27  ;;  %v2543_v41 = vpop.f32.mrf.mxu1  ;;  %v1488_v36 = vadd.f32 %v7264_v52, %v7088_v16  ;;  %v9250_v52 = vld [vmem:[#allocation6_spill] sm:$0xff] }
 0x260   : > { %9245 = vst [vmem:[#allocation37_spill] sm:$0xff] %v7493_v61  ;;  %v7496_v39 = vadd.f32 %v2543_v41, %v2377_v50  ;;  %v2264_v48 = vpop.f32.mrf.mxu0  ;;  %v3180_v50 = vld [vmem:[%s9188_s1] sm:$0x7] }
 0x261   : > { %v2383_v59 = vadd.f32 %v2264_v48, %v7382_v34  ;;  %v7499_v49 = vpop.f32.mrf.mxu1  ;;  %v7523_v61 = vrot.slane %v3180_v50, %v3192_v25  ;;  %v1499_v25 = vadd.f32 %v7212_v21, %v7195_v2  ;;  %v1512_v2 = vadd.f32 %v7296_v11, %v1223_v1  ;;  %v9253_v1 = vld [vmem:[#allocation5_spill] sm:$0xff] }
 0x262   : > { %9246 = vst [vmem:[#allocation38_spill] sm:$0xff] %v7496_v39  ;;  %9247 = vst [vmem:[#allocation39_spill] sm:$0xff] %v7499_v49  ;;  %v7503_v46 = vpop.f32.mrf.mxu0  ;;  %v7519_v49 = vrot.slane %v3180_v50, %v9199_v55  ;;  %v7521_v39 = vrot.slane %v3180_v50, %v3188_v17  ;;  %v1777_v16 = vadd.f32 %v7278_v15, %v1488_v36  ;;  %v9255_v15 = vld [vmem:[#allocation10_spill] sm:$0xff] }
 0x263   : > { %9248 = vst [vmem:[#allocation40_spill] sm:$0xff] %v7503_v46  ;;  %v2549_v27 = vpop.f32.mrf.mxu1  ;;  %v1794_v36 = vadd.f32 %v9255_v15, %v1505_v45 }
 0x264   : > { %v7513_v34 = vadd.f32 %v2549_v27, %v2380_v4  ;;  %v6381_v48 = vpop.f32.mrf.mxu0  ;;  %v1487_v4 = vadd.f32 %v7169_v43, %v7144_v33  ;;  %v1228_v27 = vadd.f32 %v7248_v32, %v7068_v40  ;;  %v1500_v33 = vadd.f32 %v7280_v60, %v7114_v56  ;;  %v7545_v43 = vpop.permute.xlu0 %2988 }
 0x265   : > { %v2551_v20 = vpop.f32.mrf.mxu1  ;;  %v2647_v21 = vadd.f32 %v6381_v48, %v7389_v26  ;;  %v9254_v48 = vld [vmem:[#allocation7_spill] sm:$0xff] }
 0x266   : > { %v7515_v41 = vadd.f32 %v2551_v20, %v2381_v22  ;;  %v2592_v46 = vpop.f32.mrf.mxu0  ;;  %v1493_v22 = vadd.f32 %v7192_v35, %v7172_v19  ;;  %v7533_v20 = vpop.permute.xlu1 %3003  ;;  %v7551_v19 = vadd.f32 %v7246_v42, %v7232_v53  ;;  %v7554_v35 = vadd.f32 %v7262_v51, %v1228_v27  ;;  %v9252_v42 = vld [vmem:[#allocation8_spill] sm:$0xff] }
 0x267   : > { %v2553_v38 = vpop.f32.mrf.mxu1  ;;  %v1789_v56 = vadd.f32 %v7294_v57, %v1500_v33  ;;  %v1776_v32 = vadd.f32 %v9249_v62, %v1487_v4  ;;  %v1788_v50 = vadd.f32 %v9252_v42, %v1499_v25  ;;  %v2641_v51 = vadd.f32 %v2592_v46, %v7392_v18  ;;  %v9256_v57 = vld [vmem:[#allocation16_spill] sm:$0xff]  ;;  %v9257_v62 = vld [vmem:[#allocation9_spill] sm:$0xff] }
 0x268   : > { %v7535_v55 = vadd.f32 %v2553_v38, %v2383_v59  ;;  %v6382_v17 = vpop.f32.mrf.mxu0  ;;  %v1782_v60 = vadd.f32 %v9250_v52, %v1493_v22  ;;  %v9251_v59 = vld [vmem:[#allocation3_spill] sm:$0xff]  ;;  %v2066_v33 = vadd.f32 %v9256_v57, %v1777_v16  ;;  %v7580_v42 = vpop.permute.xlu0 %2978 }
 0x269   : > { %v7547_v40 = vpop.f32.mrf.mxu1  ;;  %v1801_v53 = vadd.f32 %v9251_v59, %v1512_v2  ;;  %v2065_v26 = vadd.f32 %v9253_v1, %v1776_v32  ;;  %v2077_v22 = vadd.f32 %v9257_v62, %v1788_v50  ;;  %v2650_v2 = vadd.f32 %v6382_v17, %v7395_v54  ;;  %v9259_v32 = vld [vmem:[#allocation17_spill] sm:$0xff]  ;;  %v9260_v59 = vld [vmem:[#allocation18_spill] sm:$0xff] }
 0x26a   : > { %v2595_v58 = vpop.f32.mrf.mxu0  ;;  %v2071_v3 = vadd.f32 %v9254_v48, %v1782_v60  ;;  %v7570_v52 = vpop.permute.xlu1 %2993  ;;  %v2355_v60 = vadd.f32 %v9259_v32, %v2066_v33  ;;  %v2078_v45 = vadd.f32 %v9260_v59, %v1789_v56  ;;  %v9262_v32 = vld [vmem:[#allocation20_spill] sm:$0xff] }
 0x26b   : > { %v6395_v38 = vpop.f32.mrf.mxu1  ;;  %v2090_v16 = vadd.f32 %v7413_v10, %v1801_v53  ;;  %v2354_v1 = vadd.f32 %v7426_v63, %v2065_v26 }
 0x26c   : > { %v2936_v27 = vadd.f32 %v6395_v38, %v2647_v21  ;;  %v6385_v11 = vpop.f32.mrf.mxu0  ;;  %v9258_v21 = vld [vmem:[#allocation11_spill] sm:$0xff]  ;;  %v2360_v33 = vadd.f32 %v7439_v28, %v2071_v3 }
 0x26d   : > { %v2881_v4 = vpop.f32.mrf.mxu1  ;;  %v7575_v38 = vadd.f32 %v9258_v21, %v1794_v36  ;;  %v7586_v15 = vadd.f32 %v7424_v7, %v2090_v16  ;;  %v2644_v36 = vadd.f32 %v2595_v58, %v2355_v60  ;;  %v7589_v10 = vadd.f32 %v7437_v31, %v2354_v1 }
 0x26e   : > { %v3044_v25 = vadd.f32 %v7545_v43, %v2936_v27  ;;  %v2930_v18 = vadd.f32 %v2881_v4, %v2641_v51  ;;  %v2608_v46 = vpop.f32.mrf.mxu0  ;;  %v2367_v27 = vadd.f32 %v7411_v0, %v2078_v45  ;;  %v2659_v53 = vadd.f32 %v6385_v11, %v7402_v29  ;;  %v9261_v4 = vld [vmem:[#allocation19_spill] sm:$0xff] }
 0x26f   : > { %v6396_v50 = vpop.f32.mrf.mxu1  ;;  %v2653_v0 = vadd.f32 %v2608_v46, %v9261_v4  ;;  %v7598_v29 = vadd.f32 %v7450_v44, %v2360_v33  ;;  %v7601_v11 = vadd.f32 %v7452_v24, %v2077_v22 }
 0x270   : > { %v3116_v48 = vmul.f32 0.01, %v3044_v25  ;;  %v3038_v54 = vadd.f32 %v7580_v42, %v2930_v18  ;;  %v2939_v17 = vadd.f32 %v6396_v50, %v2650_v2  ;;  %v6386_v51 = vpop.f32.mrf.mxu0  ;;  %vm3080_vm12 = vcmp.ge.f32.partialorder %v3044_v25, 0.0  ;;  %v7595_v2 = vpop.permute.xlu1 %2983 }
 0x271   : > { %v2884_v56 = vpop.f32.mrf.mxu1  ;;  %v2662_v3 = vadd.f32 %v6386_v51, %v9262_v32 }
 0x272   : > { %v3110_v57 = vmul.f32 0.01, %v3038_v54  ;;  %v3047_v63 = vadd.f32 %v7570_v52, %v2939_v17  ;;  %v2611_v26 = vpop.f32.mrf.mxu0  ;;  %vm3074_vm13 = vcmp.ge.f32.partialorder %v3038_v54, 0.0  ;;  %v2933_v62 = vadd.f32 %v2884_v56, %v2644_v36 }
 0x273   : > { %v6399_v7 = vpop.f32.mrf.mxu1  ;;  %v3152_v58 = vsel %vm3080_vm12, %v3044_v25, %v3116_v48 }
 0x274   : > { %vm3083_vm14 = vcmp.ge.f32.partialorder %v3047_v63, 0.0  ;;  %v3119_v18 = vmul.f32 0.01, %v3047_v63  ;;  %v2948_v31 = vadd.f32 %v6399_v7, %v2659_v53  ;;  %v6389_v21 = vpop.f32.mrf.mxu0  ;;  %v3041_v28 = vadd.f32 %v7595_v2, %v2933_v62  ;;  %v9263_v7 = vld [vmem:[#allocation21_spill] sm:$0xff] }
 0x275   : > { %v2897_v46 = vpop.f32.mrf.mxu1  ;;  %v3146_v60 = vsel %vm3074_vm13, %v3038_v54, %v3110_v57  ;;  %v3205_v50 = vmul.f32 %v7523_v61, %v3152_v58  ;;  %v2656_v53 = vadd.f32 %v2611_v26, %v2367_v27  ;;  %v2671_v4 = vadd.f32 %v6389_v21, %v7415_v6  ;;  %v9264_v26 = vld [vmem:[#allocation22_spill] sm:$0xff] }
 0x276   : > { %v3155_v59 = vsel %vm3083_vm14, %v3047_v63, %v3119_v18  ;;  %v3056_v45 = vadd.f32 %v7490_v30, %v2948_v31  ;;  %v2942_v25 = vadd.f32 %v2897_v46, %v2653_v0  ;;  %v2624_v16 = vpop.f32.mrf.mxu0  ;;  %vm3077_vm15 = vcmp.ge.f32.partialorder %v3041_v28, 0.0 }
 0x277   : > { %v3208_v1 = vmul.f32 %v7523_v61, %v3155_v59  ;;  %v3113_v44 = vmul.f32 0.01, %v3041_v28  ;;  %v6400_v48 = vpop.f32.mrf.mxu1  ;;  %v3199_v54 = vmul.f32 %v7523_v61, %v3146_v60  ;;  %v2665_v58 = vadd.f32 %v2624_v16, %v9263_v7 }
 0x278   : > { %vm3092_vm0 = vcmp.ge.f32.partialorder %v3056_v45, 0.0  ;;  %v3128_v24 = vmul.f32 0.01, %v3056_v45  ;;  %v3050_v22 = vadd.f32 %v7508_v12, %v2942_v25  ;;  %v2951_v17 = vadd.f32 %v6400_v48, %v2662_v3  ;;  %v6390_v51 = vpop.f32.mrf.mxu0 }
 0x279   : > { %v7610_v36 = vpack.c.bf16 %v3208_v1, %v3205_v50  ;;  %v3149_v56 = vsel %vm3077_vm15, %v3041_v28, %v3113_v44  ;;  %v2900_v57 = vpop.f32.mrf.mxu1  ;;  %v2674_v28 = vadd.f32 %v6390_v51, %v9264_v26 }
 0x27a   : > { %v3202_v63 = vmul.f32 %v7523_v61, %v3149_v56  ;;  %v3164_v33 = vsel %vm3092_vm0, %v3056_v45, %v3128_v24  ;;  %v3122_v0 = vmul.f32 0.01, %v3050_v22  ;;  %v2627_v62 = vpop.f32.mrf.mxu0  ;;  %vm3086_vm1 = vcmp.ge.f32.partialorder %v3050_v22, 0.0 }
 0x27b   : > { %v3059_v18 = vadd.f32 %v7501_v5, %v2951_v17  ;;  %v2945_v31 = vadd.f32 %v2900_v57, %v2656_v53  ;;  %v6403_v32 = vpop.f32.mrf.mxu1  ;;  %3750 = vrot.lane.b32.xlu0 %v7610_v36, %s6554_s17  ;;  %v3217_v27 = vmul.f32 %v7523_v61, %v3164_v33  ;;  %3334 = vrot.lane.b32.xlu1 %v7610_v36, %s6552_s15  ;;  %v9265_v17 = vld [vmem:[#allocation23_spill] sm:$0xff] }
 0x27c   : > { %v7618_v3 = vpack.c.bf16 %v3202_v63, %v3199_v54  ;;  %v2960_v46 = vadd.f32 %v6403_v32, %v2671_v4  ;;  %v2788_v6 = vpop.f32.mrf.mxu0  ;;  %v2668_v59 = vadd.f32 %v2627_v62, %v7586_v15  ;;  %v3158_v25 = vsel %vm3086_vm1, %v3050_v22, %v3122_v0 }
 0x27d   : > { %vm3095_vm2 = vcmp.ge.f32.partialorder %v3059_v18, 0.0  ;;  %v3131_v21 = vmul.f32 0.01, %v3059_v18  ;;  %v3053_v60 = vadd.f32 %v7533_v20, %v2945_v31  ;;  %v2913_v45 = vpop.f32.mrf.mxu1  ;;  %v2928_v50 = vadd.f32 %v2788_v6, %v7428_v23 }
 0x27e   : > { %v3068_v16 = vadd.f32 %v7460_v9, %v2960_v46  ;;  %v2954_v1 = vadd.f32 %v2913_v45, %v2665_v58  ;;  %v2790_v44 = vpop.f32.mrf.mxu0  ;;  %v3211_v4 = vmul.f32 %v7523_v61, %v3158_v25  ;;  %v7652_v25 = vadd.f32 %v7465_v37, %v7601_v11 }
 0x27f   : > { %v3167_v48 = vsel %vm3095_vm2, %v3059_v18, %v3131_v21  ;;  %vm3089_vm12 = vcmp.ge.f32.partialorder %v3053_v60, 0.0  ;;  %v3125_v24 = vmul.f32 0.01, %v3053_v60  ;;  %v2929_v51 = vadd.f32 %v2790_v44, %v9265_v17  ;;  %v6404_v54 = vpop.f32.mrf.mxu1  ;;  %3328 = vrot.lane.b32.xlu0 %v7618_v3, %s6552_s15  ;;  %3536 = vrot.lane.b32.xlu1 %v7610_v36, %s6553_s16  ;;  %v9266_v21 = vld [vmem:[#allocation24_spill] sm:$0xff] }
 0x280   : > { %v3220_v15 = vmul.f32 %v7523_v61, %v3167_v48  ;;  %vm3104_vm13 = vcmp.ge.f32.partialorder %v3068_v16, 0.0  ;;  %v3140_v56 = vmul.f32 0.01, %v3068_v16  ;;  %v3036_v22 = vadd.f32 %v7580_v42, %v2928_v50  ;;  %v2792_v23 = vpop.f32.mrf.mxu0 }
 0x281   : > { %v3161_v53 = vsel %vm3089_vm12, %v3053_v60, %v3125_v24  ;;  %v3062_v57 = vadd.f32 %v7472_v47, %v2954_v1  ;;  %v3037_v63 = vadd.f32 %v7580_v42, %v2929_v51  ;;  %v2963_v33 = vadd.f32 %v6404_v54, %v2674_v28  ;;  %v2916_v7 = vpop.f32.mrf.mxu1  ;;  %v9267_v51 = vld [vmem:[#allocation25_spill] sm:$0xff] }
 0x282   : > { %v7639_v0 = vpack.c.bf16 %v3220_v15, %v3217_v27  ;;  %v3214_v62 = vmul.f32 %v7523_v61, %v3161_v53  ;;  %vm3072_vm14 = vcmp.ge.f32.partialorder %v3036_v22, 0.0  ;;  %v2794_v58 = vpop.f32.mrf.mxu0  ;;  %v3176_v18 = vsel %vm3104_vm13, %v3068_v16, %v3140_v56 }
 0x283   : > { %v3108_v31 = vmul.f32 0.01, %v3036_v22  ;;  %vm3098_vm15 = vcmp.ge.f32.partialorder %v3062_v57, 0.0  ;;  %v3134_v32 = vmul.f32 0.01, %v3062_v57  ;;  %3744 = vrot.lane.b32.xlu0 %v7618_v3, %s6554_s17  ;;  %vm3073_vm0 = vcmp.ge.f32.partialorder %v3037_v63, 0.0  ;;  %3530 = vrot.lane.b32.xlu1 %v7618_v3, %s6553_s16 }
 0x284   : > { %v7644_v26 = vpack.c.bf16 %v3214_v62, %v3211_v4  ;;  %v3109_v42 = vmul.f32 0.01, %v3037_v63  ;;  %v3071_v28 = vadd.f32 %v7476_v8, %v2963_v33  ;;  %v2798_v27 = vpop.f32.mrf.mxu0  ;;  %v2931_v60 = vadd.f32 %v2792_v23, %v9266_v21  ;;  %v9268_v4 = vld [vmem:[#allocation26_spill] sm:$0xff] }
 0x285   : > { %v3144_v46 = vsel %vm3072_vm14, %v3036_v22, %v3108_v31  ;;  %v3170_v6 = vsel %vm3098_vm15, %v3062_v57, %v3134_v32  ;;  %v2957_v45 = vadd.f32 %v2916_v7, %v2668_v59  ;;  %v3229_v16 = vmul.f32 %v7523_v61, %v3176_v18 }
 0x286   : > { %v3197_v50 = vmul.f32 %v7519_v49, %v3144_v46  ;;  %vm3107_vm1 = vcmp.ge.f32.partialorder %v3071_v28, 0.0  ;;  %v2800_v1 = vpop.f32.mrf.mxu0  ;;  %v3223_v44 = vmul.f32 %v7523_v61, %v3170_v6  ;;  %v3143_v48 = vmul.f32 0.01, %v3071_v28 }
 0x287   : > { %v3039_v24 = vadd.f32 %v7595_v2, %v2931_v60  ;;  %v3065_v17 = vadd.f32 %v7486_v14, %v2957_v45  ;;  %3762 = vrot.lane.b32.xlu0 %v7639_v0, %s6554_s17  ;;  %v3145_v59 = vsel %vm3073_vm0, %v3037_v63, %v3109_v42  ;;  %v2932_v37 = vadd.f32 %v2794_v58, %v7589_v10 }
 0x288   : > { %v2934_v11 = vadd.f32 %v2798_v27, %v7441_v13  ;;  %v2935_v54 = vadd.f32 %v2800_v1, %v9267_v51  ;;  %3346 = vrot.lane.b32.xlu1 %v7639_v0, %s6552_s15  ;;  %v2802_v15 = vpop.f32.mrf.mxu0  ;;  %v3179_v56 = vsel %vm3107_vm1, %v3071_v28, %v3143_v48 }
 0x289   : > { %vm3075_vm2 = vcmp.ge.f32.partialorder %v3039_v24, 0.0  ;;  %v3111_v22 = vmul.f32 0.01, %v3039_v24  ;;  %vm3101_vm12 = vcmp.ge.f32.partialorder %v3065_v17, 0.0  ;;  %v3232_v23 = vmul.f32 %v7523_v61, %v3179_v56 }
 0x28a   : > { %v3137_v53 = vmul.f32 0.01, %v3065_v17  ;;  %v3040_v57 = vadd.f32 %v7595_v2, %v2932_v37  ;;  %v3042_v63 = vadd.f32 %v7545_v43, %v2934_v11  ;;  %v2804_v10 = vpop.f32.mrf.mxu0  ;;  %v3043_v13 = vadd.f32 %v7545_v43, %v2935_v54  ;;  %v9270_v11 = vld [vmem:[#allocation28_spill] sm:$0xff] }
 0x28b   : > { %v3147_v33 = vsel %vm3075_vm2, %v3039_v24, %v3111_v22  ;;  %v2937_v62 = vadd.f32 %v2802_v15, %v9268_v4  ;;  %v2938_v7 = vadd.f32 %v2804_v10, %v7598_v29  ;;  %3340 = vrot.lane.b32.xlu0 %v7644_v26, %s6552_s15  ;;  %v7675_v58 = vpack.c.bf16 %v3232_v23, %v3229_v16  ;;  %v9272_v4 = vld [vmem:[#allocation30_spill] sm:$0xff] }
 0x28c   : > { %v3200_v18 = vmul.f32 %v7519_v49, %v3147_v33  ;;  %v3173_v31 = vsel %vm3101_vm12, %v3065_v17, %v3137_v53  ;;  %vm3076_vm13 = vcmp.ge.f32.partialorder %v3040_v57, 0.0  ;;  %3548 = vrot.lane.b32.xlu1 %v7639_v0, %s6553_s16  ;;  %v2808_v2 = vpop.f32.mrf.mxu0  ;;  %v3112_v43 = vmul.f32 0.01, %v3040_v57 }
 0x28d   : > { %v3226_v32 = vmul.f32 %v7523_v61, %v3173_v31  ;;  %vm3078_vm14 = vcmp.ge.f32.partialorder %v3042_v63, 0.0  ;;  %v3114_v42 = vmul.f32 0.01, %v3042_v63  ;;  %vm3079_vm15 = vcmp.ge.f32.partialorder %v3043_v13, 0.0 }
 0x28e   : > { %v7681_v28 = vpack.c.bf16 %v3200_v18, %v3197_v50  ;;  %v3115_v29 = vmul.f32 0.01, %v3043_v13  ;;  %v3045_v27 = vadd.f32 %v7570_v52, %v2937_v62  ;;  %v2810_v46 = vpop.f32.mrf.mxu0  ;;  %v3148_v21 = vsel %vm3076_vm13, %v3040_v57, %v3112_v43  ;;  %v9273_v18 = vld [vmem:[#allocation31_spill] sm:$0xff] }
 0x28f   : > { %v7684_v6 = vpack.c.bf16 %v3226_v32, %v3223_v44  ;;  %v3150_v60 = vsel %vm3078_vm14, %v3042_v63, %v3114_v42  ;;  %v3046_v45 = vadd.f32 %v7570_v52, %v2938_v7  ;;  %3756 = vrot.lane.b32.xlu0 %v7644_v26, %s6554_s17  ;;  %v3198_v61 = vmul.f32 %v7521_v39, %v3145_v59  ;;  %v9269_v52 = vld [vmem:[#allocation27_spill] sm:$0xff]  ;;  %v9271_v59 = vld [vmem:[#allocation29_spill] sm:$0xff] }
 0x290   : > { %v3201_v16 = vmul.f32 %v7521_v39, %v3148_v21  ;;  %v3151_v50 = vsel %vm3079_vm15, %v3043_v13, %v3115_v29  ;;  %vm3081_vm0 = vcmp.ge.f32.partialorder %v3045_v27, 0.0  ;;  %3542 = vrot.lane.b32.xlu1 %v7644_v26, %s6553_s16  ;;  %v2812_v1 = vpop.f32.mrf.mxu0  ;;  %v3203_v44 = vmul.f32 %v7519_v49, %v3150_v60  ;;  %v9274_v21 = vld [vmem:[#allocation34_spill] sm:$0xff] }
 0x291   : > { %v3117_v48 = vmul.f32 0.01, %v3045_v27  ;;  %vm3082_vm1 = vcmp.ge.f32.partialorder %v3046_v45, 0.0  ;;  %v3118_v24 = vmul.f32 0.01, %v3046_v45  ;;  %v2940_v37 = vadd.f32 %v2808_v2, %v9269_v52 }
 0x292   : > { %v7694_v17 = vpack.c.bf16 %v3201_v16, %v3198_v61  ;;  %v2941_v51 = vadd.f32 %v2810_v46, %v9270_v11  ;;  %v2943_v54 = vadd.f32 %v2812_v1, %v9271_v59  ;;  %v2814_v15 = vpop.f32.mrf.mxu0  ;;  %v3204_v56 = vmul.f32 %v7521_v39, %v3151_v50  ;;  %v9275_v16 = vld [vmem:[#allocation32_spill] sm:$0xff]  ;;  %v9276_v59 = vld [vmem:[#allocation33_spill] sm:$0xff] }
 0x293   : > { %v3153_v22 = vsel %vm3081_vm0, %v3045_v27, %v3117_v48  ;;  %v3154_v23 = vsel %vm3082_vm1, %v3046_v45, %v3118_v24  ;;  %v2944_v53 = vadd.f32 %v2814_v15, %v7652_v25  ;;  %3774 = vrot.lane.b32.xlu0 %v7675_v58, %s6554_s17  ;;  %v3048_v10 = vadd.f32 %v7508_v12, %v2940_v37  ;;  %v9277_v15 = vld [vmem:[#allocation12_spill] sm:$0xff] }
 0x294   : > { %v3206_v57 = vmul.f32 %v7519_v49, %v3153_v22  ;;  %v3207_v63 = vmul.f32 %v7521_v39, %v3154_v23  ;;  %v3049_v33 = vadd.f32 %v7508_v12, %v2941_v51  ;;  %3358 = vrot.lane.b32.xlu1 %v7675_v58, %s6552_s15  ;;  %v2818_v13 = vpop.f32.mrf.mxu0  ;;  %v2372_v62 = vadd.f32 %v9272_v4, %v7575_v38 }
 0x295   : > { %v3051_v25 = vadd.f32 %v7533_v20, %v2943_v54  ;;  %v3052_v7 = vadd.f32 %v7533_v20, %v2944_v53  ;;  %v2946_v31 = vadd.f32 %v2818_v13, %v9273_v18  ;;  %vm3084_vm2 = vcmp.ge.f32.partialorder %v3048_v10, 0.0  ;;  %v9282_v18 = vld [vmem:[#allocation15_spill] sm:$0xff] }
 0x296   : > { %v7714_v2 = vpack.c.bf16 %v3206_v57, %v3203_v44  ;;  %v7716_v32 = vpack.c.bf16 %v3207_v63, %v3204_v56  ;;  %v3120_v43 = vmul.f32 0.01, %v3048_v10  ;;  %v2820_v12 = vpop.f32.mrf.mxu0  ;;  %vm3085_vm12 = vcmp.ge.f32.partialorder %v3049_v33, 0.0  ;;  %v9279_v57 = vld [vmem:[#allocation14_spill] sm:$0xff] }
 0x297   : > { %v3121_v42 = vmul.f32 0.01, %v3049_v33  ;;  %vm3087_vm13 = vcmp.ge.f32.partialorder %v3051_v25, 0.0  ;;  %v3123_v29 = vmul.f32 0.01, %v3051_v25  ;;  %4250 = vrot.lane.b32.xlu0 %v7675_v58, %s6556_s19  ;;  %vm3088_vm14 = vcmp.ge.f32.partialorder %v3052_v7, 0.0 }
 0x298   : > { %v3156_v38 = vsel %vm3084_vm2, %v3048_v10, %v3120_v43  ;;  %v3124_v27 = vmul.f32 0.01, %v3052_v7  ;;  %v3054_v20 = vadd.f32 %v7490_v30, %v2946_v31  ;;  %3560 = vrot.lane.b32.xlu1 %v7675_v58, %s6553_s16  ;;  %v2822_v46 = vpop.f32.mrf.mxu0  ;;  %v2661_v60 = vadd.f32 %v9274_v21, %v2372_v62  ;;  %v9281_v62 = vld [vmem:[#allocation36_spill] sm:$0xff] }
 0x299   : > { %v3157_v45 = vsel %vm3085_vm12, %v3049_v33, %v3121_v42  ;;  %v3159_v61 = vsel %vm3087_vm13, %v3051_v25, %v3123_v29  ;;  %v2947_v50 = vadd.f32 %v2820_v12, %v9275_v16  ;;  %v3209_v1 = vmul.f32 %v7519_v49, %v3156_v38  ;;  %v9280_v33 = vld [vmem:[#allocation13_spill] sm:$0xff] }
 0x29a   : > { %v3210_v44 = vmul.f32 %v7521_v39, %v3157_v45  ;;  %v3212_v48 = vmul.f32 %v7519_v49, %v3159_v61  ;;  %v3160_v24 = vsel %vm3088_vm14, %v3052_v7, %v3124_v27  ;;  %v2824_v52 = vpop.f32.mrf.mxu0  ;;  %v3126_v11 = vmul.f32 0.01, %v3054_v20  ;;  %v9283_v42 = vld [vmem:[#allocation37_spill] sm:$0xff]  ;;  %v9286_v61 = vld [vmem:[#allocation39_spill] sm:$0xff] }
 0x29b   : > { %v3213_v37 = vmul.f32 %v7521_v39, %v3160_v24  ;;  %v3055_v51 = vadd.f32 %v7490_v30, %v2947_v50  ;;  %v2949_v54 = vadd.f32 %v2822_v46, %v9276_v59  ;;  %3526 = vrot.lane.b32.xlu0 %v7681_v28, %s6553_s16  ;;  %v1800_v56 = vadd.f32 %v9277_v15, %v7551_v19 }
 0x29c   : > { %v7735_v22 = vpack.c.bf16 %v3212_v48, %v3209_v1  ;;  %vm3090_vm15 = vcmp.ge.f32.partialorder %v3054_v20, 0.0  ;;  %v2950_v23 = vadd.f32 %v2824_v52, %v2661_v60  ;;  %4012 = vrot.lane.b32.xlu1 %v7675_v58, %s6555_s18  ;;  %v2828_v53 = vpop.f32.mrf.mxu0  ;;  %v1806_v63 = vadd.f32 %v9279_v57, %v7554_v35  ;;  %v9284_v35 = vld [vmem:[#allocation35_spill] sm:$0xff]  ;;  %v9285_v60 = vld [vmem:[#allocation38_spill] sm:$0xff] }
 0x29d   : > { %v7741_v30 = vpack.c.bf16 %v3213_v37, %v3210_v44  ;;  %vm3091_vm0 = vcmp.ge.f32.partialorder %v3055_v51, 0.0  ;;  %v3127_v10 = vmul.f32 0.01, %v3055_v51  ;;  %v2089_v13 = vadd.f32 %v9280_v33, %v1800_v56 }
 0x29e   : > { %9278 = vst [vmem:[#allocation4_spill] sm:$0xff] %v7735_v22  ;;  %v3057_v4 = vadd.f32 %v7501_v5, %v2949_v54  ;;  %v3058_v19 = vadd.f32 %v7501_v5, %v2950_v23  ;;  %v2952_v25 = vadd.f32 %v2828_v53, %v9281_v62  ;;  %v2830_v7 = vpop.f32.mrf.mxu0  ;;  %v2095_v31 = vadd.f32 %v9282_v18, %v1806_v63  ;;  %v9287_v53 = vld [vmem:[#allocation40_spill] sm:$0xff] }
 0x29f   : > { %v3162_v43 = vsel %vm3090_vm15, %v3054_v20, %v3126_v11  ;;  %v3163_v12 = vsel %vm3091_vm0, %v3055_v51, %v3127_v10  ;;  %v2953_v29 = vadd.f32 %v2830_v7, %v9283_v42  ;;  %3352 = vrot.lane.b32.xlu0 %v7684_v6, %s6552_s15  ;;  %v2378_v38 = vadd.f32 %v9284_v35, %v2089_v13 }
 0x2a0   : > { %vm3093_vm1 = vcmp.ge.f32.partialorder %v3057_v4, 0.0  ;;  %v3129_v27 = vmul.f32 0.01, %v3057_v4  ;;  %vm3094_vm2 = vcmp.ge.f32.partialorder %v3058_v19, 0.0  ;;  %3324 = vrot.lane.b32.xlu1 %v7681_v28, %s6552_s15  ;;  %v2832_v5 = vpop.f32.mrf.mxu0  ;;  %v3130_v46 = vmul.f32 0.01, %v3058_v19 }
 0x2a1   : > { %v3060_v21 = vadd.f32 %v7472_v47, %v2952_v25  ;;  %v3061_v20 = vadd.f32 %v7472_v47, %v2953_v29  ;;  %v2955_v45 = vadd.f32 %v2832_v5, %v9285_v60  ;;  %v2667_v16 = vadd.f32 %v9286_v61, %v2378_v38 }
 0x2a2   : > { %v3215_v50 = vmul.f32 %v7519_v49, %v3162_v43  ;;  %v3216_v1 = vmul.f32 %v7521_v39, %v3163_v12  ;;  %v3165_v44 = vsel %vm3093_vm1, %v3057_v4, %v3129_v27  ;;  %v2834_v48 = vpop.f32.mrf.mxu0  ;;  %v3166_v52 = vsel %vm3094_vm2, %v3058_v19, %v3130_v46 }
 0x2a3   : > { %v3218_v24 = vmul.f32 %v7519_v49, %v3165_v44  ;;  %vm3096_vm12 = vcmp.ge.f32.partialorder %v3060_v21, 0.0  ;;  %v3132_v37 = vmul.f32 0.01, %v3060_v21  ;;  %3768 = vrot.lane.b32.xlu0 %v7684_v6, %s6554_s17  ;;  %v3219_v47 = vmul.f32 %v7521_v39, %v3166_v52 }
 0x2a4   : > { %vm3097_vm13 = vcmp.ge.f32.partialorder %v3061_v20, 0.0  ;;  %v3133_v11 = vmul.f32 0.01, %v3061_v20  ;;  %v3063_v51 = vadd.f32 %v7486_v14, %v2955_v45  ;;  %3740 = vrot.lane.b32.xlu1 %v7681_v28, %s6554_s17  ;;  %v2838_v59 = vpop.f32.mrf.mxu0  ;;  %v2956_v56 = vadd.f32 %v2834_v48, %v2667_v16 }
 0x2a5   : > { %v7767_v54 = vpack.c.bf16 %v3218_v24, %v3215_v50  ;;  %v3168_v15 = vsel %vm3096_vm12, %v3060_v21, %v3132_v37  ;;  %v2958_v23 = vadd.f32 %v2838_v59, %v7513_v34  ;;  %v2384_v57 = vadd.f32 %v9287_v53, %v2095_v31 }
 0x2a6   : > { %v7771_v63 = vpack.c.bf16 %v3219_v47, %v3216_v1  ;;  %vm3099_vm14 = vcmp.ge.f32.partialorder %v3063_v51, 0.0  ;;  %v2840_v10 = vpop.f32.mrf.mxu0  ;;  %v3135_v33 = vmul.f32 0.01, %v3063_v51  ;;  %v3064_v13 = vadd.f32 %v7486_v14, %v2956_v56 }
 0x2a7   : > { %v3066_v4 = vadd.f32 %v7460_v9, %v2958_v23  ;;  %3528 = vrot.lane.b32.xlu0 %v7694_v17, %s6553_s16  ;;  %v2673_v19 = vadd.f32 %v7547_v40, %v2384_v57  ;;  %v3221_v62 = vmul.f32 %v7519_v49, %v3168_v15  ;;  %v3169_v34 = vsel %vm3097_vm13, %v3061_v20, %v3133_v11 }
 0x2a8   : > { %v2959_v25 = vadd.f32 %v2840_v10, %v7515_v41  ;;  %3554 = vrot.lane.b32.xlu1 %v7684_v6, %s6553_s16  ;;  %v2842_v7 = vpop.f32.mrf.mxu0  ;;  %v3171_v18 = vsel %vm3099_vm14, %v3063_v51, %v3135_v33  ;;  %vm3100_vm15 = vcmp.ge.f32.partialorder %v3064_v13, 0.0  ;;  %v3136_v14 = vmul.f32 0.01, %v3064_v13 }
 0x2a9   : > { %vm3102_vm0 = vcmp.ge.f32.partialorder %v3066_v4, 0.0  ;;  %v3224_v31 = vmul.f32 %v7519_v49, %v3171_v18  ;;  %v3138_v43 = vmul.f32 0.01, %v3066_v4  ;;  %v2961_v40 = vadd.f32 %v2842_v7, %v7535_v55 }
 0x2aa   : > { %v3067_v12 = vadd.f32 %v7460_v9, %v2959_v25  ;;  %v2844_v42 = vpop.f32.mrf.mxu0  ;;  %v3222_v29 = vmul.f32 %v7521_v39, %v3169_v34  ;;  %v3172_v35 = vsel %vm3100_vm15, %v3064_v13, %v3136_v14  ;;  %vm3384_vm13 = vcmask 785408  }
 0x2ab   : > { %v2962_v41 = vadd.f32 %v2844_v42, %v2673_v19  ;;  %3330 = vrot.lane.b32.xlu0 %v7714_v2, %s6552_s15  ;;  %v7789_v38 = vpack.c.bf16 %v3224_v31, %v3221_v62  ;;  %v3225_v27 = vmul.f32 %v7521_v39, %v3172_v35  ;;  %v3174_v5 = vsel %vm3102_vm0, %v3066_v4, %v3138_v43 }
 0x2ac   : > { %vm3103_vm1 = vcmp.ge.f32.partialorder %v3067_v12, 0.0  ;;  %3326 = vrot.lane.b32.xlu1 %v7694_v17, %s6552_s15  ;;  %v3227_v9 = vmul.f32 %v7519_v49, %v3174_v5  ;;  %v3139_v55 = vmul.f32 0.01, %v3067_v12  ;;  %v3069_v46 = vadd.f32 %v7476_v8, %v2961_v40 }
 0x2ad   : > { %v3070_v21 = vadd.f32 %v7476_v8, %v2962_v41  ;;  %v7797_v20 = vpack.c.bf16 %v3225_v27, %v3222_v29 }
 0x2ae   : > { %v3175_v60 = vsel %vm3103_vm1, %v3067_v12, %v3139_v55  ;;  %vm3105_vm2 = vcmp.ge.f32.partialorder %v3069_v46, 0.0  ;;  %v3141_v45 = vmul.f32 0.01, %v3069_v46 }
 0x2af   : > { %vm3106_vm12 = vcmp.ge.f32.partialorder %v3070_v21, 0.0  ;;  %3532 = vrot.lane.b32.xlu0 %v7714_v2, %s6553_s16  ;;  %v3228_v61 = vmul.f32 %v7521_v39, %v3175_v60  ;;  %v3142_v16 = vmul.f32 0.01, %v3070_v21 }
 0x2b0   : > { %3742 = vrot.lane.b32.xlu1 %v7694_v17, %s6554_s17  ;;  %v3177_v50 = vsel %vm3105_vm2, %v3069_v46, %v3141_v45 }
 0x2b1   : > { %v3230_v1 = vmul.f32 %v7519_v49, %v3177_v50  ;;  %v3178_v44 = vsel %vm3106_vm12, %v3070_v21, %v3142_v16 }
 0x2b2   : > { %v3231_v8 = vmul.f32 %v7521_v39, %v3178_v44 }
 0x2b3   : > { %3332 = vrot.lane.b32.xlu0 %v7716_v32, %s6552_s15  ;;  %v7808_v48 = vpack.c.bf16 %v3230_v1, %v3227_v9 }
 0x2b4   : > { %3746 = vrot.lane.b32.xlu1 %v7714_v2, %s6554_s17  ;;  %v7812_v24 = vpack.c.bf16 %v3231_v8, %v3228_v61 }
 0x2b7   : > { %3534 = vrot.lane.b32.xlu0 %v7716_v32, %s6553_s16 }
 0x2b8   : > { %3748 = vrot.lane.b32.xlu1 %v7716_v32, %s6554_s17 }
 0x2bb   : > { %3538 = vrot.lane.b32.xlu0 %v7735_v22, %s6553_s16 }
 0x2bc   : > { %3336 = vrot.lane.b32.xlu1 %v7735_v22, %s6552_s15 }
 0x2bf   : > { %3540 = vrot.lane.b32.xlu0 %v7741_v30, %s6553_s16 }
 0x2c0   : > { %3752 = vrot.lane.b32.xlu1 %v7735_v22, %s6554_s17 }
 0x2c3   : > { %3342 = vrot.lane.b32.xlu0 %v7767_v54, %s6552_s15 }
 0x2c4   : > { %3338 = vrot.lane.b32.xlu1 %v7741_v30, %s6552_s15 }
 0x2c7   : > { %3544 = vrot.lane.b32.xlu0 %v7767_v54, %s6553_s16 }
 0x2c8   : > { %3754 = vrot.lane.b32.xlu1 %v7741_v30, %s6554_s17 }
 0x2cb   : > { %3344 = vrot.lane.b32.xlu0 %v7771_v63, %s6552_s15 }
 0x2cc   : > { %3758 = vrot.lane.b32.xlu1 %v7767_v54, %s6554_s17 }
 0x2cf   : > { %3546 = vrot.lane.b32.xlu0 %v7771_v63, %s6553_s16 }
 0x2d0   : > { %3760 = vrot.lane.b32.xlu1 %v7771_v63, %s6554_s17 }
 0x2d3   : > { %3550 = vrot.lane.b32.xlu0 %v7789_v38, %s6553_s16 }
 0x2d4   : > { %3348 = vrot.lane.b32.xlu1 %v7789_v38, %s6552_s15 }
 0x2d7   : > { %3552 = vrot.lane.b32.xlu0 %v7797_v20, %s6553_s16 }
 0x2d8   : > { %3764 = vrot.lane.b32.xlu1 %v7789_v38, %s6554_s17 }
 0x2db   : > { %3354 = vrot.lane.b32.xlu0 %v7808_v48, %s6552_s15 }
 0x2dc   : > { %3350 = vrot.lane.b32.xlu1 %v7797_v20, %s6552_s15 }
 0x2df   : > { %3556 = vrot.lane.b32.xlu0 %v7808_v48, %s6553_s16 }
 0x2e0   : > { %3766 = vrot.lane.b32.xlu1 %v7797_v20, %s6554_s17 }
 0x2e3   : > { %4008 = vrot.lane.b32.xlu0 %v7808_v48, %s6555_s18 }
 0x2e4   : > { %3770 = vrot.lane.b32.xlu1 %v7808_v48, %s6554_s17 }
 0x2e7   : > { %3356 = vrot.lane.b32.xlu0 %v7812_v24, %s6552_s15  ;;  %s8415_s15 = scalar_lea.vmem %s9192_s5, %s6409_s29 }
 0x2e8   : > { %4246 = vrot.lane.b32.xlu1 %v7808_v48, %s6556_s19 }
 0x2eb   : > { %4004 = vrot.lane.b32.xlu0 %v7797_v20, %s6555_s18 }
 0x2ec   : > { %4006 = vrot.lane.b32.xlu1 %v7684_v6, %s6555_s18 }
 0x2ed   : > { %v7870_v49 = vpop.permute.xlu0 %3750  ;;  %v7872_v39 = vpop.permute.xlu1 %3334 }
 0x2ee   : > { %9288 = vst [vmem:[#allocation6_spill] sm:$0xff] %v7870_v49 }
 0x2ef   : > { %4002 = vrot.lane.b32.xlu0 %v7789_v38, %s6555_s18 }
 0x2f0   : > { %4242 = vrot.lane.b32.xlu1 %v7797_v20, %s6556_s19 }
 0x2f1   : > { %v7878_v52 = vpop.permute.xlu0 %3328  ;;  %v7880_v37 = vpop.permute.xlu1 %3536 }
 0x2f3   : > { %4244 = vrot.lane.b32.xlu0 %v7684_v6, %s6556_s19 }
 0x2f4   : > { %4240 = vrot.lane.b32.xlu1 %v7789_v38, %s6556_s19 }
 0x2f5   : > { %v7886_v47 = vpop.permute.xlu0 %3744  ;;  %v7888_v11 = vpop.permute.xlu1 %3530 }
 0x2f6   : > { %9289 = vst [vmem:[#allocation3_spill] sm:$0xff] %v7886_v47  ;;  %9290 = vst [vmem:[#allocation8_spill] sm:$0xff] %v7888_v11 }
 0x2f7   : > { %3998 = vrot.lane.b32.xlu0 %v7771_v63, %s6555_s18 }
 0x2f8   : > { %4000 = vrot.lane.b32.xlu1 %v7639_v0, %s6555_s18 }
 0x2f9   : > { %v7894_v51 = vpop.permute.xlu0 %3762 }
 0x2fa   : > { %v7896_v59 = vpop.permute.xlu1 %3346 }
 0x2fb   : > { %3996 = vrot.lane.b32.xlu0 %v7767_v54, %s6555_s18 }
 0x2fc   : > { %4236 = vrot.lane.b32.xlu1 %v7771_v63, %s6556_s19 }
 0x2fd   : > { %v7902_v15 = vpop.permute.xlu0 %3340 }
 0x2fe   : > { %v7904_v56 = vpop.permute.xlu1 %3548 }
 0x2ff   : > { %4238 = vrot.lane.b32.xlu0 %v7639_v0, %s6556_s19 }
 0x300   : > { %4234 = vrot.lane.b32.xlu1 %v7767_v54, %s6556_s19 }
 0x301   : > { %v7910_v23 = vpop.permute.xlu0 %3756 }
 0x302   : > { %v7912_v53 = vpop.permute.xlu1 %3542 }
 0x303   : > { %3992 = vrot.lane.b32.xlu0 %v7741_v30, %s6555_s18 }
 0x304   : > { %3994 = vrot.lane.b32.xlu1 %v7644_v26, %s6555_s18 }
 0x305   : > { %v7918_v57 = vpop.permute.xlu0 %3774 }
 0x306   : > { %v7920_v10 = vpop.permute.xlu1 %3358 }
 0x307   : > { %3990 = vrot.lane.b32.xlu0 %v7735_v22, %s6555_s18 }
 0x308   : > { %4230 = vrot.lane.b32.xlu1 %v7741_v30, %s6556_s19 }
 0x309   : > { %v7926_v33 = vpop.permute.xlu0 %4250 }
 0x30a   : > { %9291 = vst [vmem:[#allocation5_spill] sm:$0xff] %v7926_v33  ;;  %v7928_v13 = vpop.permute.xlu1 %3560 }
 0x30b   : > { %4232 = vrot.lane.b32.xlu0 %v7644_v26, %s6556_s19 }
 0x30c   : > { %4228 = vrot.lane.b32.xlu1 %v7735_v22, %s6556_s19 }
 0x30d   : > { %v7934_v4 = vpop.permute.xlu0 %3526 }
 0x30e   : > { %9292 = vst [vmem:[#allocation7_spill] sm:$0xff] %v7934_v4  ;;  %v7936_v19 = vpop.permute.xlu1 %4012 }
 0x30f   : > { %9293 = vst [vmem:[#allocation10_spill] sm:$0xff] %v7936_v19  ;;  %3986 = vrot.lane.b32.xlu0 %v7716_v32, %s6555_s18 }
 0x310   : > { %3988 = vrot.lane.b32.xlu1 %v7610_v36, %s6555_s18 }
 0x311   : > { %v7942_v62 = vpop.permute.xlu0 %3352 }
 0x312   : > { %v7944_v34 = vpop.permute.xlu1 %3324 }
 0x313   : > { %3558 = vrot.lane.b32.xlu0 %v7812_v24, %s6553_s16 }
 0x314   : > { %3772 = vrot.lane.b32.xlu1 %v7812_v24, %s6554_s17 }
 0x315   : > { %v7950_v25 = vpop.permute.xlu0 %3768 }
 0x316   : > { %v7952_v7 = vpop.permute.xlu1 %3740 }
 0x317   : > { %9294 = vst [vmem:[#allocation16_spill] sm:$0xff] %v7952_v7  ;;  %3984 = vrot.lane.b32.xlu0 %v7714_v2, %s6555_s18 }
 0x318   : > { %4224 = vrot.lane.b32.xlu1 %v7716_v32, %s6556_s19 }
 0x319   : > { %v7958_v18 = vpop.permute.xlu0 %3528 }
 0x31a   : > { %9295 = vst [vmem:[#allocation9_spill] sm:$0xff] %v7958_v18  ;;  %v7960_v14 = vpop.permute.xlu1 %3554 }
 0x31b   : > { %4226 = vrot.lane.b32.xlu0 %v7610_v36, %s6556_s19 }
 0x31c   : > { %4222 = vrot.lane.b32.xlu1 %v7714_v2, %s6556_s19 }
 0x31d   : > { %v7966_v31 = vpop.permute.xlu0 %3330 }
 0x31e   : > { %v7968_v43 = vpop.permute.xlu1 %3326 }
 0x31f   : > { %3980 = vrot.lane.b32.xlu0 %v7694_v17, %s6555_s18 }
 0x320   : > { %3982 = vrot.lane.b32.xlu1 %v7618_v3, %s6555_s18 }
 0x321   : > { %v7974_v12 = vpop.permute.xlu0 %3532 }
 0x322   : > { %9296 = vst [vmem:[#allocation11_spill] sm:$0xff] %v7974_v12  ;;  %v7976_v40 = vpop.permute.xlu1 %3742 }
 0x323   : > { %9297 = vst [vmem:[#allocation17_spill] sm:$0xff] %v7976_v40  ;;  %3978 = vrot.lane.b32.xlu0 %v7681_v28, %s6555_s18 }
 0x324   : > { %4218 = vrot.lane.b32.xlu1 %v7694_v17, %s6556_s19 }
 0x325   : > { %v7982_v42 = vpop.permute.xlu0 %3332 }
 0x326   : > { %v7984_v29 = vpop.permute.xlu1 %3746 }
 0x327   : > { %9298 = vst [vmem:[#allocation18_spill] sm:$0xff] %v7984_v29  ;;  %4220 = vrot.lane.b32.xlu0 %v7618_v3, %s6556_s19 }
 0x328   : > { %4216 = vrot.lane.b32.xlu1 %v7681_v28, %s6556_s19 }
 0x329   : > { %v7990_v35 = vpop.permute.xlu0 %3534 }
 0x32a   : > { %v7992_v41 = vpop.permute.xlu1 %3748 }
 0x32b   : > { %9299 = vst [vmem:[#allocation19_spill] sm:$0xff] %v7992_v41  ;;  %4484 = vrot.lane.b32.xlu0 %v7808_v48, %s6557_s20 }
 0x32c   : > { %4488 = vrot.lane.b32.xlu1 %v7675_v58, %s6557_s20 }
 0x32d   : > { %v7998_v27 = vpop.permute.xlu0 %3538 }
 0x32e   : > { %v8000_v5 = vpop.permute.xlu1 %3336 }
 0x32f   : > { %4726 = vrot.lane.b32.xlu0 %v7675_v58, %s6558_s24 }
 0x330   : > { %4722 = vrot.lane.b32.xlu1 %v7808_v48, %s6558_s24 }
 0x331   : > { %v8006_v9 = vpop.permute.xlu0 %3540 }
 0x332   : > { %v8008_v55 = vpop.permute.xlu1 %3752 }
 0x333   : > { %4480 = vrot.lane.b32.xlu0 %v7797_v20, %s6557_s20 }
 0x334   : > { %4482 = vrot.lane.b32.xlu1 %v7684_v6, %s6557_s20 }
 0x335   : > { %v3343_v46 = vpop.permute.xlu0 %3342 }
 0x336   : > { %v8014_v21 = vpop.permute.xlu1 %3338 }
 0x337   : > { %4478 = vrot.lane.b32.xlu0 %v7789_v38, %s6557_s20 }
 0x338   : > { %4718 = vrot.lane.b32.xlu1 %v7797_v20, %s6558_s24 }
 0x339   : > { %v8020_v60 = vpop.permute.xlu0 %3544 }
 0x33a   : > { %v8022_v45 = vpop.permute.xlu1 %3754 }
 0x33b   : > { %4720 = vrot.lane.b32.xlu0 %v7684_v6, %s6558_s24 }
 0x33c   : > { %4716 = vrot.lane.b32.xlu1 %v7789_v38, %s6558_s24 }
 0x33d   : > { %v3345_v61 = vpop.permute.xlu0 %3344 }
 0x33e   : > { %v8028_v16 = vpop.permute.xlu1 %3758 }
 0x33f   : > { %4474 = vrot.lane.b32.xlu0 %v7771_v63, %s6557_s20 }
 0x340   : > { %4476 = vrot.lane.b32.xlu1 %v7639_v0, %s6557_s20 }
 0x341   : > { %v8034_v50 = vpop.permute.xlu0 %3546 }
 0x342   : > { %v8036_v1 = vpop.permute.xlu1 %3760 }
 0x343   : > { %4010 = vrot.lane.b32.xlu0 %v7812_v24, %s6555_s18  ;;  %s407_s18 = scalar_lea.vmem %s9194_s7, %s9338_s28 }
 0x344   : > { %4248 = vrot.lane.b32.xlu1 %v7812_v24, %s6556_s19 }
 0x345   : > { %v8042_v44 = vpop.permute.xlu0 %3550 }
 0x346   : > { %v3349_v8 = vpop.permute.xlu1 %3348 }
 0x347   : > { %4472 = vrot.lane.b32.xlu0 %v7767_v54, %s6557_s20 }
 0x348   : > { %4712 = vrot.lane.b32.xlu1 %v7771_v63, %s6558_s24 }
 0x349   : > { %v8048_v33 = vpop.permute.xlu0 %3552 }
 0x34a   : > { %v8050_v19 = vpop.permute.xlu1 %3764 }
 0x34b   : > { %4714 = vrot.lane.b32.xlu0 %v7639_v0, %s6558_s24 }
 0x34c   : > { %4710 = vrot.lane.b32.xlu1 %v7767_v54, %s6558_s24 }
 0x34d   : > { %v3355_v7 = vpop.permute.xlu0 %3354 }
 0x34e   : > { %v3351_v4 = vpop.permute.xlu1 %3350 }
 0x34f   : > { %4468 = vrot.lane.b32.xlu0 %v7741_v30, %s6557_s20 }
 0x350   : > { %4470 = vrot.lane.b32.xlu1 %v7644_v26, %s6557_s20 }
 0x351   : > { %v8060_v40 = vpop.permute.xlu0 %3556 }
 0x352   : > { %v8062_v47 = vpop.permute.xlu1 %3766 }
 0x353   : > { %4466 = vrot.lane.b32.xlu0 %v7735_v22, %s6557_s20 }
 0x354   : > { %4706 = vrot.lane.b32.xlu1 %v7741_v30, %s6558_s24 }
 0x355   : > { %v8068_v18 = vpop.permute.xlu0 %4008 }
 0x356   : > { %9300 = vst [vmem:[#allocation20_spill] sm:$0xff] %v8068_v18  ;;  %v8070_v11 = vpop.permute.xlu1 %3770  ;;  %v3369_v18 = vsel %vm492_vm3, %v3351_v4, %v7942_v62 }
 0x357   : > { %4708 = vrot.lane.b32.xlu0 %v7644_v26, %s6558_s24 }
 0x358   : > { %4704 = vrot.lane.b32.xlu1 %v7735_v22, %s6558_s24 }
 0x359   : > { %v3357_v29 = vpop.permute.xlu0 %3356 }
 0x35a   : > { %v8076_v12 = vpop.permute.xlu1 %4246  ;;  %v3371_v41 = vsel %vm492_vm3, %v3357_v29, %v7920_v10  ;;  %v3370_v49 = vsel %vm492_vm3, %v3355_v7, %v3357_v29  ;;  %v3368_v10 = vsel %vm492_vm3, %v3349_v8, %v3351_v4  ;;  %v3365_v4 = vsel %vm492_vm3, %v8014_v21, %v7902_v15 }
 0x35b   : > { %9301 = vst [vmem:[#allocation21_spill] sm:$0xff] %v8076_v12  ;;  %4462 = vrot.lane.b32.xlu0 %v7716_v32, %s6557_s20  ;;  %3407 = vmatprep.subr.bf16.mxu1 %v3371_v41  ;;  %v3364_v41 = vsel %vm492_vm3, %v8000_v5, %v8014_v21  ;;  %v3363_v15 = vsel %vm492_vm3, %v7982_v42, %v7872_v39 }
 0x35c   : > { %4464 = vrot.lane.b32.xlu1 %v7610_v36, %s6557_s20  ;;  %3408 = vmatpush1.bf16.msra.mxu1 %v3370_v49  ;;  %v3367_v49 = vsel %vm492_vm3, %v3345_v61, %v7896_v59  ;;  %v3362_v5 = vsel %vm492_vm3, %v7966_v31, %v7982_v42  ;;  %v3361_v39 = vsel %vm492_vm3, %v7968_v43, %v7878_v52  ;;  %v6488_v42 = vld [vmem:[%s6689_s23 + $0x30] sm:$0xff]  }
 0x35d   : > { %3409 = vmatprep.subr.bf16.mxu1 %v3369_v18  ;;  %v8087_v22 = vpop.permute.xlu0 %4004  ;;  %v3366_v18 = vsel %vm492_vm3, %v3343_v46, %v3345_v61  ;;  %v3360_v31 = vsel %vm492_vm3, %v7944_v34, %v7968_v43 }
 0x35e   : > { %v8089_v12 = vpop.permute.xlu1 %4006 }
 0x35f   : > { %4460 = vrot.lane.b32.xlu0 %v7714_v2, %s6557_s20 }
 0x360   : > { %4700 = vrot.lane.b32.xlu1 %v7716_v32, %s6558_s24  ;;  %3410 = vmatpush1.bf16.msra.mxu1 %v3368_v10 }
 0x361   : > { %3411 = vmatprep.subr.bf16.mxu1 %v3367_v49  ;;  %v8098_v7 = vpop.permute.xlu0 %4002  ;;  %v9302_v49 = vmov 0  }
 0x362   : > { %v8100_v62 = vpop.permute.xlu1 %4242 }
 0x363   : > { %4702 = vrot.lane.b32.xlu0 %v7610_v36, %s6558_s24 }
 0x364   : > { %4698 = vrot.lane.b32.xlu1 %v7714_v2, %s6558_s24  ;;  %3412 = vmatpush1.bf16.msra.mxu1 %v3366_v18  ;;  %v6489_v18 = vld [vmem:[%s6689_s23 + $0x38] sm:$0xff]  }
 0x365   : > { %3413 = vmatprep.subr.bf16.mxu1 %v3365_v4  ;;  %v8110_v59 = vpop.permute.xlu0 %4244 }
 0x366   : > { %v8112_v29 = vpop.permute.xlu1 %4240 }
 0x367   : > { %4456 = vrot.lane.b32.xlu0 %v7694_v17, %s6557_s20 }
 0x368   : > { %4458 = vrot.lane.b32.xlu1 %v7618_v3, %s6557_s20  ;;  %3414 = vmatpush1.bf16.msra.mxu1 %v3364_v41 }
 0x369   : > { %3415 = vmatprep.subr.bf16.mxu1 %v3363_v15  ;;  %v8124_v46 = vpop.permute.xlu0 %3998 }
 0x36a   : > { %v8126_v61 = vpop.permute.xlu1 %4000 }
 0x36b   : > { %4454 = vrot.lane.b32.xlu0 %v7681_v28, %s6557_s20 }
 0x36c   : > { %4694 = vrot.lane.b32.xlu1 %v7694_v17, %s6558_s24  ;;  %3416 = vmatpush1.bf16.msra.mxu1 %v3362_v5 }
 0x36d   : > { %3417 = vmatprep.subr.bf16.mxu1 %v3361_v39  ;;  %v8138_v21 = vpop.permute.xlu0 %3996  ;;  %v6490_v39 = vld [vmem:[%s6689_s23 + $0x40] sm:$0xff]  }
 0x36e   : > { %v8140_v8 = vpop.permute.xlu1 %4236 }
 0x36f   : > { %4696 = vrot.lane.b32.xlu0 %v7618_v3, %s6558_s24 }
 0x370   : > { %4692 = vrot.lane.b32.xlu1 %v7681_v28, %s6558_s24  ;;  %3418 = vmatpush1.bf16.msra.mxu1 %v3360_v31 }
 0x371   : > { %v8150_v52 = vpop.permute.xlu0 %4238 }
 0x372   : > { %v8152_v10 = vpop.permute.xlu1 %4234 }
 0x373   : > { %4486 = vrot.lane.b32.xlu0 %v7812_v24, %s6557_s20  ;;  %6027 = vmatmul.mubr.msk.bf16.vlgmr.msra.gmra.mxu1 %vm3384_vm13, %v6488_v42 }
 0x374   : > { %4724 = vrot.lane.b32.xlu1 %v7812_v24, %s6558_s24  ;;  %3445 = vmatprep.mubr.bf16.mxu1 %v9302_v49 }
 0x375   : > { %v8160_v34 = vpop.permute.xlu0 %3992 }
 0x376   : > { %v8162_v43 = vpop.permute.xlu1 %3994 }
 0x377   : > { %4960 = vrot.lane.b32.xlu0 %v7808_v48, %s6559_s25 }
 0x378   : > { %4964 = vrot.lane.b32.xlu1 %v7675_v58, %s6559_s25 }
 0x379   : > { %v8169_v4 = vpop.permute.xlu0 %3990 }
 0x37a   : > { %v8171_v41 = vpop.permute.xlu1 %4230 }
 0x37b   : > { %5202 = vrot.lane.b32.xlu0 %v7675_v58, %s6561_s26  ;;  %6028 = vmatmul.mubr.msk.bf16.gmra.mxu1 %vm3384_vm13, %v6489_v18 }
 0x37c   : > { %5198 = vrot.lane.b32.xlu1 %v7808_v48, %s6561_s26  ;;  %3455 = vmatprep.mubr.bf16.mxu1 %v9302_v49 }
 0x37d   : > { %v8179_v15 = vpop.permute.xlu0 %4232 }
 0x37e   : > { %v8181_v5 = vpop.permute.xlu1 %4228 }
 0x37f   : > { %4956 = vrot.lane.b32.xlu0 %v7797_v20, %s6559_s25 }
 0x380   : > { %4958 = vrot.lane.b32.xlu1 %v7684_v6, %s6559_s25 }
 0x381   : > { %v8188_v58 = vpop.permute.xlu0 %3986 }
 0x382   : > { %9303 = vst [vmem:[#allocation22_spill] sm:$0xff] %v8188_v58  ;;  %v8190_v31 = vpop.permute.xlu1 %3988 }
 0x383   : > { %9304 = vst [vmem:[#allocation23_spill] sm:$0xff] %v8190_v31  ;;  %4954 = vrot.lane.b32.xlu0 %v7789_v38, %s6559_s25  ;;  %6029 = vmatmul.mubr.msk.bf16.gmra.mxu1 %vm3384_vm13, %v6490_v39  ;;  %v6491_v39 = vld [vmem:[%s6689_s23 + $0x48] sm:$0xff]  }
 0x384   : > { %5194 = vrot.lane.b32.xlu1 %v7797_v20, %s6561_s26  ;;  %3465 = vmatprep.mubr.bf16.mxu1 %v9302_v49 }
 0x385   : > { %v3559_v48 = vpop.permute.xlu0 %3558 }
 0x386   : > { %v3773_v42 = vpop.permute.xlu1 %3772  ;;  %v3573_v18 = vsel %vm737_vm4, %v3559_v48, %v7928_v13  ;;  %v3572_v58 = vsel %vm737_vm4, %v8060_v40, %v3559_v48  ;;  %v3571_v13 = vsel %vm737_vm4, %v8048_v33, %v7960_v14  ;;  %v3783_v14 = vsel %vm990_vm6, %v8036_v1, %v7894_v51  ;;  %v9309_v48 = vld [vmem:[#allocation8_spill] sm:$0xff] }
 0x387   : > { %v3786_v31 = vsel %vm990_vm6, %v8070_v11, %v3773_v42  ;;  %5196 = vrot.lane.b32.xlu0 %v7684_v6, %s6561_s26  ;;  %3608 = vmatprep.subr.bf16.mxu0 %v3573_v18  ;;  %v3787_v20 = vsel %vm990_vm6, %v3773_v42, %v7918_v57  ;;  %v3785_v11 = vsel %vm990_vm6, %v8062_v47, %v7950_v25  ;;  %v9310_v42 = vld [vmem:[#allocation9_spill] sm:$0xff] }
 0x388   : > { %5192 = vrot.lane.b32.xlu1 %v7789_v38, %s6561_s26  ;;  %3822 = vmatprep.subr.bf16.mxu1 %v3787_v20  ;;  %v3570_v38 = vsel %vm737_vm4, %v8042_v44, %v8048_v33  ;;  %v3784_v57 = vsel %vm990_vm6, %v8050_v19, %v8062_v47  ;;  %v3569_v25 = vsel %vm737_vm4, %v8034_v50, %v7904_v56  ;;  %v6492_v47 = vld [vmem:[%s6689_s23 + $0x50] sm:$0xff]   ;;  %v9311_v20 = vld [vmem:[#allocation3_spill] sm:$0xff] }
 0x389   : > { %3609 = vmatpush1.bf16.msra.mxu0 %v3572_v58  ;;  %3823 = vmatpush1.bf16.msra.mxu1 %v3786_v31  ;;  %v8217_v6 = vpop.permute.xlu0 %3984  ;;  %v3568_v56 = vsel %vm737_vm4, %v8020_v60, %v8034_v50  ;;  %v3782_v51 = vsel %vm990_vm6, %v8028_v16, %v8036_v1  ;;  %v3567_v33 = vsel %vm737_vm4, %v8006_v9, %v7912_v53  ;;  %v9305_v60 = vld [vmem:[#allocation6_spill] sm:$0xff]  ;;  %v9306_v16 = vld [vmem:[#allocation19_spill] sm:$0xff] }
 0x38a   : > { %v8219_v40 = vpop.permute.xlu1 %4224  ;;  %3610 = vmatprep.subr.bf16.mxu0 %v3571_v13  ;;  %3824 = vmatprep.subr.bf16.mxu1 %v3785_v11  ;;  %v3781_v19 = vsel %vm990_vm6, %v8022_v45, %v7910_v23  ;;  %v3566_v53 = vsel %vm737_vm4, %v7998_v27, %v8006_v9  ;;  %v3780_v23 = vsel %vm990_vm6, %v8008_v55, %v8022_v45  ;;  %v6493_v27 = vld [vmem:[%s6689_s23 + $0x58] sm:$0xff]   ;;  %v9307_v9 = vld [vmem:[#allocation11_spill] sm:$0xff]  ;;  %v9308_v55 = vld [vmem:[#allocation18_spill] sm:$0xff] }
 0x38b   : > { %4950 = vrot.lane.b32.xlu0 %v7771_v63, %s6559_s25  ;;  %6030 = vmatmul.mubr.msk.bf16.gmra.mxu1 %vm3384_vm13, %v6491_v39  ;;  %v3778_v45 = vsel %vm990_vm6, %v9308_v55, %v9306_v16  ;;  %v3563_v18 = vsel %vm737_vm4, %v9310_v42, %v9309_v48  ;;  %v9312_v39 = vld [vmem:[#allocation17_spill] sm:$0xff] }
 0x38c   : > { %4952 = vrot.lane.b32.xlu1 %v7639_v0, %s6559_s25  ;;  %3475 = vmatprep.mubr.bf16.mxu1 %v9302_v49  ;;  %v3777_v13 = vsel %vm990_vm6, %v9312_v39, %v9311_v20 }
 0x38d   : > { %3611 = vmatpush1.bf16.msra.mxu0 %v3570_v38  ;;  %3825 = vmatpush1.bf16.msra.mxu1 %v3784_v57  ;;  %v8239_v58 = vpop.permute.xlu0 %4226  ;;  %v9314_v57 = vld [vmem:[#allocation7_spill] sm:$0xff] }
 0x38e   : > { %v8241_v31 = vpop.permute.xlu1 %4222  ;;  %3612 = vmatprep.subr.bf16.mxu0 %v3569_v25  ;;  %3826 = vmatprep.subr.bf16.mxu1 %v3783_v14  ;;  %v3562_v25 = vsel %vm737_vm4, %v9314_v57, %v9310_v42  ;;  %v9315_v14 = vld [vmem:[#allocation16_spill] sm:$0xff] }
 0x38f   : > { %4948 = vrot.lane.b32.xlu0 %v7767_v54, %s6559_s25 }
 0x390   : > { %5188 = vrot.lane.b32.xlu1 %v7771_v63, %s6561_s26 }
 0x391   : > { %3613 = vmatpush1.bf16.msra.mxu0 %v3568_v56  ;;  %3827 = vmatpush1.bf16.msra.mxu1 %v3782_v51  ;;  %v8260_v44 = vpop.permute.xlu0 %3980  ;;  %v6494_v56 = vld [vmem:[%s6689_s23] sm:$0xff]  }
 0x392   : > { %v8262_v63 = vpop.permute.xlu1 %3982  ;;  %3614 = vmatprep.subr.bf16.mxu0 %v3567_v33  ;;  %3828 = vmatprep.subr.bf16.mxu1 %v3781_v19 }
 0x393   : > { %5190 = vrot.lane.b32.xlu0 %v7639_v0, %s6561_s26  ;;  %6031 = vmatmul.mubr.msk.bf16.gmra.mxu1 %vm3384_vm13, %v6492_v47  ;;  %v3565_v0 = vsel %vm737_vm4, %v7990_v35, %v7880_v37  ;;  %v3564_v37 = vsel %vm737_vm4, %v9307_v9, %v7990_v35  ;;  %v9313_v35 = vld [vmem:[#allocation4_spill] sm:$0xff]  ;;  %v3776_v47 = vsel %vm990_vm6, %v9315_v14, %v9312_v39  ;;  %v9317_v39 = vld [vmem:[#allocation21_spill] sm:$0xff] }
 0x394   : > { %5186 = vrot.lane.b32.xlu1 %v7767_v54, %s6561_s26  ;;  %3485 = vmatprep.mubr.bf16.mxu1 %v9302_v49  ;;  %v3779_v54 = vsel %vm990_vm6, %v9306_v16, %v9305_v60  ;;  %v6497_v60 = vld [vmem:[%s6689_s23 + $0x68] sm:$0xff]   ;;  %v6498_v9 = vld [vmem:[%s6689_s23 + $0x10] sm:$0xff]  }
 0x395   : > { %3615 = vmatpush1.bf16.msra.mxu0 %v3566_v53  ;;  %3829 = vmatpush1.bf16.msra.mxu1 %v3780_v23  ;;  %v8282_v50 = vpop.permute.xlu0 %3978 }
 0x396   : > { %v8284_v1 = vpop.permute.xlu1 %4218  ;;  %3616 = vmatprep.subr.bf16.mxu0 %v3565_v0  ;;  %3830 = vmatprep.subr.bf16.mxu1 %v3779_v54 }
 0x397   : > { %4944 = vrot.lane.b32.xlu0 %v7741_v30, %s6559_s25 }
 0x398   : > { %4946 = vrot.lane.b32.xlu1 %v7644_v26, %s6559_s25 }
 0x399   : > { %3617 = vmatpush1.bf16.msra.mxu0 %v3564_v37  ;;  %3831 = vmatpush1.bf16.msra.mxu1 %v3778_v45  ;;  %v8303_v11 = vpop.permute.xlu0 %4220  ;;  %v6499_v45 = vld [vmem:[%s6689_s23 + $0x70] sm:$0xff]  }
 0x39a   : > { %v8305_v38 = vpop.permute.xlu1 %4216  ;;  %3618 = vmatprep.subr.bf16.mxu0 %v3563_v18  ;;  %3832 = vmatprep.subr.bf16.mxu1 %v3777_v13  ;;  %v9316_v18 = vld [vmem:[#allocation10_spill] sm:$0xff] }
 0x39b   : > { %4942 = vrot.lane.b32.xlu0 %v9313_v35, %s6559_s25  ;;  %6032 = vmatmul.mubr.msk.bf16.gmra.mxu1 %vm3384_vm13, %v6493_v27 }
 0x39c   : > { %5182 = vrot.lane.b32.xlu1 %v7741_v30, %s6561_s26  ;;  %3850 = vmatprep.mubr.bf16.mxu1 %v9302_v49  ;;  %v6495_v30 = vld [vmem:[%s6689_s23 + $0x60] sm:$0xff]  }
 0x39d   : > { %3619 = vmatpush1.bf16.msra.mxu0 %v3562_v25  ;;  %3833 = vmatpush1.bf16.msra.mxu1 %v3776_v47  ;;  %v8320_v51 = vpop.permute.xlu0 %4484  ;;  %v9319_v25 = vld [vmem:[#allocation5_spill] sm:$0xff] }
 0x39e   : > { %v8322_v33 = vpop.permute.xlu1 %4488  ;;  %v6501_v47 = vld [vmem:[%s6689_s23 + $0x78] sm:$0xff]  }
 0x39f   : > { %5184 = vrot.lane.b32.xlu0 %v7644_v26, %s6561_s26  ;;  %v6496_v26 = vld [vmem:[%s6689_s23 + $0x8] sm:$0xff]  }
 0x3a0   : > { %5180 = vrot.lane.b32.xlu1 %v9313_v35, %s6561_s26  ;;  %6039 = vmatmul.mubr.msk.bf16.vlgmr.msra.gmra.mxu0 %vm3384_vm13, %v6494_v56  ;;  %v9318_v35 = vld [vmem:[#allocation20_spill] sm:$0xff]  ;;  %v4261_v56 = vsel %vm1568_vm7, %v8100_v62, %v8110_v59  ;;  %v4259_v59 = vsel %vm1568_vm7, %v8140_v8, %v8150_v52  ;;  %v4258_v52 = vsel %vm1568_vm7, %v8152_v10, %v8140_v8 }
 0x3a1   : > { %v8330_v19 = vpop.permute.xlu0 %4726  ;;  %3646 = vmatprep.mubr.bf16.mxu0 %v9302_v49  ;;  %v4018_v10 = vsel %vm1279_vm5, %v8169_v4, %v8160_v34  ;;  %v6505_v4 = vld [vmem:[%s6689_s23 + $0x88] sm:$0xff]  }
 0x3a2   : > { %v8333_v53 = vpop.permute.xlu1 %4722 }
 0x3a3   : > { %4962 = vrot.lane.b32.xlu0 %v7812_v24, %s6559_s25  ;;  %6063 = vmatmul.mubr.msk.bf16.vlgmr.msra.gmra.mxu1 %vm3384_vm13, %v6495_v30 }
 0x3a4   : > { %5200 = vrot.lane.b32.xlu1 %v7812_v24, %s6561_s26  ;;  %3860 = vmatprep.mubr.bf16.mxu1 %v9302_v49 }
 0x3a5   : > { %v4481_v23 = vpop.permute.xlu0 %4480 }
 0x3a6   : > { %v4483_v0 = vpop.permute.xlu1 %4482 }
 0x3a7   : > { %4938 = vrot.lane.b32.xlu0 %v7716_v32, %s6559_s25  ;;  %v8346_v16 = vsel %vm1857_vm8, %v4481_v23, %v4483_v0 }
 0x3a8   : > { %4940 = vrot.lane.b32.xlu1 %v7610_v36, %s6559_s25  ;;  %6040 = vmatmul.mubr.msk.bf16.gmra.mxu0 %vm3384_vm13, %v6496_v26 }
 0x3a9   : > { %v4479_v24 = vpop.permute.xlu0 %4478  ;;  %3656 = vmatprep.mubr.bf16.mxu0 %v9302_v49 }
 0x3aa   : > { %v8352_v54 = vpop.permute.xlu1 %4718  ;;  %v8355_v27 = vsel %vm1857_vm8, %v4479_v24, %v4481_v23  ;;  %v4023_v23 = vsel %vm1279_vm5, %v8087_v22, %v8089_v12  ;;  %v4022_v12 = vsel %vm1279_vm5, %v8098_v7, %v8087_v22  ;;  %v4021_v22 = vsel %vm1279_vm5, %v8124_v46, %v8126_v61  ;;  %v6503_v7 = vld [vmem:[%s6689_s23 + $0x80] sm:$0xff]  }
 0x3ab   : > { %6064 = vmatmul.mubr.msk.bf16.gmra.mxu1 %vm3384_vm13, %v6497_v60  ;;  %4936 = vrot.lane.b32.xlu0 %v7714_v2, %s6559_s25  ;;  %v4020_v60 = vsel %vm1279_vm5, %v8138_v21, %v8124_v46  ;;  %v4257_v61 = vsel %vm1568_vm7, %v8171_v41, %v8179_v15  ;;  %v4019_v46 = vsel %vm1279_vm5, %v8160_v34, %v8162_v43 }
 0x3ac   : > { %5176 = vrot.lane.b32.xlu1 %v7716_v32, %s6561_s26  ;;  %3870 = vmatprep.mubr.bf16.mxu1 %v9302_v49  ;;  %v4256_v21 = vsel %vm1568_vm7, %v8181_v5, %v8171_v41  ;;  %v4255_v43 = vsel %vm1568_vm7, %v8219_v40, %v8239_v58  ;;  %v9320_v5 = vld [vmem:[#allocation23_spill] sm:$0xff]  ;;  %v4254_v58 = vsel %vm1568_vm7, %v8241_v31, %v8219_v40 }
 0x3ad   : > { %v8364_v37 = vpop.permute.xlu0 %4720  ;;  %v4252_v31 = vsel %vm1568_vm7, %v8305_v38, %v8284_v1  ;;  %v5363_v38 = vld [vmem:[%s8415_s15] sm:$0xff] }
 0x3ae   : > { %v8366_v55 = vpop.permute.xlu1 %4716 }
 0x3af   : > { %5178 = vrot.lane.b32.xlu0 %v7610_v36, %s6561_s26 }
 0x3b0   : > { %5174 = vrot.lane.b32.xlu1 %v7714_v2, %s6561_s26  ;;  %6041 = vmatmul.mubr.msk.bf16.gmra.mxu0 %vm3384_vm13, %v6498_v9  ;;  %v6500_v2 = vld [vmem:[%s6689_s23 + $0x18] sm:$0xff]   ;;  %v5372_v9 = vld [vmem:[%s8415_s15 + $0x48] sm:$0xff] }
 0x3b1   : > { %v8374_v48 = vpop.permute.xlu0 %4474  ;;  %3666 = vmatprep.mubr.bf16.mxu0 %v9302_v49 }
 0x3b2   : > { %v8377_v32 = vpop.permute.xlu1 %4476 }
 0x3b3   : > { %6065 = vmatmul.mubr.msk.bf16.gmra.mxu1 %vm3384_vm13, %v6499_v45  ;;  %4932 = vrot.lane.b32.xlu0 %v7694_v17, %s6559_s25  ;;  %v5371_v45 = vld [vmem:[%s8415_s15 + $0x40] sm:$0xff] }
 0x3b4   : > { %4934 = vrot.lane.b32.xlu1 %v7618_v3, %s6559_s25  ;;  %3880 = vmatprep.mubr.bf16.mxu1 %v9302_v49 }
 0x3b5   : > { %v4011_v36 = vpop.permute.xlu0 %4010 }
 0x3b6   : > { %v4249_v42 = vpop.permute.xlu1 %4248  ;;  %v4025_v20 = vsel %vm1279_vm5, %v4011_v36, %v9316_v18  ;;  %v4024_v57 = vsel %vm1279_vm5, %v9318_v35, %v4011_v36  ;;  %v5370_v36 = vld [vmem:[%s8415_s15 + $0x38] sm:$0xff]  ;;  %v9321_v18 = vld [vmem:[#allocation22_spill] sm:$0xff]  ;;  %v5368_v35 = vld [vmem:[%s8415_s15 + $0x28] sm:$0xff] }
 0x3b7   : > { %v4262_v13 = vsel %vm1568_vm7, %v9317_v39, %v4249_v42  ;;  %v4263_v14 = vsel %vm1568_vm7, %v4249_v42, %v9319_v25  ;;  %4930 = vrot.lane.b32.xlu0 %v7681_v28, %s6559_s25  ;;  %4060 = vmatprep.subr.bf16.mxu0 %v4025_v20  ;;  %v6504_v42 = vld [vmem:[%s6689_s23 + $0x28] sm:$0xff]   ;;  %v4017_v34 = vsel %vm1279_vm5, %v9321_v18, %v9320_v5  ;;  %v6513_v5 = vld [vmem:[%s6689_s23 + $0xd8] sm:$0xff]   ;;  %s411_s25 = scalar_lea.vmem %s9195_s8, %s5750_s22 }
 0x3b8   : > { %5170 = vrot.lane.b32.xlu1 %v7694_v17, %s6561_s26  ;;  %4298 = vmatprep.subr.bf16.mxu1 %v4263_v14  ;;  %v4260_v17 = vsel %vm1568_vm7, %v8112_v29, %v8100_v62  ;;  %v5374_v62 = vld [vmem:[%s8415_s15 + $0x58] sm:$0xff]  ;;  %v5373_v29 = vld [vmem:[%s8415_s15 + $0x50] sm:$0xff]  ;;  %v4016_v20 = vsel %vm1279_vm5, %v8217_v6, %v9321_v18  ;;  %v4253_v39 = vsel %vm1568_vm7, %v8284_v1, %v8303_v11  ;;  %v6507_v1 = vld [vmem:[%s6689_s23 + $0xc0] sm:$0xff]  }
 0x3b9   : > { %6042 = vmatmul.mubr.msk.bf16.gmra.mxu0 %vm3384_vm13, %v6500_v2  ;;  %4299 = vmatpush1.bf16.msra.mxu1 %v4262_v13  ;;  %v8403_v30 = vpop.permute.xlu0 %4472  ;;  %v5369_v2 = vld [vmem:[%s8415_s15 + $0x30] sm:$0xff]  ;;  %v4015_v6 = vsel %vm1279_vm5, %v8260_v44, %v8262_v63  ;;  %v4014_v11 = vsel %vm1279_vm5, %v8282_v50, %v8260_v44  ;;  %v5366_v63 = vld [vmem:[%s8415_s15 + $0x18] sm:$0xff]  ;;  %v5364_v50 = vld [vmem:[%s8415_s15 + $0x8] sm:$0xff] }
 0x3ba   : > { %4061 = vmatpush1.bf16.msra.mxu0 %v4024_v57  ;;  %v8405_v26 = vpop.permute.xlu1 %4712  ;;  %4300 = vmatprep.subr.bf16.mxu1 %v4261_v56  ;;  %v5367_v57 = vld [vmem:[%s8415_s15 + $0x20] sm:$0xff]  ;;  %v5365_v14 = vld [vmem:[%s8415_s15 + $0x10] sm:$0xff] }
 0x3bb   : > { %4062 = vmatprep.subr.bf16.mxu0 %v4023_v23  ;;  %6066 = vmatmul.mubr.msk.bf16.gmra.mxu1 %vm3384_vm13, %v6501_v47  ;;  %v6506_v47 = vld [vmem:[%s6689_s23 + $0x90] sm:$0xff]  }
 0x3bc   : > { %5168 = vrot.lane.b32.xlu1 %v7681_v28, %s6561_s26  ;;  %5172 = vrot.lane.b32.xlu0 %v7618_v3, %s6561_s26  ;;  %v6502_v28 = vld [vmem:[%s6689_s23 + $0x20] sm:$0xff]  }
 0x3bd   : > { %4301 = vmatpush1.bf16.msra.mxu1 %v4260_v17  ;;  %v8431_v0 = vpop.permute.xlu0 %4714  ;;  %3676 = vmatprep.mubr.bf16.mxu0 %v9302_v49 }
 0x3be   : > { %4063 = vmatpush1.bf16.msra.mxu0 %v4022_v12  ;;  %v8437_v3 = vpop.permute.xlu1 %4710  ;;  %4302 = vmatprep.subr.bf16.mxu1 %v4259_v59  ;;  %v5544_v12 = vld [vmem:[%s407_s18] sm:$0x1]  ;;  %v6508_v59 = vld [vmem:[%s6689_s23 + $0x98] sm:$0xff]  }
 0x3bf   : > { %4064 = vmatprep.subr.bf16.mxu0 %v4021_v22  ;;  %3890 = vmatprep.mubr.bf16.mxu1 %v9302_v49 }
 0x3c0   : > { %5432 = vperm.xlu1 %6431, %v5374_v62   ;;  %5427 = vperm.xlu0 %6432, %v5373_v29   ;;  %v6509_v29 = vld [vmem:[%s6689_s23 + $0xc8] sm:$0xff]  }
 0x3c1   : > { %6043 = vmatmul.mubr.msk.bf16.gmra.mxu0 %vm3384_vm13, %v6502_v28  ;;  %4303 = vmatpush1.bf16.msra.mxu1 %v4258_v52  ;;  %v8454_v24 = vpop.permute.xlu0 %4468  ;;  %v6510_v52 = vld [vmem:[%s6689_s23 + $0xa0] sm:$0xff]  }
 0x3c2   : > { %4065 = vmatpush1.bf16.msra.mxu0 %v4020_v60  ;;  %v8458_v8 = vpop.permute.xlu1 %4470  ;;  %4304 = vmatprep.subr.bf16.mxu1 %v4257_v61  ;;  %v6511_v61 = vld [vmem:[%s6689_s23 + $0xd0] sm:$0xff]  }
 0x3c3   : > { %4066 = vmatprep.subr.bf16.mxu0 %v4019_v46  ;;  %6067 = vmatmul.mubr.msk.bf16.gmra.mxu1 %vm3384_vm13, %v6503_v7 }
 0x3c4   : > { %5422 = vperm.xlu1 %6431, %v5372_v9   ;;  %5417 = vperm.xlu0 %6432, %v5371_v45  }
 0x3c5   : > { %4305 = vmatpush1.bf16.msra.mxu1 %v4256_v21  ;;  %v8473_v15 = vpop.permute.xlu0 %4466  ;;  %3686 = vmatprep.mubr.bf16.mxu0 %v9302_v49  ;;  %v6512_v21 = vld [vmem:[%s6689_s23 + $0xa8] sm:$0xff]  }
 0x3c6   : > { %4067 = vmatpush1.bf16.msra.mxu0 %v4018_v10  ;;  %v8479_v41 = vpop.permute.xlu1 %4706  ;;  %4306 = vmatprep.subr.bf16.mxu1 %v4255_v43 }
 0x3c7   : > { %4068 = vmatprep.subr.bf16.mxu0 %v4017_v34  ;;  %3900 = vmatprep.mubr.bf16.mxu1 %v9302_v49  ;;  %v6514_v34 = vld [vmem:[%s6689_s23 + $0xb0] sm:$0xff]  }
 0x3c8   : > { %5412 = vperm.xlu1 %6431, %v5370_v36   ;;  %5407 = vperm.xlu0 %6432, %v5369_v2  }
 0x3c9   : > { %6044 = vmatmul.mubr.msk.bf16.gmra.mxu0 %vm3384_vm13, %v6504_v42  ;;  %4307 = vmatpush1.bf16.msra.mxu1 %v4254_v58  ;;  %v8496_v13 = vpop.permute.xlu0 %4708 }
 0x3ca   : > { %4069 = vmatpush1.bf16.msra.mxu0 %v4016_v20  ;;  %v8500_v40 = vpop.permute.xlu1 %4704  ;;  %4308 = vmatprep.subr.bf16.mxu1 %v4253_v39  ;;  %v6517_v39 = vld [vmem:[%s6689_s23 + $0xe8] sm:$0xff]  }
 0x3cb   : > { %4070 = vmatprep.subr.bf16.mxu0 %v4015_v6  ;;  %6068 = vmatmul.mubr.msk.bf16.gmra.mxu1 %vm3384_vm13, %v6505_v4 }
 0x3cc   : > { %5402 = vperm.xlu1 %6431, %v5368_v35   ;;  %5397 = vperm.xlu0 %6432, %v5367_v57  }
 0x3cd   : > { %4309 = vmatpush1.bf16.msra.mxu1 %v4252_v31  ;;  %v8512_v25 = vpop.permute.xlu0 %4462  ;;  %4088 = vmatprep.mubr.bf16.mxu0 %v9302_v49 }
 0x3ce   : > { %4071 = vmatpush1.bf16.msra.mxu0 %v4014_v11  ;;  %v8518_v56 = vpop.permute.xlu1 %4464  ;;  %4326 = vmatprep.mubr.bf16.mxu1 %v9302_v49 }
 0x3d0   : > { %5392 = vperm.xlu1 %6431, %v5366_v63   ;;  %5387 = vperm.xlu0 %6432, %v5365_v14   ;;  %v6518_v63 = vld [vmem:[%s6689_s23 + $0xf0] sm:$0xff]  }
 0x3d1   : > { %6087 = vmatmul.mubr.msk.bf16.vlgmr.msra.gmra.mxu0 %vm3384_vm13, %v6506_v47  ;;  %v8523_v44 = vpop.permute.xlu0 %4460  ;;  %v6519_v47 = vld [vmem:[%s6689_s23 + $0x120] sm:$0xff]  }
 0x3d2   : > { %v8527_v23 = vpop.permute.xlu1 %4700  ;;  %4098 = vmatprep.mubr.bf16.mxu0 %v9302_v49 }
 0x3d3   : > { %6111 = vmatmul.mubr.msk.bf16.vlgmr.msra.gmra.mxu1 %vm3384_vm13, %v6507_v1 }
 0x3d4   : > { %5382 = vperm.xlu1 %6431, %v5364_v50   ;;  %5377 = vperm.xlu0 %6432, %v5363_v38   ;;  %v6520_v50 = vld [vmem:[%s6689_s23 + $0xf8] sm:$0xff]  }
 0x3d5   : > { %v8535_v17 = vpop.permute.xlu0 %4702  ;;  %4336 = vmatprep.mubr.bf16.mxu1 %v9302_v49 }
 0x3d6   : > { %v8539_v62 = vpop.permute.xlu1 %4698 }
 0x3d8   : > { %5547 = vperm.xlu0 %6432, %v5544_v12  }
 0x3d9   : > { %6088 = vmatmul.mubr.msk.bf16.gmra.mxu0 %vm3384_vm13, %v6508_v59  ;;  %v8543_v28 = vpop.permute.xlu0 %4456 }
 0x3da   : > { %v8545_v22 = vpop.permute.xlu1 %4458  ;;  %4108 = vmatprep.mubr.bf16.mxu0 %v9302_v49 }
 0x3db   : > { %6112 = vmatmul.mubr.msk.bf16.gmra.mxu1 %vm3384_vm13, %v6509_v29  ;;  %v4491_v35 = vsel %vm1857_vm8, %v8543_v28, %v8545_v22 }
 0x3dc   : > { %4346 = vmatprep.mubr.bf16.mxu1 %v9302_v49 }
 0x3dd   : > { %v8550_v7 = vpop.permute.xlu0 %4454 }
 0x3de   : > { %v8553_v60 = vpop.permute.xlu1 %4694  ;;  %v4490_v31 = vsel %vm1857_vm8, %v8550_v7, %v8543_v28  ;;  %v6523_v28 = vld [vmem:[%s6689_s23 + $0x130] sm:$0xff]  }
 0x3e1   : > { %6089 = vmatmul.mubr.msk.bf16.gmra.mxu0 %vm3384_vm13, %v6510_v52  ;;  %v8557_v9 = vpop.permute.xlu0 %4696 }
 0x3e2   : > { %v8559_v45 = vpop.permute.xlu1 %4692  ;;  %4118 = vmatprep.mubr.bf16.mxu0 %v9302_v49  ;;  %v4729_v57 = vsel %vm2146_vm9, %v8553_v60, %v8557_v9 }
 0x3e3   : > { %6113 = vmatmul.mubr.msk.bf16.gmra.mxu1 %vm3384_vm13, %v6511_v61  ;;  %v4728_v11 = vsel %vm2146_vm9, %v8559_v45, %v8553_v60  ;;  %v6524_v60 = vld [vmem:[%s6689_s23 + $0x108] sm:$0xff]  }
 0x3e4   : > { %4356 = vmatprep.mubr.bf16.mxu1 %v9302_v49 }
 0x3e5   : > { %v4487_v46 = vpop.permute.xlu0 %4486 }
 0x3e6   : > { %v4725_v10 = vpop.permute.xlu1 %4724  ;;  %v4500_v43 = vsel %vm1857_vm8, %v8320_v51, %v4487_v46  ;;  %v4501_v36 = vsel %vm1857_vm8, %v4487_v46, %v8322_v33  ;;  %v4737_v51 = vsel %vm2146_vm9, %v8352_v54, %v8364_v37 }
 0x3e7   : > { %v4738_v2 = vsel %vm2146_vm9, %v8333_v53, %v4725_v10  ;;  %4536 = vmatprep.subr.bf16.mxu0 %v4501_v36  ;;  %v4739_v42 = vsel %vm2146_vm9, %v4725_v10, %v8330_v19  ;;  %v4736_v19 = vsel %vm2146_vm9, %v8366_v55, %v8352_v54  ;;  %v4497_v53 = vsel %vm1857_vm8, %v8374_v48, %v8377_v32  ;;  %v6525_v10 = vld [vmem:[%s6689_s23 + $0x138] sm:$0xff]  }
 0x3e8   : > { %4774 = vmatprep.subr.bf16.mxu1 %v4739_v42  ;;  %4537 = vmatpush1.bf16.msra.mxu0 %v4500_v43  ;;  %v4496_v54 = vsel %vm1857_vm8, %v8403_v30, %v8374_v48  ;;  %v4734_v55 = vsel %vm2146_vm9, %v8437_v3, %v8405_v26  ;;  %v4495_v32 = vsel %vm1857_vm8, %v8454_v24, %v8458_v8 }
 0x3e9   : > { %6090 = vmatmul.mubr.msk.bf16.gmra.mxu0 %vm3384_vm13, %v6512_v21  ;;  %4775 = vmatpush1.bf16.msra.mxu1 %v4738_v2  ;;  %v8578_v18 = vpop.permute.xlu0 %4960  ;;  %v4494_v30 = vsel %vm1857_vm8, %v8473_v15, %v8454_v24  ;;  %v4493_v3 = vsel %vm1857_vm8, %v8512_v25, %v8518_v56  ;;  %v4731_v24 = vsel %vm2146_vm9, %v8527_v23, %v8535_v17  ;;  %v6516_v15 = vld [vmem:[%s6689_s23 + $0xb8] sm:$0xff]  }
 0x3ea   : > { %v8580_v33 = vpop.permute.xlu1 %4964  ;;  %4538 = vmatprep.subr.bf16.mxu0 %v8346_v16  ;;  %4776 = vmatprep.subr.bf16.mxu1 %v4737_v51  ;;  %v4735_v16 = vsel %vm2146_vm9, %v8405_v26, %v8431_v0  ;;  %v4733_v0 = vsel %vm2146_vm9, %v8479_v41, %v8496_v13  ;;  %v4732_v26 = vsel %vm2146_vm9, %v8500_v40, %v8479_v41 }
 0x3eb   : > { %6114 = vmatmul.mubr.msk.bf16.gmra.mxu1 %vm3384_vm13, %v6513_v5  ;;  %4128 = vmatprep.mubr.bf16.mxu0 %v9302_v49  ;;  %v4492_v41 = vsel %vm1857_vm8, %v8523_v44, %v8512_v25  ;;  %v4730_v13 = vsel %vm2146_vm9, %v8539_v62, %v8527_v23  ;;  %v6521_v23 = vld [vmem:[%s6689_s23 + $0x128] sm:$0xff]   ;;  %v6522_v62 = vld [vmem:[%s6689_s23 + $0x100] sm:$0xff]  }
 0x3ec   : > { %4539 = vmatpush1.bf16.msra.mxu0 %v8355_v27  ;;  %4366 = vmatprep.mubr.bf16.mxu1 %v9302_v49  ;;  %v6515_v27 = vld [vmem:[%s6689_s23 + $0xe0] sm:$0xff]  }
 0x3ed   : > { %4777 = vmatpush1.bf16.msra.mxu1 %v4736_v19  ;;  %4540 = vmatprep.subr.bf16.mxu0 %v4497_v53  ;;  %v8596_v37 = vpop.permute.xlu0 %5202  ;;  %v6526_v53 = vld [vmem:[%s6689_s23 + $0x110] sm:$0xff]  }
 0x3ee   : > { %v8599_v4 = vpop.permute.xlu1 %5198  ;;  %4778 = vmatprep.subr.bf16.mxu1 %v4735_v16 }
 0x3f0   : > { %4541 = vmatpush1.bf16.msra.mxu0 %v4496_v54 }
 0x3f1   : > { %6091 = vmatmul.mubr.msk.bf16.gmra.mxu0 %vm3384_vm13, %v6514_v34  ;;  %4779 = vmatpush1.bf16.msra.mxu1 %v4734_v55  ;;  %v8615_v58 = vpop.permute.xlu0 %4956  ;;  %v6527_v34 = vld [vmem:[%s6689_s23 + $0x140] sm:$0xff]  }
 0x3f2   : > { %v8617_v48 = vpop.permute.xlu1 %4958  ;;  %4542 = vmatprep.subr.bf16.mxu0 %v4495_v32  ;;  %4780 = vmatprep.subr.bf16.mxu1 %v4733_v0 }
 0x3f3   : > { %6115 = vmatmul.mubr.msk.bf16.gmra.mxu1 %vm3384_vm13, %v6515_v27  ;;  %4138 = vmatprep.mubr.bf16.mxu0 %v9302_v49  ;;  %v4975_v43 = vsel %vm2435_vm10, %v8615_v58, %v8617_v48 }
 0x3f4   : > { %4543 = vmatpush1.bf16.msra.mxu0 %v4494_v30  ;;  %4376 = vmatprep.mubr.bf16.mxu1 %v9302_v49 }
 0x3f5   : > { %4781 = vmatpush1.bf16.msra.mxu1 %v4732_v26  ;;  %4544 = vmatprep.subr.bf16.mxu0 %v4493_v3  ;;  %v8634_v8 = vpop.permute.xlu0 %4954  ;;  %v6528_v3 = vld [vmem:[%s6689_s23 + $0x118] sm:$0xff]  }
 0x3f6   : > { %v8637_v20 = vpop.permute.xlu1 %5194  ;;  %4782 = vmatprep.subr.bf16.mxu1 %v4731_v24  ;;  %v4974_v5 = vsel %vm2435_vm10, %v8634_v8, %v8615_v58 }
 0x3f8   : > { %4545 = vmatpush1.bf16.msra.mxu0 %v4492_v41 }
 0x3f9   : > { %6092 = vmatmul.mubr.msk.bf16.gmra.mxu0 %vm3384_vm13, %v6516_v15  ;;  %4783 = vmatpush1.bf16.msra.mxu1 %v4730_v13  ;;  %v5197_v40 = vpop.permute.xlu0 %5196  ;;  %v6529_v15 = vld [vmem:[%s6689_s23 + $0x148] sm:$0xff]  }
 0x3fa   : > { %v8653_v6 = vpop.permute.xlu1 %5192  ;;  %4546 = vmatprep.subr.bf16.mxu0 %v4491_v35  ;;  %4784 = vmatprep.subr.bf16.mxu1 %v4729_v57  ;;  %v5213_v36 = vsel %vm2724_vm11, %v8637_v20, %v5197_v40  ;;  %v6530_v57 = vld [vmem:[%s6689_s23 + $0x150] sm:$0xff]  }
 0x3fb   : > { %6116 = vmatmul.mubr.msk.bf16.gmra.mxu1 %vm3384_vm13, %v6517_v39  ;;  %4564 = vmatprep.mubr.bf16.mxu0 %v9302_v49  ;;  %v5212_v51 = vsel %vm2724_vm11, %v8653_v6, %v8637_v20 }
 0x3fc   : > { %4547 = vmatpush1.bf16.msra.mxu0 %v4490_v31  ;;  %4802 = vmatprep.mubr.bf16.mxu1 %v9302_v49 }
 0x3fd   : > { %4785 = vmatpush1.bf16.msra.mxu1 %v4728_v11  ;;  %v8664_v25 = vpop.permute.xlu0 %4950 }
 0x3fe   : > { %v4953_v14 = vpop.permute.xlu1 %4952 }
 0x401   : > { %6135 = vmatmul.mubr.msk.bf16.vlgmr.msra.gmra.mxu0 %vm3384_vm13, %v6518_v63  ;;  %v4949_v56 = vpop.permute.xlu0 %4948 }
 0x402   : > { %v5189_v1 = vpop.permute.xlu1 %5188  ;;  %4574 = vmatprep.mubr.bf16.mxu0 %v9302_v49 }
 0x403   : > { %6159 = vmatmul.mubr.msk.bf16.vlgmr.msra.gmra.mxu1 %vm3384_vm13, %v6519_v47  ;;  %v6532_v47 = vld [vmem:[%s6689_s23 + $0x158] sm:$0xff]  }
 0x404   : > { %4812 = vmatprep.mubr.bf16.mxu1 %v9302_v49 }
 0x405   : > { %v5191_v44 = vpop.permute.xlu0 %5190 }
 0x406   : > { %v5187_v38 = vpop.permute.xlu1 %5186 }
 0x409   : > { %6136 = vmatmul.mubr.msk.bf16.gmra.mxu0 %vm3384_vm13, %v6520_v50  ;;  %v4945_v17 = vpop.permute.xlu0 %4944 }
 0x40a   : > { %v4947_v12 = vpop.permute.xlu1 %4946  ;;  %4584 = vmatprep.mubr.bf16.mxu0 %v9302_v49 }
 0x40b   : > { %6160 = vmatmul.mubr.msk.bf16.gmra.mxu1 %vm3384_vm13, %v6521_v23  ;;  %v4971_v54 = vsel %vm2435_vm10, %v4945_v17, %v4947_v12  ;;  %v6535_v12 = vld [vmem:[%s6689_s23 + $0x190] sm:$0xff]  }
 0x40c   : > { %4822 = vmatprep.mubr.bf16.mxu1 %v9302_v49 }
 0x40d   : > { %v4943_v59 = vpop.permute.xlu0 %4942 }
 0x40e   : > { %v5183_v29 = vpop.permute.xlu1 %5182  ;;  %v4970_v0 = vsel %vm2435_vm10, %v4943_v59, %v4945_v17 }
 0x411   : > { %6137 = vmatmul.mubr.msk.bf16.gmra.mxu0 %vm3384_vm13, %v6522_v62  ;;  %v5185_v22 = vpop.permute.xlu0 %5184 }
 0x412   : > { %v5181_v7 = vpop.permute.xlu1 %5180  ;;  %4594 = vmatprep.mubr.bf16.mxu0 %v9302_v49  ;;  %v5209_v27 = vsel %vm2724_vm11, %v5183_v29, %v5185_v22 }
 0x413   : > { %6161 = vmatmul.mubr.msk.bf16.gmra.mxu1 %vm3384_vm13, %v6523_v28  ;;  %v5208_v58 = vsel %vm2724_vm11, %v5181_v7, %v5183_v29  ;;  %v6536_v29 = vld [vmem:[%s6689_s23 + $0x168] sm:$0xff]   ;;  %v6537_v7 = vld [vmem:[%s6689_s23 + $0x198] sm:$0xff]  }
 0x414   : > { %4832 = vmatprep.mubr.bf16.mxu1 %v9302_v49 }
 0x415   : > { %v4963_v52 = vpop.permute.xlu0 %4962 }
 0x416   : > { %v5201_v61 = vpop.permute.xlu1 %5200  ;;  %v4976_v9 = vsel %vm2435_vm10, %v8578_v18, %v4963_v52  ;;  %v4977_v45 = vsel %vm2435_vm10, %v4963_v52, %v8580_v33  ;;  %v4973_v18 = vsel %vm2435_vm10, %v8664_v25, %v4953_v14  ;;  %v5211_v33 = vsel %vm2724_vm11, %v5189_v1, %v5191_v44 }
 0x417   : > { %v5214_v46 = vsel %vm2724_vm11, %v8599_v4, %v5201_v61  ;;  %5012 = vmatprep.subr.bf16.mxu0 %v4977_v45  ;;  %v5215_v21 = vsel %vm2724_vm11, %v5201_v61, %v8596_v37  ;;  %v4972_v37 = vsel %vm2435_vm10, %v4949_v56, %v8664_v25  ;;  %v5210_v4 = vsel %vm2724_vm11, %v5187_v38, %v5189_v1  ;;  %v6531_v25 = vld [vmem:[%s6689_s23 + $0x180] sm:$0xff]   ;;  %v6533_v1 = vld [vmem:[%s6689_s23 + $0x188] sm:$0xff]   ;;  %v6538_v61 = vld [vmem:[%s6689_s23 + $0x170] sm:$0xff]  }
 0x418   : > { %5250 = vmatprep.subr.bf16.mxu1 %v5215_v21  ;;  %5013 = vmatpush1.bf16.msra.mxu0 %v4976_v9  ;;  %v6534_v38 = vld [vmem:[%s6689_s23 + $0x160] sm:$0xff]  }
 0x419   : > { %6138 = vmatmul.mubr.msk.bf16.gmra.mxu0 %vm3384_vm13, %v6524_v60  ;;  %5251 = vmatpush1.bf16.msra.mxu1 %v5214_v46  ;;  %v4939_v2 = vpop.permute.xlu0 %4938  ;;  %v6539_v46 = vld [vmem:[%s6689_s23 + $0x1a0] sm:$0xff]  }
 0x41a   : > { %v4941_v42 = vpop.permute.xlu1 %4940  ;;  %5014 = vmatprep.subr.bf16.mxu0 %v4975_v43  ;;  %5252 = vmatprep.subr.bf16.mxu1 %v5213_v36  ;;  %v6540_v43 = vld [vmem:[%s6689_s23 + $0x178] sm:$0xff]  }
 0x41b   : > { %6162 = vmatmul.mubr.msk.bf16.gmra.mxu1 %vm3384_vm13, %v6525_v10  ;;  %4604 = vmatprep.mubr.bf16.mxu0 %v9302_v49  ;;  %v4969_v48 = vsel %vm2435_vm10, %v4939_v2, %v4941_v42  ;;  %v6541_v42 = vld [vmem:[%s6689_s23 + $0x1a8] sm:$0xff]  }
 0x41c   : > { %5015 = vmatpush1.bf16.msra.mxu0 %v4974_v5  ;;  %4842 = vmatprep.mubr.bf16.mxu1 %v9302_v49 }
 0x41d   : > { %5253 = vmatpush1.bf16.msra.mxu1 %v5212_v51  ;;  %5016 = vmatprep.subr.bf16.mxu0 %v4973_v18  ;;  %v4937_v19 = vpop.permute.xlu0 %4936 }
 0x41e   : > { %v5177_v16 = vpop.permute.xlu1 %5176  ;;  %5254 = vmatprep.subr.bf16.mxu1 %v5211_v33  ;;  %v4968_v8 = vsel %vm2435_vm10, %v4937_v19, %v4939_v2 }
 0x420   : > { %5017 = vmatpush1.bf16.msra.mxu0 %v4972_v37 }
 0x421   : > { %6139 = vmatmul.mubr.msk.bf16.gmra.mxu0 %vm3384_vm13, %v6526_v53  ;;  %5255 = vmatpush1.bf16.msra.mxu1 %v5210_v4  ;;  %v5179_v55 = vpop.permute.xlu0 %5178 }
 0x422   : > { %v5175_v32 = vpop.permute.xlu1 %5174  ;;  %5018 = vmatprep.subr.bf16.mxu0 %v4971_v54  ;;  %5256 = vmatprep.subr.bf16.mxu1 %v5209_v27  ;;  %v5207_v30 = vsel %vm2724_vm11, %v5177_v16, %v5179_v55 }
 0x423   : > { %6163 = vmatmul.mubr.msk.bf16.gmra.mxu1 %vm3384_vm13, %v6527_v34  ;;  %4614 = vmatprep.mubr.bf16.mxu0 %v9302_v49  ;;  %v5206_v20 = vsel %vm2724_vm11, %v5175_v32, %v5177_v16 }
 0x424   : > { %5019 = vmatpush1.bf16.msra.mxu0 %v4970_v0  ;;  %4852 = vmatprep.mubr.bf16.mxu1 %v9302_v49 }
 0x425   : > { %5257 = vmatpush1.bf16.msra.mxu1 %v5208_v58  ;;  %5020 = vmatprep.subr.bf16.mxu0 %v4969_v48  ;;  %v4933_v26 = vpop.permute.xlu0 %4932 }
 0x426   : > { %v4935_v24 = vpop.permute.xlu1 %4934  ;;  %5258 = vmatprep.subr.bf16.mxu1 %v5207_v30 }
 0x427   : > { %v4967_v41 = vsel %vm2435_vm10, %v4933_v26, %v4935_v24 }
 0x428   : > { %5021 = vmatpush1.bf16.msra.mxu0 %v4968_v8 }
 0x429   : > { %6140 = vmatmul.mubr.msk.bf16.gmra.mxu0 %vm3384_vm13, %v6528_v3  ;;  %5259 = vmatpush1.bf16.msra.mxu1 %v5206_v20  ;;  %v4931_v39 = vpop.permute.xlu0 %4930 }
 0x42a   : > { %v5171_v13 = vpop.permute.xlu1 %5170  ;;  %5022 = vmatprep.subr.bf16.mxu0 %v4967_v41  ;;  %v4966_v35 = vsel %vm2435_vm10, %v4931_v39, %v4933_v26  ;;  %5040 = vmatprep.mubr.bf16.mxu0 %v9302_v49 }
 0x42b   : > { %6164 = vmatmul.mubr.msk.bf16.gmra.mxu1 %vm3384_vm13, %v6529_v15 }
 0x42c   : > { %5023 = vmatpush1.bf16.msra.mxu0 %v4966_v35  ;;  %5278 = vmatprep.mubr.bf16.mxu1 %v9302_v49 }
 0x42e   : > { %v5169_v40 = vpop.permute.xlu1 %5168  ;;  %v5173_v6 = vpop.permute.xlu0 %5172 }
 0x42f   : > { %v5204_v31 = vsel %vm2724_vm11, %v5169_v40, %v5171_v13  ;;  %v5205_v11 = vsel %vm2724_vm11, %v5171_v13, %v5173_v6 }
 0x430   : > { %5260 = vmatprep.subr.bf16.mxu1 %v5205_v11 }
 0x431   : > { %6183 = vmatmul.mubr.msk.bf16.vlgmr.msra.gmra.mxu0 %vm3384_vm13, %v6530_v57  ;;  %5261 = vmatpush1.bf16.msra.mxu1 %v5204_v31 }
 0x432   : > { %5050 = vmatprep.mubr.bf16.mxu0 %v9302_v49 }
 0x433   : > { %v3437_v63 = vpop.f32.mrf.mxu1 }
 0x434   : > { %6207 = vmatmul.mubr.msk.bf16.vlgmr.msra.gmra.mxu1 %vm3384_vm13, %v6531_v25 }
 0x435   : > { %v3439_v14 = vpop.f32.mrf.mxu1  ;;  %5288 = vmatprep.mubr.bf16.mxu1 %v9302_v49 }
 0x437   : > { %v3441_v56 = vpop.f32.mrf.mxu1 }
 0x439   : > { %6184 = vmatmul.mubr.msk.bf16.gmra.mxu0 %vm3384_vm13, %v6532_v47  ;;  %v3443_v44 = vpop.f32.mrf.mxu1 }
 0x43a   : > { %5060 = vmatprep.mubr.bf16.mxu0 %v9302_v49 }
 0x43b   : > { %v3447_v50 = vpop.f32.mrf.mxu1 }
 0x43c   : > { %6208 = vmatmul.mubr.msk.bf16.gmra.mxu1 %vm3384_vm13, %v6533_v1 }
 0x43d   : > { %5298 = vmatprep.mubr.bf16.mxu1 %v9302_v49  ;;  %v3449_v23 = vpop.f32.mrf.mxu1 }
 0x43f   : > { %v3451_v17 = vpop.f32.mrf.mxu1 }
 0x441   : > { %6185 = vmatmul.mubr.msk.bf16.gmra.mxu0 %vm3384_vm13, %v6534_v38  ;;  %v8754_v59 = vpop.f32.mrf.mxu1 }
 0x442   : > { %5070 = vmatprep.mubr.bf16.mxu0 %v9302_v49 }
 0x443   : > { %v8757_v62 = vpop.f32.mrf.mxu1 }
 0x444   : > { %6209 = vmatmul.mubr.msk.bf16.gmra.mxu1 %vm3384_vm13, %v6535_v12 }
 0x445   : > { %5308 = vmatprep.mubr.bf16.mxu1 %v9302_v49  ;;  %v8762_v28 = vpop.f32.mrf.mxu1 }
 0x447   : > { %v8764_v22 = vpop.f32.mrf.mxu1 }
 0x449   : > { %6186 = vmatmul.mubr.msk.bf16.gmra.mxu0 %vm3384_vm13, %v6536_v29  ;;  %v8768_v52 = vpop.f32.mrf.mxu1 }
 0x44a   : > { %5080 = vmatprep.mubr.bf16.mxu0 %v9302_v49 }
 0x44b   : > { %v8771_v60 = vpop.f32.mrf.mxu1 }
 0x44c   : > { %6210 = vmatmul.mubr.msk.bf16.gmra.mxu1 %vm3384_vm13, %v6537_v7 }
 0x44d   : > { %5318 = vmatprep.mubr.bf16.mxu1 %v9302_v49  ;;  %v8776_v9 = vpop.f32.mrf.mxu1 }
 0x44f   : > { %v8778_v45 = vpop.f32.mrf.mxu1 }
 0x451   : > { %6187 = vmatmul.mubr.msk.bf16.gmra.mxu0 %vm3384_vm13, %v6538_v61  ;;  %v8782_v21 = vpop.f32.mrf.mxu1 }
 0x452   : > { %5090 = vmatprep.mubr.bf16.mxu0 %v9302_v49 }
 0x453   : > { %v8785_v10 = vpop.f32.mrf.mxu1 }
 0x454   : > { %6211 = vmatmul.mubr.msk.bf16.gmra.mxu1 %vm3384_vm13, %v6539_v46 }
 0x455   : > { %5328 = vmatprep.mubr.bf16.mxu1 %v9302_v49  ;;  %v8790_v36 = vpop.f32.mrf.mxu1 }
 0x457   : > { %v8792_v2 = vpop.f32.mrf.mxu1 }
 0x459   : > { %6188 = vmatmul.mubr.msk.bf16.gmra.mxu0 %vm3384_vm13, %v6540_v43  ;;  %v8796_v5 = vpop.f32.mrf.mxu1 }
 0x45a   : > { %5589 = vmatprep.mubr.bf16.mxu0 %v9302_v49 }
 0x45b   : > { %v8799_v51 = vpop.f32.mrf.mxu1 }
 0x45c   : > { %6212 = vmatmul.mubr.msk.bf16.gmra.mxu1 %vm3384_vm13, %v6541_v42 }
 0x45d   : > { %v8802_v18 = vpop.f32.mrf.mxu1 }
 0x45f   : > { %v8804_v33 = vpop.f32.mrf.mxu1 }
 0x460   : > { %v3638_v19 = vpop.f32.mrf.mxu0 }
 0x461   : > { %v3639_v53 = vadd.f32 %v3638_v19, %v3437_v63  ;;  %v8806_v16 = vpop.f32.mrf.mxu1 }
 0x462   : > { %v3640_v37 = vpop.f32.mrf.mxu0 }
 0x463   : > { %v3641_v34 = vadd.f32 %v3640_v37, %v3439_v14  ;;  %v3852_v54 = vpop.f32.mrf.mxu1 }
 0x464   : > { %v3642_v4 = vpop.f32.mrf.mxu0  ;;  %v8808_v55 = vadd.f32 %v3852_v54, %v3639_v53 }
 0x465   : > { %v3643_v27 = vadd.f32 %v3642_v4, %v3441_v56  ;;  %v3854_v32 = vpop.f32.mrf.mxu1 }
 0x466   : > { %v3644_v49 = vpop.f32.mrf.mxu0  ;;  %v8810_v58 = vadd.f32 %v3854_v32, %v3641_v34 }
 0x467   : > { %v3645_v0 = vadd.f32 %v3644_v49, %v3443_v44  ;;  %v3856_v30 = vpop.f32.mrf.mxu1 }
 0x468   : > { %v3648_v48 = vpop.f32.mrf.mxu0  ;;  %v8812_v3 = vadd.f32 %v3856_v30, %v3643_v27 }
 0x469   : > { %v3649_v26 = vadd.f32 %v3648_v48, %v3447_v50  ;;  %v3858_v8 = vpop.f32.mrf.mxu1 }
 0x46a   : > { %v3650_v24 = vpop.f32.mrf.mxu0  ;;  %v8814_v20 = vadd.f32 %v3858_v8, %v3645_v0 }
 0x46b   : > { %v3651_v15 = vadd.f32 %v3650_v24, %v3449_v23  ;;  %v3862_v39 = vpop.f32.mrf.mxu1 }
 0x46c   : > { %v3652_v41 = vpop.f32.mrf.mxu0  ;;  %v8816_v35 = vadd.f32 %v3862_v39, %v3649_v26 }
 0x46d   : > { %v3653_v13 = vadd.f32 %v3652_v41, %v3451_v17  ;;  %v3864_v40 = vpop.f32.mrf.mxu1 }
 0x46e   : > { %v3654_v57 = vpop.f32.mrf.mxu0  ;;  %v8819_v31 = vadd.f32 %v3864_v40, %v3651_v15 }
 0x46f   : > { %v3655_v6 = vadd.f32 %v3654_v57, %v8754_v59  ;;  %v3866_v25 = vpop.f32.mrf.mxu1 }
 0x470   : > { %v3658_v11 = vpop.f32.mrf.mxu0  ;;  %v8822_v14 = vadd.f32 %v3866_v25, %v3653_v13 }
 0x471   : > { %v3659_v63 = vadd.f32 %v3658_v11, %v8757_v62  ;;  %v3868_v56 = vpop.f32.mrf.mxu1 }
 0x472   : > { %v3660_v47 = vpop.f32.mrf.mxu0  ;;  %v8825_v44 = vadd.f32 %v3868_v56, %v3655_v6 }
 0x473   : > { %v3661_v1 = vadd.f32 %v3660_v47, %v8762_v28  ;;  %v3872_v38 = vpop.f32.mrf.mxu1 }
 0x474   : > { %v3662_v50 = vpop.f32.mrf.mxu0  ;;  %v8828_v17 = vadd.f32 %v3872_v38, %v3659_v63 }
 0x475   : > { %v3663_v23 = vadd.f32 %v3662_v50, %v8764_v22  ;;  %v3874_v59 = vpop.f32.mrf.mxu1 }
 0x476   : > { %v3664_v12 = vpop.f32.mrf.mxu0  ;;  %v8831_v7 = vadd.f32 %v3874_v59, %v3661_v1 }
 0x477   : > { %v3665_v29 = vadd.f32 %v3664_v12, %v8768_v52  ;;  %v3876_v62 = vpop.f32.mrf.mxu1 }
 0x478   : > { %v8833_v46 = vadd.f32 %v3876_v62, %v3663_v23 }
 0x479   : > { %v3668_v61 = vpop.f32.mrf.mxu0  ;;  %v3878_v43 = vpop.f32.mrf.mxu1 }
 0x47a   : > { %v3669_v28 = vadd.f32 %v3668_v61, %v8771_v60  ;;  %v8836_v19 = vadd.f32 %v3878_v43, %v3665_v29 }
 0x47b   : > { %v3670_v42 = vpop.f32.mrf.mxu0  ;;  %v3882_v53 = vpop.f32.mrf.mxu1 }
 0x47c   : > { %v3671_v22 = vadd.f32 %v3670_v42, %v8776_v9  ;;  %v8839_v34 = vadd.f32 %v3882_v53, %v3669_v28 }
 0x47d   : > { %v3672_v37 = vpop.f32.mrf.mxu0  ;;  %v3884_v4 = vpop.f32.mrf.mxu1 }
 0x47e   : > { %v3673_v52 = vadd.f32 %v3672_v37, %v8778_v45  ;;  %v8842_v27 = vadd.f32 %v3884_v4, %v3671_v22 }
 0x47f   : > { %v3674_v54 = vpop.f32.mrf.mxu0  ;;  %v3886_v32 = vpop.f32.mrf.mxu1 }
 0x480   : > { %v3675_v49 = vadd.f32 %v3674_v54, %v8782_v21  ;;  %v8845_v0 = vadd.f32 %v3886_v32, %v3673_v52 }
 0x481   : > { %v3678_v60 = vpop.f32.mrf.mxu0  ;;  %v3888_v30 = vpop.f32.mrf.mxu1 }
 0x482   : > { %v3679_v48 = vadd.f32 %v3678_v60, %v8785_v10  ;;  %v8848_v26 = vadd.f32 %v3888_v30, %v3675_v49 }
 0x483   : > { %v3680_v9 = vpop.f32.mrf.mxu0  ;;  %v3892_v8 = vpop.f32.mrf.mxu1 }
 0x484   : > { %v3681_v24 = vadd.f32 %v3680_v9, %v8790_v36  ;;  %v8851_v15 = vadd.f32 %v3892_v8, %v3679_v48 }
 0x485   : > { %v3682_v45 = vpop.f32.mrf.mxu0  ;;  %v3894_v39 = vpop.f32.mrf.mxu1 }
 0x486   : > { %v3683_v41 = vadd.f32 %v3682_v45, %v8792_v2  ;;  %v8854_v13 = vadd.f32 %v3894_v39, %v3681_v24 }
 0x487   : > { %v3684_v21 = vpop.f32.mrf.mxu0  ;;  %v3896_v40 = vpop.f32.mrf.mxu1 }
 0x488   : > { %v3685_v57 = vadd.f32 %v3684_v21, %v8796_v5  ;;  %v8857_v6 = vadd.f32 %v3896_v40, %v3683_v41 }
 0x489   : > { %v3688_v10 = vpop.f32.mrf.mxu0  ;;  %v3898_v25 = vpop.f32.mrf.mxu1 }
 0x48a   : > { %v3689_v11 = vadd.f32 %v3688_v10, %v8799_v51  ;;  %v8860_v63 = vadd.f32 %v3898_v25, %v3685_v57 }
 0x48b   : > { %v3690_v36 = vpop.f32.mrf.mxu0  ;;  %v3902_v56 = vpop.f32.mrf.mxu1 }
 0x48c   : > { %v3691_v47 = vadd.f32 %v3690_v36, %v8802_v18  ;;  %v8863_v1 = vadd.f32 %v3902_v56, %v3689_v11 }
 0x48d   : > { %v3692_v2 = vpop.f32.mrf.mxu0  ;;  %v3904_v38 = vpop.f32.mrf.mxu1 }
 0x48e   : > { %v3693_v50 = vadd.f32 %v3692_v2, %v8804_v33  ;;  %v8866_v23 = vadd.f32 %v3904_v38, %v3691_v47 }
 0x48f   : > { %v3694_v5 = vpop.f32.mrf.mxu0  ;;  %v3906_v59 = vpop.f32.mrf.mxu1 }
 0x490   : > { %v3695_v12 = vadd.f32 %v3694_v5, %v8806_v16  ;;  %v8869_v51 = vadd.f32 %v3906_v59, %v3693_v50 }
 0x491   : > { %v4090_v29 = vpop.f32.mrf.mxu0  ;;  %v3908_v61 = vpop.f32.mrf.mxu1 }
 0x492   : > { %v4149_v62 = vadd.f32 %v4090_v29, %v8808_v55  ;;  %v8872_v18 = vadd.f32 %v3908_v61, %v3695_v12 }
 0x493   : > { %v4092_v28 = vpop.f32.mrf.mxu0  ;;  %v4328_v42 = vpop.f32.mrf.mxu1 }
 0x494   : > { %v4150_v43 = vadd.f32 %v4092_v28, %v8810_v58  ;;  %v8875_v22 = vadd.f32 %v4328_v42, %v4149_v62 }
 0x495   : > { %v4094_v33 = vpop.f32.mrf.mxu0  ;;  %v4330_v37 = vpop.f32.mrf.mxu1 }
 0x496   : > { %v4151_v53 = vadd.f32 %v4094_v33, %v8812_v3  ;;  %v8878_v52 = vadd.f32 %v4330_v37, %v4150_v43 }
 0x497   : > { %v4096_v16 = vpop.f32.mrf.mxu0  ;;  %v4332_v54 = vpop.f32.mrf.mxu1 }
 0x498   : > { %v4152_v4 = vadd.f32 %v4096_v16, %v8814_v20  ;;  %v8881_v49 = vadd.f32 %v4332_v54, %v4151_v53 }
 0x499   : > { %v4100_v55 = vpop.f32.mrf.mxu0  ;;  %v4334_v60 = vpop.f32.mrf.mxu1 }
 0x49a   : > { %v4153_v32 = vadd.f32 %v4100_v55, %v8816_v35  ;;  %v8884_v48 = vadd.f32 %v4334_v60, %v4152_v4 }
 0x49b   : > { %v4102_v58 = vpop.f32.mrf.mxu0  ;;  %v4338_v9 = vpop.f32.mrf.mxu1 }
 0x49c   : > { %v4154_v30 = vadd.f32 %v4102_v58, %v8819_v31  ;;  %v8887_v24 = vadd.f32 %v4338_v9, %v4153_v32 }
 0x49d   : > { %v4104_v3 = vpop.f32.mrf.mxu0  ;;  %v4340_v45 = vpop.f32.mrf.mxu1 }
 0x49e   : > { %v4155_v8 = vadd.f32 %v4104_v3, %v8822_v14  ;;  %v8890_v41 = vadd.f32 %v4340_v45, %v4154_v30 }
 0x49f   : > { %v4106_v20 = vpop.f32.mrf.mxu0  ;;  %v4342_v21 = vpop.f32.mrf.mxu1 }
 0x4a0   : > { %v4156_v39 = vadd.f32 %v4106_v20, %v8825_v44  ;;  %v8893_v57 = vadd.f32 %v4342_v21, %v4155_v8 }
 0x4a1   : > { %v4110_v35 = vpop.f32.mrf.mxu0  ;;  %v4344_v10 = vpop.f32.mrf.mxu1 }
 0x4a2   : > { %v4157_v40 = vadd.f32 %v4110_v35, %v8828_v17  ;;  %v8896_v11 = vadd.f32 %v4344_v10, %v4156_v39 }
 0x4a3   : > { %v4112_v31 = vpop.f32.mrf.mxu0  ;;  %v4348_v36 = vpop.f32.mrf.mxu1 }
 0x4a4   : > { %v4158_v25 = vadd.f32 %v4112_v31, %v8831_v7  ;;  %v8899_v47 = vadd.f32 %v4348_v36, %v4157_v40 }
 0x4a5   : > { %v4114_v14 = vpop.f32.mrf.mxu0  ;;  %v4350_v2 = vpop.f32.mrf.mxu1 }
 0x4a6   : > { %v4159_v56 = vadd.f32 %v4114_v14, %v8833_v46  ;;  %v8902_v50 = vadd.f32 %v4350_v2, %v4158_v25 }
 0x4a7   : > { %v4116_v44 = vpop.f32.mrf.mxu0  ;;  %v4352_v5 = vpop.f32.mrf.mxu1 }
 0x4a8   : > { %v4160_v38 = vadd.f32 %v4116_v44, %v8836_v19  ;;  %v8905_v12 = vadd.f32 %v4352_v5, %v4159_v56 }
 0x4a9   : > { %v4120_v17 = vpop.f32.mrf.mxu0  ;;  %v4354_v29 = vpop.f32.mrf.mxu1 }
 0x4aa   : > { %v4161_v59 = vadd.f32 %v4120_v17, %v8839_v34  ;;  %v8908_v62 = vadd.f32 %v4354_v29, %v4160_v38 }
 0x4ab   : > { %v4122_v7 = vpop.f32.mrf.mxu0  ;;  %v4358_v28 = vpop.f32.mrf.mxu1 }
 0x4ac   : > { %v4162_v61 = vadd.f32 %v4122_v7, %v8842_v27  ;;  %v8911_v43 = vadd.f32 %v4358_v28, %v4161_v59 }
 0x4ad   : > { %v4124_v46 = vpop.f32.mrf.mxu0  ;;  %v4360_v33 = vpop.f32.mrf.mxu1 }
 0x4ae   : > { %v4163_v42 = vadd.f32 %v4124_v46, %v8845_v0  ;;  %v8914_v53 = vadd.f32 %v4360_v33, %v4162_v61 }
 0x4af   : > { %v4126_v19 = vpop.f32.mrf.mxu0  ;;  %v4362_v16 = vpop.f32.mrf.mxu1 }
 0x4b0   : > { %v4164_v37 = vadd.f32 %v4126_v19, %v8848_v26  ;;  %v8917_v4 = vadd.f32 %v4362_v16, %v4163_v42 }
 0x4b1   : > { %v4130_v34 = vpop.f32.mrf.mxu0  ;;  %v4364_v55 = vpop.f32.mrf.mxu1 }
 0x4b2   : > { %v4165_v54 = vadd.f32 %v4130_v34, %v8851_v15  ;;  %v8920_v32 = vadd.f32 %v4364_v55, %v4164_v37 }
 0x4b3   : > { %v4132_v27 = vpop.f32.mrf.mxu0  ;;  %v4368_v58 = vpop.f32.mrf.mxu1 }
 0x4b4   : > { %v4166_v60 = vadd.f32 %v4132_v27, %v8854_v13  ;;  %v8923_v30 = vadd.f32 %v4368_v58, %v4165_v54 }
 0x4b5   : > { %v4134_v0 = vpop.f32.mrf.mxu0  ;;  %v4370_v3 = vpop.f32.mrf.mxu1 }
 0x4b6   : > { %v4167_v9 = vadd.f32 %v4134_v0, %v8857_v6  ;;  %v8926_v8 = vadd.f32 %v4370_v3, %v4166_v60 }
 0x4b7   : > { %v4136_v26 = vpop.f32.mrf.mxu0  ;;  %v4372_v20 = vpop.f32.mrf.mxu1 }
 0x4b8   : > { %v4168_v45 = vadd.f32 %v4136_v26, %v8860_v63  ;;  %v8929_v39 = vadd.f32 %v4372_v20, %v4167_v9 }
 0x4b9   : > { %v4140_v15 = vpop.f32.mrf.mxu0  ;;  %v4374_v35 = vpop.f32.mrf.mxu1 }
 0x4ba   : > { %v4169_v21 = vadd.f32 %v4140_v15, %v8863_v1  ;;  %v8932_v40 = vadd.f32 %v4374_v35, %v4168_v45 }
 0x4bb   : > { %v4142_v13 = vpop.f32.mrf.mxu0  ;;  %v4378_v31 = vpop.f32.mrf.mxu1 }
 0x4bc   : > { %v4170_v10 = vadd.f32 %v4142_v13, %v8866_v23  ;;  %v8935_v25 = vadd.f32 %v4378_v31, %v4169_v21 }
 0x4bd   : > { %v4144_v6 = vpop.f32.mrf.mxu0  ;;  %v4380_v14 = vpop.f32.mrf.mxu1 }
 0x4be   : > { %v4171_v36 = vadd.f32 %v4144_v6, %v8869_v51  ;;  %v8938_v56 = vadd.f32 %v4380_v14, %v4170_v10  ;;  %v8976_v14 = vpop.permute.xlu0 %5427 }
 0x4bf   : > { %v4146_v63 = vpop.f32.mrf.mxu0  ;;  %v4382_v44 = vpop.f32.mrf.mxu1  ;;  %9323 = vst [vmem:[#allocation25_spill] sm:$0xff] %v8976_v14 }
 0x4c0   : > { %v4172_v2 = vadd.f32 %v4146_v63, %v8872_v18  ;;  %v8941_v1 = vadd.f32 %v4382_v44, %v4171_v36 }
 0x4c1   : > { %v4566_v38 = vpop.f32.mrf.mxu0  ;;  %v4384_v17 = vpop.f32.mrf.mxu1 }
 0x4c2   : > { %v4625_v5 = vadd.f32 %v4566_v38, %v8875_v22  ;;  %v8944_v23 = vadd.f32 %v4384_v17, %v4172_v2 }
 0x4c3   : > { %v4568_v59 = vpop.f32.mrf.mxu0  ;;  %v4804_v7 = vpop.f32.mrf.mxu1 }
 0x4c4   : > { %9322 = vst [vmem:[#allocation24_spill] sm:$0xff] %v8944_v23  ;;  %v4626_v29 = vadd.f32 %v4568_v59, %v8878_v52  ;;  %v8947_v61 = vadd.f32 %v4804_v7, %v4625_v5  ;;  %v8984_v59 = vpop.permute.xlu1 %5432 }
 0x4c5   : > { %v4570_v51 = vpop.f32.mrf.mxu0  ;;  %v4806_v46 = vpop.f32.mrf.mxu1  ;;  %9324 = vst [vmem:[#allocation26_spill] sm:$0xff] %v8984_v59 }
 0x4c6   : > { %v4627_v28 = vadd.f32 %v4570_v51, %v8881_v49  ;;  %v8950_v42 = vadd.f32 %v4806_v46, %v4626_v29 }
 0x4c7   : > { %v4572_v18 = vpop.f32.mrf.mxu0  ;;  %v4808_v19 = vpop.f32.mrf.mxu1 }
 0x4c8   : > { %v4628_v33 = vadd.f32 %v4572_v18, %v8884_v48  ;;  %v8953_v37 = vadd.f32 %v4808_v19, %v4627_v28  ;;  %v8989_v28 = vpop.permute.xlu0 %5417 }
 0x4c9   : > { %v4576_v22 = vpop.f32.mrf.mxu0  ;;  %v4810_v34 = vpop.f32.mrf.mxu1 }
 0x4ca   : > { %v4629_v16 = vadd.f32 %v4576_v22, %v8887_v24  ;;  %v8956_v54 = vadd.f32 %v4810_v34, %v4628_v33 }
 0x4cb   : > { %v4578_v52 = vpop.f32.mrf.mxu0  ;;  %v4814_v27 = vpop.f32.mrf.mxu1 }
 0x4cc   : > { %v4630_v55 = vadd.f32 %v4578_v52, %v8890_v41  ;;  %v8959_v60 = vadd.f32 %v4814_v27, %v4629_v16  ;;  %v9005_v27 = vpop.permute.xlu0 %5407 }
 0x4cd   : > { %v4580_v49 = vpop.f32.mrf.mxu0  ;;  %v4816_v0 = vpop.f32.mrf.mxu1 }
 0x4ce   : > { %v4631_v58 = vadd.f32 %v4580_v49, %v8893_v57  ;;  %v8962_v9 = vadd.f32 %v4816_v0, %v4630_v55 }
 0x4cf   : > { %v4582_v48 = vpop.f32.mrf.mxu0  ;;  %v4818_v26 = vpop.f32.mrf.mxu1 }
 0x4d0   : > { %v4632_v3 = vadd.f32 %v4582_v48, %v8896_v11  ;;  %v8965_v45 = vadd.f32 %v4818_v26, %v4631_v58  ;;  %v9021_v26 = vpop.permute.xlu0 %5397 }
 0x4d1   : > { %v4586_v24 = vpop.f32.mrf.mxu0  ;;  %v4820_v15 = vpop.f32.mrf.mxu1 }
 0x4d2   : > { %v4633_v20 = vadd.f32 %v4586_v24, %v8899_v47  ;;  %v8968_v21 = vadd.f32 %v4820_v15, %v4632_v3 }
 0x4d3   : > { %v4588_v41 = vpop.f32.mrf.mxu0  ;;  %v4824_v13 = vpop.f32.mrf.mxu1 }
 0x4d4   : > { %v4634_v35 = vadd.f32 %v4588_v41, %v8902_v50  ;;  %v8971_v10 = vadd.f32 %v4824_v13, %v4633_v20 }
 0x4d5   : > { %v4590_v57 = vpop.f32.mrf.mxu0  ;;  %v4826_v6 = vpop.f32.mrf.mxu1 }
 0x4d6   : > { %v4635_v31 = vadd.f32 %v4590_v57, %v8905_v12  ;;  %v8974_v36 = vadd.f32 %v4826_v6, %v4634_v35 }
 0x4d7   : > { %v4592_v11 = vpop.f32.mrf.mxu0  ;;  %v4828_v63 = vpop.f32.mrf.mxu1 }
 0x4d8   : > { %v4636_v47 = vadd.f32 %v4592_v11, %v8908_v62  ;;  %v8979_v44 = vadd.f32 %v4828_v63, %v4635_v31  ;;  %v5388_v31 = vpop.permute.xlu0 %5387 }
 0x4d9   : > { %v4596_v2 = vpop.f32.mrf.mxu0  ;;  %v4830_v38 = vpop.f32.mrf.mxu1 }
 0x4da   : > { %v4637_v50 = vadd.f32 %v4596_v2, %v8911_v43  ;;  %v8982_v17 = vadd.f32 %v4830_v38, %v4636_v47 }
 0x4db   : > { %v4598_v5 = vpop.f32.mrf.mxu0  ;;  %v4834_v29 = vpop.f32.mrf.mxu1 }
 0x4dc   : > { %v4638_v12 = vadd.f32 %v4598_v5, %v8914_v53  ;;  %v8987_v51 = vadd.f32 %v4834_v29, %v4637_v50  ;;  %v8999_v53 = vpop.permute.xlu1 %5422 }
 0x4dd   : > { %v4600_v7 = vpop.f32.mrf.mxu0  ;;  %v4836_v46 = vpop.f32.mrf.mxu1 }
 0x4de   : > { %v4639_v62 = vadd.f32 %v4600_v7, %v8917_v4  ;;  %v8992_v33 = vadd.f32 %v4836_v46, %v4638_v12  ;;  %v5378_v7 = vpop.permute.xlu0 %5377 }
 0x4df   : > { %v4602_v18 = vpop.f32.mrf.mxu0  ;;  %v4838_v19 = vpop.f32.mrf.mxu1 }
 0x4e0   : > { %v4640_v43 = vadd.f32 %v4602_v18, %v8920_v32  ;;  %v8997_v16 = vadd.f32 %v4838_v19, %v4639_v62  ;;  %v9015_v0 = vpop.permute.xlu1 %5412 }
 0x4e1   : > { %v8995_v22 = vpop.f32.mrf.mxu0  ;;  %v4840_v34 = vpop.f32.mrf.mxu1 }
 0x4e2   : > { %v9003_v55 = vadd.f32 %v4840_v34, %v4640_v43 }
 0x4e3   : > { %v9001_v52 = vpop.f32.mrf.mxu0  ;;  %v9007_v4 = vpop.f32.mrf.mxu1 }
 0x4e4   : > { %v9031_v35 = vpop.permute.xlu1 %5402 }
 0x4e5   : > { %v9009_v49 = vpop.f32.mrf.mxu0  ;;  %v9011_v58 = vpop.f32.mrf.mxu1 }
 0x4e7   : > { %v9013_v32 = vpop.f32.mrf.mxu0  ;;  %v9017_v48 = vpop.f32.mrf.mxu1 }
 0x4e8   : > { %v9042_v50 = vpop.permute.xlu1 %5392 }
 0x4e9   : > { %v9019_v3 = vpop.f32.mrf.mxu0  ;;  %v9023_v24 = vpop.f32.mrf.mxu1 }
 0x4eb   : > { %v9025_v20 = vpop.f32.mrf.mxu0  ;;  %v9027_v15 = vpop.f32.mrf.mxu1 }
 0x4ed   : > { %v9029_v41 = vpop.f32.mrf.mxu0  ;;  %v9033_v13 = vpop.f32.mrf.mxu1 }
 0x4ef   : > { %v9035_v57 = vpop.f32.mrf.mxu0  ;;  %v9037_v6 = vpop.f32.mrf.mxu1 }
 0x4f0   : > { %9325 = vst [vmem:[#allocation27_spill] sm:$0xff] %v9035_v57  ;;  %9326 = vst [vmem:[#allocation28_spill] sm:$0xff] %v9037_v6 }
 0x4f1   : > { %v5042_v11 = vpop.f32.mrf.mxu0  ;;  %v9040_v63 = vpop.f32.mrf.mxu1 }
 0x4f2   : > { %v5101_v47 = vadd.f32 %v5042_v11, %v8947_v61  ;;  %9327 = vst [vmem:[#allocation29_spill] sm:$0xff] %v9040_v63  ;;  %v5383_v11 = vpop.permute.xlu1 %5382 }
 0x4f3   : > { %v5044_v2 = vpop.f32.mrf.mxu0 }
 0x4f4   : > { %v5280_v38 = vpop.f32.mrf.mxu1  ;;  %v5102_v5 = vadd.f32 %v5044_v2, %v8950_v42 }
 0x4f5   : > { %v5046_v12 = vpop.f32.mrf.mxu0  ;;  %v5339_v29 = vadd.f32 %v5280_v38, %v5101_v47 }
 0x4f6   : > { %v5282_v62 = vpop.f32.mrf.mxu1  ;;  %v5103_v46 = vadd.f32 %v5046_v12, %v8953_v37 }
 0x4f7   : > { %v5435_v18 = vadd.f32 %v5378_v7, %v5339_v29  ;;  %v5048_v43 = vpop.f32.mrf.mxu0  ;;  %v5340_v19 = vadd.f32 %v5282_v62, %v5102_v5 }
 0x4f8   : > { %v5284_v34 = vpop.f32.mrf.mxu1  ;;  %v5104_v63 = vadd.f32 %v5048_v43, %v8956_v54 }
 0x4f9   : > { %v5052_v59 = vpop.f32.mrf.mxu0  ;;  %v5341_v61 = vadd.f32 %v5284_v34, %v5103_v46  ;;  %v5483_v14 = vmul.f32 0.01, %v5435_v18  ;;  %v5436_v6 = vadd.f32 %v5378_v7, %v5340_v19  ;;  %vm5459_vm3 = vcmp.ge.f32.partialorder %v5435_v18, 0.0 }
 0x4fa   : > { %v5286_v57 = vpop.f32.mrf.mxu1  ;;  %v5105_v42 = vadd.f32 %v5052_v59, %v8959_v60 }
 0x4fb   : > { %v5437_v47 = vadd.f32 %v5383_v11, %v5341_v61  ;;  %v5054_v2 = vpop.f32.mrf.mxu0  ;;  %v5342_v38 = vadd.f32 %v5286_v57, %v5104_v63  ;;  %v9049_v62 = vsel %vm5459_vm3, %v5435_v18, %v5483_v14  ;;  %v5484_v46 = vmul.f32 0.01, %v5436_v6 }
 0x4fc   : > { %v5290_v23 = vpop.f32.mrf.mxu1  ;;  %v5106_v5 = vadd.f32 %v5054_v2, %v8962_v9  ;;  %vm5460_vm5 = vcmp.ge.f32.partialorder %v5436_v6, 0.0 }
 0x4fd   : > { %vm5461_vm4 = vcmp.ge.f32.partialorder %v5437_v47, 0.0  ;;  %v5485_v37 = vmul.f32 0.01, %v5437_v47  ;;  %v5056_v12 = vpop.f32.mrf.mxu0  ;;  %v5343_v29 = vadd.f32 %v5290_v23, %v5105_v42  ;;  %v5438_v34 = vadd.f32 %v5383_v11, %v5342_v38 }
 0x4fe   : > { %v5292_v54 = vpop.f32.mrf.mxu1  ;;  %v5107_v43 = vadd.f32 %v5056_v12, %v8965_v45 }
 0x4ff   : > { %v9051_v7 = vsel %vm5461_vm4, %v5437_v47, %v5485_v37  ;;  %v5439_v60 = vadd.f32 %v5388_v31, %v5343_v29  ;;  %v5058_v59 = vpop.f32.mrf.mxu0  ;;  %v5344_v19 = vadd.f32 %v5292_v54, %v5106_v5  ;;  %vm5462_vm6 = vcmp.ge.f32.partialorder %v5438_v34, 0.0 }
 0x500   : > { %v5486_v57 = vmul.f32 0.01, %v5438_v34  ;;  %v5294_v63 = vpop.f32.mrf.mxu1  ;;  %v5531_v9 = vpack.c.bf16 %v9051_v7, %v9049_v62  ;;  %v5108_v61 = vadd.f32 %v5058_v59, %v8968_v21  ;;  %v9062_v37 = vsel %vm5460_vm5, %v5436_v6, %v5484_v46 }
 0x501   : > { %v5062_v23 = vpop.f32.mrf.mxu0  ;;  %v5345_v14 = vadd.f32 %v5294_v63, %v5107_v43  ;;  %v5487_v18 = vmul.f32 0.01, %v5439_v60  ;;  %v5440_v11 = vadd.f32 %v5388_v31, %v5344_v19  ;;  %vm5463_vm7 = vcmp.ge.f32.partialorder %v5439_v60, 0.0 }
 0x502   : > { %v5296_v42 = vpop.f32.mrf.mxu1  ;;  %v9057_v47 = vsel %vm5462_vm6, %v5438_v34, %v5486_v57  ;;  %v5109_v45 = vadd.f32 %v5062_v23, %v8971_v10 }
 0x503   : > { %v5441_v2 = vadd.f32 %v9042_v50, %v5345_v14  ;;  %v5064_v38 = vpop.f32.mrf.mxu0  ;;  %v5346_v5 = vadd.f32 %v5296_v42, %v5108_v61  ;;  %v5532_v29 = vpack.c.bf16 %v9057_v47, %v9062_v37  ;;  %v9067_v43 = vsel %vm5463_vm7, %v5439_v60, %v5487_v18 }
 0x504   : > { %v5300_v12 = vpop.f32.mrf.mxu1  ;;  %v5110_v31 = vadd.f32 %v5064_v38, %v8974_v36  ;;  %v5488_v10 = vmul.f32 0.01, %v5440_v11  ;;  %vm5464_vm9 = vcmp.ge.f32.partialorder %v5440_v11, 0.0  ;;  %v4641_v18 = vadd.f32 %v8995_v22, %v8923_v30 }
 0x505   : > { %vm5465_vm8 = vcmp.ge.f32.partialorder %v5441_v2, 0.0  ;;  %v5489_v21 = vmul.f32 0.01, %v5441_v2  ;;  %v5066_v34 = vpop.f32.mrf.mxu0  ;;  %v5347_v54 = vadd.f32 %v5300_v12, %v5109_v45  ;;  %v5442_v59 = vadd.f32 %v9042_v50, %v5346_v5 }
 0x506   : > { %v5302_v19 = vpop.f32.mrf.mxu1  ;;  %v5111_v6 = vadd.f32 %v5066_v34, %v8979_v44  ;;  %v4642_v30 = vadd.f32 %v9001_v52, %v8926_v8  ;;  %v4879_v22 = vadd.f32 %v9007_v4, %v4641_v18 }
 0x507   : > { %v9070_v57 = vsel %vm5465_vm8, %v5441_v2, %v5489_v21  ;;  %v5443_v46 = vadd.f32 %v9021_v26, %v5347_v54  ;;  %v5068_v63 = vpop.f32.mrf.mxu0  ;;  %v5348_v23 = vadd.f32 %v5302_v19, %v5110_v31  ;;  %vm5466_vm10 = vcmp.ge.f32.partialorder %v5442_v59, 0.0 }
 0x508   : > { %v5490_v14 = vmul.f32 0.01, %v5442_v59  ;;  %v5304_v36 = vpop.f32.mrf.mxu1  ;;  %v5533_v60 = vpack.c.bf16 %v9070_v57, %v9067_v43  ;;  %v5112_v45 = vadd.f32 %v5068_v63, %v8982_v17  ;;  %v9085_v31 = vsel %vm5464_vm9, %v5440_v11, %v5488_v10  ;;  %v5548_v43 = vpop.permute.xlu0 %5547 }
 0x509   : > { %v5072_v50 = vpop.f32.mrf.mxu0  ;;  %v5349_v61 = vadd.f32 %v5304_v36, %v5111_v6  ;;  %v5491_v42 = vmul.f32 0.01, %v5443_v46  ;;  %v5444_v44 = vadd.f32 %v9021_v26, %v5348_v23  ;;  %vm5467_vm11 = vcmp.ge.f32.partialorder %v5443_v46, 0.0 }
 0x50a   : > { %v5306_v2 = vpop.f32.mrf.mxu1  ;;  %v9080_v38 = vsel %vm5466_vm10, %v5442_v59, %v5490_v14  ;;  %v5113_v5 = vadd.f32 %v5072_v50, %v8987_v51  ;;  %v4643_v11 = vadd.f32 %v9009_v49, %v8929_v39  ;;  %v4644_v49 = vadd.f32 %v9013_v32, %v8932_v40 }
 0x50b   : > { %v5445_v12 = vadd.f32 %v9031_v35, %v5349_v61  ;;  %v5074_v21 = vpop.f32.mrf.mxu0  ;;  %v5350_v17 = vadd.f32 %v5306_v2, %v5112_v45  ;;  %v5534_v26 = vpack.c.bf16 %v9080_v38, %v9085_v31  ;;  %v9096_v10 = vsel %vm5467_vm11, %v5443_v46, %v5491_v42 }
 0x50c   : > { %v5310_v34 = vpop.f32.mrf.mxu1  ;;  %v5114_v51 = vadd.f32 %v5074_v21, %v8992_v33  ;;  %v5492_v8 = vmul.f32 0.01, %v5444_v44  ;;  %vm5468_vm15 = vcmp.ge.f32.partialorder %v5444_v44, 0.0  ;;  %v4881_v46 = vadd.f32 %v9017_v48, %v4643_v11 }
 0x50d   : > { %vm5469_vm14 = vcmp.ge.f32.partialorder %v5445_v12, 0.0  ;;  %v5493_v54 = vmul.f32 0.01, %v5445_v12  ;;  %v5076_v59 = vpop.f32.mrf.mxu0  ;;  %v5351_v19 = vadd.f32 %v5310_v34, %v5113_v5  ;;  %v5446_v52 = vadd.f32 %v9031_v35, %v5350_v17 }
 0x50e   : > { %v5312_v4 = vpop.f32.mrf.mxu1  ;;  %v5115_v63 = vadd.f32 %v5076_v59, %v8997_v16  ;;  %v4880_v35 = vadd.f32 %v9011_v58, %v4642_v30  ;;  %v9115_v40 = vsel %vm5468_vm15, %v5444_v44, %v5492_v8  ;;  %v4645_v58 = vadd.f32 %v9019_v3, %v8935_v25 }
 0x50f   : > { %v9099_v6 = vsel %vm5469_vm14, %v5445_v12, %v5493_v54  ;;  %v5447_v23 = vadd.f32 %v9005_v27, %v5351_v19  ;;  %v5078_v14 = vpop.f32.mrf.mxu0  ;;  %v5352_v33 = vadd.f32 %v5312_v4, %v5114_v51  ;;  %vm5470_vm0 = vcmp.ge.f32.partialorder %v5446_v52, 0.0 }
 0x510   : > { %v5494_v36 = vmul.f32 0.01, %v5446_v52  ;;  %v5314_v18 = vpop.f32.mrf.mxu1  ;;  %v5535_v39 = vpack.c.bf16 %v9099_v6, %v9096_v10  ;;  %v5116_v42 = vadd.f32 %v5078_v14, %v9003_v55  ;;  %v4882_v32 = vadd.f32 %v9023_v24, %v4644_v49  ;;  %v5543_v10 = vld [vmem:[%s404_s21] sm:$0x1] }
 0x511   : > { %v5082_v50 = vpop.f32.mrf.mxu0  ;;  %v5353_v16 = vadd.f32 %v5314_v18, %v5115_v63  ;;  %v5495_v61 = vmul.f32 0.01, %v5447_v23  ;;  %v5448_v45 = vadd.f32 %v9005_v27, %v5352_v33  ;;  %vm5471_vm1 = vcmp.ge.f32.partialorder %v5447_v23, 0.0 }
 0x512   : > { %v5316_v2 = vpop.f32.mrf.mxu1  ;;  %v9111_v5 = vsel %vm5470_vm0, %v5446_v52, %v5494_v36  ;;  %v5117_v12 = vadd.f32 %v5082_v50, %v4879_v22  ;;  %v4646_v51 = vadd.f32 %v9025_v20, %v8938_v56  ;;  %v4647_v20 = vadd.f32 %v9029_v41, %v8941_v1  ;;  %v9328_v1 = vld [vmem:[#allocation24_spill] sm:$0xff]  ;;  %v9329_v41 = vld [vmem:[#allocation27_spill] sm:$0xff] }
 0x513   : > { %v5449_v21 = vadd.f32 %v9015_v0, %v5353_v16  ;;  %v5084_v17 = vpop.f32.mrf.mxu0  ;;  %v5354_v48 = vadd.f32 %v5316_v2, %v5116_v42  ;;  %v5536_v27 = vpack.c.bf16 %v9111_v5, %v9115_v40  ;;  %v9125_v44 = vsel %vm5471_vm1, %v5447_v23, %v5495_v61  ;;  %v9330_v2 = vld [vmem:[#allocation28_spill] sm:$0xff] }
 0x514   : > { %v5320_v55 = vpop.f32.mrf.mxu1  ;;  %v5118_v34 = vadd.f32 %v5084_v17, %v4880_v35  ;;  %v5496_v59 = vmul.f32 0.01, %v5448_v45  ;;  %vm5472_vm12 = vcmp.ge.f32.partialorder %v5448_v45, 0.0  ;;  %v4884_v23 = vadd.f32 %v9033_v13, %v4646_v51 }
 0x515   : > { %vm5473_vm2 = vcmp.ge.f32.partialorder %v5449_v21, 0.0  ;;  %v5497_v30 = vmul.f32 0.01, %v5449_v21  ;;  %v5086_v22 = vpop.f32.mrf.mxu0  ;;  %v5355_v54 = vadd.f32 %v5320_v55, %v5117_v12  ;;  %v5450_v25 = vadd.f32 %v9015_v0, %v5354_v48  ;;  %v9331_v55 = vld [vmem:[#allocation29_spill] sm:$0xff] }
 0x516   : > { %v5322_v3 = vpop.f32.mrf.mxu1  ;;  %v5119_v19 = vadd.f32 %v5086_v22, %v4881_v46  ;;  %v4883_v0 = vadd.f32 %v9027_v15, %v4645_v58  ;;  %v5520_v42 = vsel %vm5472_vm12, %v5448_v45, %v5496_v59  ;;  %v4648_v15 = vadd.f32 %v9329_v41, %v9328_v1 }
 0x517   : > { %v9128_v24 = vsel %vm5473_vm2, %v5449_v21, %v5497_v30  ;;  %v5451_v11 = vadd.f32 %v8989_v28, %v5355_v54  ;;  %v5088_v8 = vpop.f32.mrf.mxu0  ;;  %v5356_v52 = vadd.f32 %v5322_v3, %v5118_v34  ;;  %vm5474_vm3 = vcmp.ge.f32.partialorder %v5450_v25, 0.0 }
 0x518   : > { %v5498_v4 = vmul.f32 0.01, %v5450_v25  ;;  %v5324_v63 = vpop.f32.mrf.mxu1  ;;  %v5537_v56 = vpack.c.bf16 %v9128_v24, %v9125_v44  ;;  %v5120_v18 = vadd.f32 %v5088_v8, %v4882_v32  ;;  %v4885_v13 = vadd.f32 %v9330_v2, %v4647_v20 }
 0x519   : > { %v5092_v14 = vpop.f32.mrf.mxu0  ;;  %v5357_v33 = vadd.f32 %v5324_v63, %v5119_v19  ;;  %v5499_v36 = vmul.f32 0.01, %v5451_v11  ;;  %v5452_v49 = vadd.f32 %v8989_v28, %v5356_v52  ;;  %vm5475_vm4 = vcmp.ge.f32.partialorder %v5451_v11, 0.0 }
 0x51a   : > { %v5326_v35 = vpop.f32.mrf.mxu1  ;;  %v5522_v46 = vsel %vm5474_vm3, %v5450_v25, %v5498_v4  ;;  %v5121_v50 = vadd.f32 %v5092_v14, %v4883_v0  ;;  %v4886_v30 = vadd.f32 %v9331_v55, %v4648_v15  ;;  %v9332_v25 = vld [vmem:[#allocation25_spill] sm:$0xff]  ;;  %v6562_v38 = vmov 1966171168  }
 0x51b   : > { %v5453_v16 = vadd.f32 %v8999_v53, %v5357_v33  ;;  %v5094_v61 = vpop.f32.mrf.mxu0  ;;  %v5358_v12 = vadd.f32 %v5326_v35, %v5120_v18  ;;  %v5538_v17 = vpack.c.bf16 %v5522_v46, %v5520_v42  ;;  %v5523_v34 = vsel %vm5475_vm4, %v5451_v11, %v5499_v36 }
 0x51c   : > { %v5330_v21 = vpop.f32.mrf.mxu1  ;;  %v5122_v28 = vadd.f32 %v5094_v61, %v4884_v23  ;;  %v5500_v22 = vmul.f32 0.01, %v5452_v49  ;;  %vm5476_vm6 = vcmp.ge.f32.partialorder %v5452_v49, 0.0  ;;  %v5602_v31 = vunpack.c.l.s4 %v6562_v38 }
 0x51d   : > { %vm5477_vm5 = vcmp.ge.f32.partialorder %v5453_v16, 0.0  ;;  %v5501_v58 = vmul.f32 0.01, %v5453_v16  ;;  %v5096_v32 = vpop.f32.mrf.mxu0  ;;  %v5359_v48 = vadd.f32 %v5330_v21, %v5121_v50  ;;  %v5454_v45 = vadd.f32 %v8999_v53, %v5358_v12  ;;  %v9333_v53 = vld [vmem:[#allocation26_spill] sm:$0xff] }
 0x51e   : > { %v5332_v54 = vpop.f32.mrf.mxu1  ;;  %v5123_v59 = vadd.f32 %v5096_v32, %v4885_v13  ;;  %v5524_v18 = vsel %vm5476_vm6, %v5452_v49, %v5500_v22  ;;  %v5603_v57 = vunpack.c.0.s8 %v5602_v31 }
 0x51f   : > { %v5525_v51 = vsel %vm5477_vm5, %v5453_v16, %v5501_v58  ;;  %v5455_v3 = vadd.f32 %v9332_v25, %v5359_v48  ;;  %v5098_v19 = vpop.f32.mrf.mxu0  ;;  %v5360_v8 = vadd.f32 %v5332_v54, %v5122_v28  ;;  %vm5478_vm7 = vcmp.ge.f32.partialorder %v5454_v45, 0.0 }
 0x520   : > { %v5502_v52 = vmul.f32 0.01, %v5454_v45  ;;  %v5334_v4 = vpop.f32.mrf.mxu1  ;;  %v5539_v63 = vpack.c.bf16 %v5525_v51, %v5523_v34  ;;  %v5124_v0 = vadd.f32 %v5098_v19, %v4886_v30 }
 0x521   : > { %v5361_v20 = vadd.f32 %v5334_v4, %v5123_v59  ;;  %v5456_v23 = vadd.f32 %v9332_v25, %v5360_v8  ;;  %v5503_v33 = vmul.f32 0.01, %v5455_v3  ;;  %vm5479_vm8 = vcmp.ge.f32.partialorder %v5455_v3, 0.0 }
 0x522   : > { %v5336_v11 = vpop.f32.mrf.mxu1  ;;  %v5526_v14 = vsel %vm5478_vm7, %v5454_v45, %v5502_v52 }
 0x523   : > { %v5457_v36 = vadd.f32 %v9333_v53, %v5361_v20  ;;  %v5362_v35 = vadd.f32 %v5336_v11, %v5124_v0  ;;  %v5540_v46 = vpack.c.bf16 %v5526_v14, %v5524_v18  ;;  %v5504_v16 = vmul.f32 0.01, %v5456_v23 }
 0x524   : > { %v5527_v42 = vsel %vm5479_vm8, %v5455_v3, %v5503_v33  ;;  %vm5480_vm10 = vcmp.ge.f32.partialorder %v5456_v23, 0.0 }
 0x525   : > { %vm5481_vm9 = vcmp.ge.f32.partialorder %v5457_v36, 0.0  ;;  %v5505_v50 = vmul.f32 0.01, %v5457_v36  ;;  %v5458_v61 = vadd.f32 %v9333_v53, %v5362_v35  ;;  %v5528_v2 = vsel %vm5480_vm10, %v5456_v23, %v5504_v16 }
 0x527   : > { %v5529_v1 = vsel %vm5481_vm9, %v5457_v36, %v5505_v50  ;;  %vm5482_vm11 = vcmp.ge.f32.partialorder %v5458_v61, 0.0  ;;  %v5506_v41 = vmul.f32 0.01, %v5458_v61 }
 0x528   : > { %v5541_v15 = vpack.c.bf16 %v5529_v1, %v5527_v42 }
 0x529   : > { %v5530_v13 = vsel %vm5482_vm11, %v5458_v61, %v5506_v41 }
 0x52a   : > { %v5542_v12 = vpack.c.bf16 %v5530_v13, %v5528_v2 }
 0x52c   : > { %5561 = vmatprep.subr.bf16.mxu0 %v5542_v12 }
 0x52d   : > { %5562 = vmatpush1.bf16.msra.mxu0 %v5541_v15 }
 0x52e   : > { %5563 = vmatprep.subr.bf16.mxu0 %v5540_v46 }
 0x531   : > { %5564 = vmatpush1.bf16.msra.mxu0 %v5539_v63 }
 0x532   : > { %5565 = vmatprep.subr.bf16.mxu0 %v5538_v17 }
 0x535   : > { %5566 = vmatpush1.bf16.msra.mxu0 %v5537_v56 }
 0x536   : > { %5567 = vmatprep.subr.bf16.mxu0 %v5536_v27  ;;  %v9336_v27 = vlaneseq }
 0x539   : > { %5568 = vmatpush1.bf16.msra.mxu0 %v5535_v39 }
 0x53a   : > { %5569 = vmatprep.subr.bf16.mxu0 %v5534_v26  ;;  %v9334_v26 = vld [vmem:[#allocation2_spill] sm:$0xff] }
 0x53b   : > { %v9335_v47 = vsub.s32 0, %v9334_v26  ;;  %v5606_v5 = vsub.s32 %v5603_v57, %v9334_v26 }
 0x53d   : > { %5570 = vmatpush1.bf16.msra.mxu0 %v5533_v60  ;;  %v5553_v37 = vrot.slane %v5548_v43, %v9335_v47 }
 0x53e   : > { %5571 = vmatprep.subr.bf16.mxu0 %v5532_v29 }
 0x541   : > { %5572 = vmatpush1.bf16.msra.mxu0 %v5531_v9 }
 0x544   : > { %6213 = vmatmul.mubr.msk.bf16.vlgmr.msra.gmra.mxu0 %vm3384_vm13, %v5543_v10  ;;  %vm5618_vm13 = vcmp.lt.s32.totalorder %v9336_v27, 256 }
 0x604   : > { %v5591_v60 = vpop.f32.mrf.mxu0 }
 0x605   : > { %v5592_v6 = vadd.f32 %v5591_v60, %v5553_v37 }
 0x606   : > { %v5593_v29 = vpop.f32.mrf.mxu0 }
 0x607   : > { %v5594_v39 = vadd.f32 %v5593_v29, %v5553_v37 }
 0x608   : > { %v5595_v40 = vpop.f32.mrf.mxu0 }
 0x609   : > { %v5600_v62 = vcombine.low %v5592_v6, %v5594_v39 }
 0x60a   : > { %v5596_v7 = vpop.f32.mrf.mxu0 }
 0x60b   : > { %v5607_v9 = vrot.slane %v5600_v62, %v5606_v5 }
 0x60d   : > { %v5614_v44 = vrot.slane %v5607_v9, %v5606_v5 }
 0x60f   : > { %5620 = vst.msk [vmem:[%s411_s25] sm:$0x3] %vm5618_vm13, %v5614_v44 }
 0x610 PF: > { %s18_s27 = sadd.s32 1, %s6548_s27  }
 0x611   : > { %p15_p4 = scmp.ge.s32.totalorder %s18_s27, 4  }
 0x613   :  { %17 = sbr.rel (!%p15_p4) target bundleno = 1 (0x1), region = 116 }

</bundles_post_ra>
